<compile_context>
chip_gen: v7x
topology: tpu7x:2x2x1
jax: 0.10.0
libtpu: 0.0.40
codegen_flags: <defaults>
</compile_context>

<pallas_src>
import jax
import jax.numpy as jnp
from jax.experimental import pallas as pl
from jax.experimental.pallas import tpu as pltpu

LANE = 128  # lane-dense padded channel width carried between layers


def _round_up(x, m):
    return (x + m - 1) // m * m


def _pick_tm(m, max_tm=512):
    # Largest power-of-two M tile <= max_tm that still leaves >= 2 grid steps
    # (keeps both TensorCores busy on v7x; harmless on single-TC v5e/v6e).
    for tm in (1024, 512, 256, 128, 64, 32, 16, 8):
        if tm <= max_tm and m > tm:
            return tm
    return 8


# ---------------------------------------------------------------------------
# Conv inner kernel:  ReLU(sum_t a_t @ w[t] + b)  [+ fused 1x1 conv + ReLU].
# Single grid step along K  ->  no accumulator scratch, no init/finalize.
# bf16 MXU inputs, f32 accumulation, lane-dense (128-wide) stores.
# ---------------------------------------------------------------------------
def _make_conv_kernel(n_taps, fused):
    def kernel(*refs):
        a_refs = refs[:n_taps]
        w_ref = refs[n_taps]          # (T, K, Np) bf16, VMEM-resident
        b_ref = refs[n_taps + 1]      # (1, Np) f32
        o_ref = refs[-1]

        acc = jnp.dot(a_refs[0][...], w_ref[0],
                      preferred_element_type=jnp.float32)
        for t in range(1, n_taps):
            acc = acc + jnp.dot(a_refs[t][...], w_ref[t],
                                preferred_element_type=jnp.float32)
        y = jnp.maximum(acc + b_ref[...], 0.0)

        if fused:                     # stem4: 1x1 conv + bias + ReLU
            w2_ref = refs[n_taps + 2]     # (Np, N2p) bf16
            b2_ref = refs[n_taps + 3]     # (1, N2p) f32
            y = jnp.dot(y.astype(jnp.bfloat16), w2_ref[...],
                        preferred_element_type=jnp.float32)
            y = jnp.maximum(y + b2_ref[...], 0.0)

        o_ref[...] = y.astype(o_ref.dtype)
    return kernel


# ---------------------------------------------------------------------------
# Conv + (folded) BN + ReLU wrapper.
# ---------------------------------------------------------------------------
def conv_bn_relu(x, w, b, *, stride, pad, cin_groups, fuse=None,
                 out_dtype=jnp.bfloat16, max_tm=512):
    """One Pallas MXU kernel per conv.

    x          : (n, h, w, cx) NHWC bf16; channels may carry zero lane-padding.
    w, b       : folded HWIO weight (KH, KW, cin_true, cout) and bias (cout,).
    pad        : (top, bottom, left, right) zero padding (asymmetric ok, so the
                 module's standalone F.pad ops are folded in here).
    cin_groups : [(true, padded), ...] mapping the weight's cin rows onto x's
                 (possibly padded) channel axis.
    fuse       : optional (w2, b2) of a following 1x1 conv+ReLU computed in the
                 same kernel epilogue (stem4 fused into stem3).
    """
    KH, KW, cin_true, cout = w.shape
    n, _, _, cx = x.shape
    assert sum(t for t, _ in cin_groups) == cin_true
    assert sum(p for _, p in cin_groups) == cx

    # Weights: scatter true cin rows into x's padded channel layout, pad cout
    # to a lane-dense 128, cast to bf16, keep as one (T, K, Np) array.
    parts, off = [], 0
    for t, p in cin_groups:
        wg = w[:, :, off:off + t, :]
        parts.append(jnp.pad(wg, ((0, 0), (0, 0), (0, p - t), (0, 0))))
        off += t
    w_full = parts[0] if len(parts) == 1 else jnp.concatenate(parts, axis=2)
    K = w_full.shape[2]
    Np = _round_up(cout, LANE)
    w_full = jnp.pad(w_full, ((0, 0), (0, 0), (0, 0), (0, Np - cout)))
    w_taps = w_full.reshape(KH * KW, K, Np).astype(jnp.bfloat16)
    b_p = jnp.pad(b, (0, Np - cout)).astype(jnp.float32).reshape(1, Np)

    fuse_args = []
    n_out = Np
    if fuse is not None:
        w2, b2 = fuse                                 # (1, 1, cout, c2), (c2,)
        c_mid, c2 = w2.shape[2], w2.shape[3]
        N2p = _round_up(c2, LANE)
        w2_p = jnp.pad(w2.reshape(c_mid, c2),
                       ((0, Np - c_mid), (0, N2p - c2))).astype(jnp.bfloat16)
        b2_p = jnp.pad(b2, (0, N2p - c2)).astype(jnp.float32).reshape(1, N2p)
        fuse_args = [w2_p, b2_p]
        n_out = N2p

    # Spatial padding folded in here (no standalone pads between pallas calls).
    pt, pb, pl_, pr = pad
    if pt or pb or pl_ or pr:
        x = jnp.pad(x, ((0, 0), (pt, pb), (pl_, pr), (0, 0)))
    hp, wp = x.shape[1], x.shape[2]
    ho = (hp - KH) // stride + 1
    wo = (wp - KW) // stride + 1
    M = n * ho * wo

    # KH*KW shifted/strided tap views (cheap XLA slices; no (M, KH*KW*cin)
    # im2col concatenate is ever written to HBM).
    # TODO(synk): for very large stem resolutions, form these shifts in VMEM
    # from a single NHWC row-band instead of wrapper-side views.
    taps = []
    for kh in range(KH):
        for kw in range(KW):
            v = jax.lax.slice(
                x, (0, kh, kw, 0),
                (n, kh + (ho - 1) * stride + 1, kw + (wo - 1) * stride + 1, K),
                (1, stride, stride, 1))
            taps.append(v.reshape(M, K).astype(jnp.bfloat16))

    tm = _pick_tm(M, max_tm)
    Mp = _round_up(M, tm)
    if Mp != M:
        taps = [jnp.pad(t_, ((0, Mp - M), (0, 0))) for t_ in taps]

    T = KH * KW
    in_specs = [pl.BlockSpec((tm, K), lambda i: (i, 0)) for _ in range(T)]
    in_specs += [pl.BlockSpec((T, K, Np), lambda i: (0, 0, 0)),  # VMEM-resident
                 pl.BlockSpec((1, Np), lambda i: (0, 0))]
    if fuse is not None:
        in_specs += [pl.BlockSpec((Np, n_out), lambda i: (0, 0)),
                     pl.BlockSpec((1, n_out), lambda i: (0, 0))]

    out = pl.pallas_call(
        _make_conv_kernel(T, fuse is not None),
        out_shape=jax.ShapeDtypeStruct((Mp, n_out), out_dtype),
        grid=(Mp // tm,),
        in_specs=in_specs,
        out_specs=pl.BlockSpec((tm, n_out), lambda i: (i, 0)),
        compiler_params=pltpu.CompilerParams(
            dimension_semantics=("parallel",),
            vmem_limit_bytes=32 * 1024 * 1024),
    )(*taps, w_taps, b_p, *fuse_args)

    if Mp != M:
        out = out[:M]
    return out.reshape(n, ho, wo, n_out)


# ---------------------------------------------------------------------------
# MaxPool2d(kernel=2, stride=1, pad=0) — single-input Pallas VPU kernel.
# The input already carries the module's right/bottom zero pad, and all values
# are ReLU outputs (>= 0), so this matches ceil_mode pooling exactly.
# ---------------------------------------------------------------------------
def _maxpool2x2_kernel(x_ref, o_ref):
    ho, wo = o_ref.shape[1], o_ref.shape[2]
    x = x_ref[...]                                           # (1, ho+1, wo+1, C)
    xw = jnp.maximum(x[:, :, :wo, :], x[:, :, 1:, :])        # 2-wide W window
    o_ref[...] = jnp.maximum(xw[:, :ho, :, :], xw[:, 1:, :, :])  # 2-wide H window


def maxpool2x2_s1(x):
    n, hp, wp, c = x.shape
    ho, wo = hp - 1, wp - 1
    # TODO(synk): at very large stem resolutions, band the H axis (overlapping
    # row windows) instead of one whole-image block per batch element.
    return pl.pallas_call(
        _maxpool2x2_kernel,
        out_shape=jax.ShapeDtypeStruct((n, ho, wo, c), x.dtype),
        grid=(n,),
        in_specs=[pl.BlockSpec((1, hp, wp, c), lambda b: (b, 0, 0, 0))],
        out_specs=pl.BlockSpec((1, ho, wo, c), lambda b: (b, 0, 0, 0)),
        compiler_params=pltpu.CompilerParams(
            dimension_semantics=("parallel",),
            vmem_limit_bytes=32 * 1024 * 1024),
    )(x)


# ---------------------------------------------------------------------------
# HGStem forward (Pallas) and pure-JAX f32 reference.
# ---------------------------------------------------------------------------
def hgstem_forward(params, x_nchw):
    w1, b1 = params["stem1"]
    w2a, b2a = params["stem2a"]
    w2b, b2b = params["stem2b"]
    w3, b3 = params["stem3"]
    w4, b4 = params["stem4"]
    c1, cm = w1.shape[2], w1.shape[3]
    c2 = w4.shape[3]

    x = jnp.transpose(x_nchw, (0, 2, 3, 1)).astype(jnp.bfloat16)  # NCHW -> NHWC
    x = conv_bn_relu(x, w1, b1, stride=2, pad=(1, 1, 1, 1),
                     cin_groups=[(c1, c1)])
    # Shared right/bottom pad: consumed by both stem2a and the max pool.
    xp = jnp.pad(x, ((0, 0), (0, 1), (0, 1), (0, 0)))
    x2 = conv_bn_relu(xp, w2a, b2a, stride=1, pad=(0, 0, 0, 0),
                      cin_groups=[(cm, xp.shape[-1])])
    # F.pad(x2, [0,1,0,1]) folded into stem2b's conv as asymmetric padding.
    x2 = conv_bn_relu(x2, w2b, b2b, stride=1, pad=(0, 1, 0, 1),
                      cin_groups=[(w2a.shape[3], x2.shape[-1])])
    x1 = maxpool2x2_s1(xp)
    xc = jnp.concatenate([x1, x2], axis=-1)          # torch.cat(dim=1) in NHWC
    # stem3 (3x3 s2) with stem4 (1x1) fused into the same kernel's epilogue.
    y = conv_bn_relu(xc, w3, b3, stride=2, pad=(1, 1, 1, 1),
                     cin_groups=[(cm, x1.shape[-1]),
                                 (w2b.shape[3], x2.shape[-1])],
                     fuse=(w4, b4), out_dtype=jnp.float32)
    y = y[..., :c2]                                  # drop carried lane padding
    return jnp.transpose(y, (0, 3, 1, 2))            # NHWC -> NCHW


def _conv_ref(x, w, b, stride, pad):
    y = jax.lax.conv_general_dilated(
        x, w, window_strides=(stride, stride),
        padding=((pad, pad), (pad, pad)),
        dimension_numbers=("NHWC", "HWIO", "NHWC"),
        precision=jax.lax.Precision.HIGHEST)
    return jnp.maximum(y + b, 0.0)


def hgstem_ref(params, x_nchw):
    x = jnp.transpose(x_nchw, (0, 2, 3, 1))
    w, b = params["stem1"]; x = _conv_ref(x, w, b, 2, 1)
    x = jnp.pad(x, ((0, 0), (0, 1), (0, 1), (0, 0)))
    w, b = params["stem2a"]; x2 = _conv_ref(x, w, b, 1, 0)
    x2 = jnp.pad(x2, ((0, 0), (0, 1), (0, 1), (0, 0)))
    w, b = params["stem2b"]; x2 = _conv_ref(x2, w, b, 1, 0)
    x1 = jax.lax.reduce_window(x, -jnp.inf, jax.lax.max,
                               (1, 2, 2, 1), (1, 1, 1, 1), "VALID")
    x = jnp.concatenate([x1, x2], axis=-1)
    w, b = params["stem3"]; x = _conv_ref(x, w, b, 2, 1)
    w, b = params["stem4"]; x = _conv_ref(x, w, b, 1, 0)
    return jnp.transpose(x, (0, 3, 1, 2))


# ---------------------------------------------------------------------------
# Parameter construction (Conv weight + BatchNorm, folded for inference).
# ---------------------------------------------------------------------------
def _fold_bn(w, gamma, beta, mean, var, eps=1e-3):
    scale = gamma / jnp.sqrt(var + eps)                  # (Cout,)
    return w * scale, beta - mean * scale                # HWIO * scale on Cout


def init_hgstem_params(key, c1, cm, c2):
    def conv_params(k, kh, kw, cin, cout):
        k1, k2, k3, k4, k5 = jax.random.split(k, 5)
        w = jax.random.normal(k1, (kh, kw, cin, cout), jnp.float32)
        w = w / jnp.sqrt(float(kh * kw * cin))
        gamma = 1.0 + 0.1 * jax.random.normal(k2, (cout,), jnp.float32)
        beta = 0.1 * jax.random.normal(k3, (cout,), jnp.float32)
        mean = 0.1 * jax.random.normal(k4, (cout,), jnp.float32)
        var = jnp.abs(jax.random.normal(k5, (cout,), jnp.float32)) + 0.5
        return _fold_bn(w, gamma, beta, mean, var)

    ks = jax.random.split(key, 5)
    return {
        "stem1":  conv_params(ks[0], 3, 3, c1, cm),
        "stem2a": conv_params(ks[1], 2, 2, cm, cm // 2),
        "stem2b": conv_params(ks[2], 2, 2, cm // 2, cm),
        "stem3":  conv_params(ks[3], 3, 3, 2 * cm, cm),
        "stem4":  conv_params(ks[4], 1, 1, cm, c2),
    }


if __name__ == "__main__":
    key = jax.random.PRNGKey(0)
    kx, kp = jax.random.split(key)

    c1, cm, c2 = 3, 16, 32
    x = jax.random.normal(kx, (2, c1, 32, 32), dtype=jnp.float32)
    params = init_hgstem_params(kp, c1, cm, c2)

    fwd = jax.jit(hgstem_forward)
    y = jax.block_until_ready(fwd(params, x))

    y_ref = hgstem_ref(params, x)
    assert y.shape == (2, c2, 8, 8), y.shape
    # bf16 MXU inputs (f32 accumulation) -> loosened tolerance vs the f32 ref.
    err = float(jnp.max(jnp.abs(y - y_ref)))
    assert jnp.allclose(y, y_ref, atol=5e-2, rtol=5e-2), err

    print("KERNEL_OK")
</pallas_src>

<mosaic_0001>
module attributes {stable_mosaic.version = 11 : i64} {
  func.func @kernel(%arg0: i32, %arg1: memref<256x3xbf16, #tpu.memory_space<vmem>>, %arg2: memref<256x3xbf16, #tpu.memory_space<vmem>>, %arg3: memref<256x3xbf16, #tpu.memory_space<vmem>>, %arg4: memref<256x3xbf16, #tpu.memory_space<vmem>>, %arg5: memref<256x3xbf16, #tpu.memory_space<vmem>>, %arg6: memref<256x3xbf16, #tpu.memory_space<vmem>>, %arg7: memref<256x3xbf16, #tpu.memory_space<vmem>>, %arg8: memref<256x3xbf16, #tpu.memory_space<vmem>>, %arg9: memref<256x3xbf16, #tpu.memory_space<vmem>>, %arg10: memref<9x3x128xbf16, #tpu.memory_space<vmem>>, %arg11: memref<1x128xf32, #tpu.memory_space<vmem>>, %arg12: memref<256x128xbf16, #tpu.memory_space<vmem>>) attributes {dimension_semantics = [#tpu.dimension_semantics<parallel>], iteration_bounds = array<i64: 2>, scalar_prefetch = 0 : i64, scratch_operands = 0 : i64, tpu.core_type = #tpu.core_type<tc>, window_params = [{transform_indices = @transform_0, window_bounds = array<i64: 256, 3>}, {transform_indices = @transform_1, window_bounds = array<i64: 256, 3>}, {transform_indices = @transform_2, window_bounds = array<i64: 256, 3>}, {transform_indices = @transform_3, window_bounds = array<i64: 256, 3>}, {transform_indices = @transform_4, window_bounds = array<i64: 256, 3>}, {transform_indices = @transform_5, window_bounds = array<i64: 256, 3>}, {transform_indices = @transform_6, window_bounds = array<i64: 256, 3>}, {transform_indices = @transform_7, window_bounds = array<i64: 256, 3>}, {transform_indices = @transform_8, window_bounds = array<i64: 256, 3>}, {pipeline_mode = #tpu.pipeline_mode<synchronous>, transform_indices = @transform_9, window_bounds = array<i64: 9, 3, 128>}, {pipeline_mode = #tpu.pipeline_mode<synchronous>, transform_indices = @transform_10, window_bounds = array<i64: 1, 128>}, {transform_indices = @transform_11, window_bounds = array<i64: 256, 128>}]} {
    %c0 = arith.constant 0 : index
    %c0_0 = arith.constant 0 : index
    %0 = vector.load %arg1[%c0, %c0_0] : memref<256x3xbf16, #tpu.memory_space<vmem>>, vector<256x3xbf16>
    %c0_1 = arith.constant 0 : index
    %c0_2 = arith.constant 0 : index
    %c0_3 = arith.constant 0 : index
    %1 = vector.load %arg10[%c0_1, %c0_2, %c0_3] : memref<9x3x128xbf16, #tpu.memory_space<vmem>>, vector<1x3x128xbf16>
    %2 = vector.shape_cast %1 : vector<1x3x128xbf16> to vector<3x128xbf16>
    %cst = arith.constant dense<0.000000e+00> : vector<256x128xf32>
    %3 = tpu.matmul %0, %2, %cst {dimension_numbers = #tpu.dot_dimension_numbers<[1], [0], [0], [1], [0, 0, 1, 1], [], []>} : vector<256x3xbf16>, vector<3x128xbf16>, vector<256x128xf32> -> vector<256x128xf32>
    %c0_4 = arith.constant 0 : index
    %c0_5 = arith.constant 0 : index
    %4 = vector.load %arg2[%c0_4, %c0_5] : memref<256x3xbf16, #tpu.memory_space<vmem>>, vector<256x3xbf16>
    %c1 = arith.constant 1 : index
    %c0_6 = arith.constant 0 : index
    %c0_7 = arith.constant 0 : index
    %5 = vector.load %arg10[%c1, %c0_6, %c0_7] : memref<9x3x128xbf16, #tpu.memory_space<vmem>>, vector<1x3x128xbf16>
    %6 = vector.shape_cast %5 : vector<1x3x128xbf16> to vector<3x128xbf16>
    %cst_8 = arith.constant dense<0.000000e+00> : vector<256x128xf32>
    %7 = tpu.matmul %4, %6, %cst_8 {dimension_numbers = #tpu.dot_dimension_numbers<[1], [0], [0], [1], [0, 0, 1, 1], [], []>} : vector<256x3xbf16>, vector<3x128xbf16>, vector<256x128xf32> -> vector<256x128xf32>
    %8 = arith.addf %3, %7 : vector<256x128xf32>
    %c0_9 = arith.constant 0 : index
    %c0_10 = arith.constant 0 : index
    %9 = vector.load %arg3[%c0_9, %c0_10] : memref<256x3xbf16, #tpu.memory_space<vmem>>, vector<256x3xbf16>
    %c2 = arith.constant 2 : index
    %c0_11 = arith.constant 0 : index
    %c0_12 = arith.constant 0 : index
    %10 = vector.load %arg10[%c2, %c0_11, %c0_12] : memref<9x3x128xbf16, #tpu.memory_space<vmem>>, vector<1x3x128xbf16>
    %11 = vector.shape_cast %10 : vector<1x3x128xbf16> to vector<3x128xbf16>
    %cst_13 = arith.constant dense<0.000000e+00> : vector<256x128xf32>
    %12 = tpu.matmul %9, %11, %cst_13 {dimension_numbers = #tpu.dot_dimension_numbers<[1], [0], [0], [1], [0, 0, 1, 1], [], []>} : vector<256x3xbf16>, vector<3x128xbf16>, vector<256x128xf32> -> vector<256x128xf32>
    %13 = arith.addf %8, %12 : vector<256x128xf32>
    %c0_14 = arith.constant 0 : index
    %c0_15 = arith.constant 0 : index
    %14 = vector.load %arg4[%c0_14, %c0_15] : memref<256x3xbf16, #tpu.memory_space<vmem>>, vector<256x3xbf16>
    %c3 = arith.constant 3 : index
    %c0_16 = arith.constant 0 : index
    %c0_17 = arith.constant 0 : index
    %15 = vector.load %arg10[%c3, %c0_16, %c0_17] : memref<9x3x128xbf16, #tpu.memory_space<vmem>>, vector<1x3x128xbf16>
    %16 = vector.shape_cast %15 : vector<1x3x128xbf16> to vector<3x128xbf16>
    %cst_18 = arith.constant dense<0.000000e+00> : vector<256x128xf32>
    %17 = tpu.matmul %14, %16, %cst_18 {dimension_numbers = #tpu.dot_dimension_numbers<[1], [0], [0], [1], [0, 0, 1, 1], [], []>} : vector<256x3xbf16>, vector<3x128xbf16>, vector<256x128xf32> -> vector<256x128xf32>
    %18 = arith.addf %13, %17 : vector<256x128xf32>
    %c0_19 = arith.constant 0 : index
    %c0_20 = arith.constant 0 : index
    %19 = vector.load %arg5[%c0_19, %c0_20] : memref<256x3xbf16, #tpu.memory_space<vmem>>, vector<256x3xbf16>
    %c4 = arith.constant 4 : index
    %c0_21 = arith.constant 0 : index
    %c0_22 = arith.constant 0 : index
    %20 = vector.load %arg10[%c4, %c0_21, %c0_22] : memref<9x3x128xbf16, #tpu.memory_space<vmem>>, vector<1x3x128xbf16>
    %21 = vector.shape_cast %20 : vector<1x3x128xbf16> to vector<3x128xbf16>
    %cst_23 = arith.constant dense<0.000000e+00> : vector<256x128xf32>
    %22 = tpu.matmul %19, %21, %cst_23 {dimension_numbers = #tpu.dot_dimension_numbers<[1], [0], [0], [1], [0, 0, 1, 1], [], []>} : vector<256x3xbf16>, vector<3x128xbf16>, vector<256x128xf32> -> vector<256x128xf32>
    %23 = arith.addf %18, %22 : vector<256x128xf32>
    %c0_24 = arith.constant 0 : index
    %c0_25 = arith.constant 0 : index
    %24 = vector.load %arg6[%c0_24, %c0_25] : memref<256x3xbf16, #tpu.memory_space<vmem>>, vector<256x3xbf16>
    %c5 = arith.constant 5 : index
    %c0_26 = arith.constant 0 : index
    %c0_27 = arith.constant 0 : index
    %25 = vector.load %arg10[%c5, %c0_26, %c0_27] : memref<9x3x128xbf16, #tpu.memory_space<vmem>>, vector<1x3x128xbf16>
    %26 = vector.shape_cast %25 : vector<1x3x128xbf16> to vector<3x128xbf16>
    %cst_28 = arith.constant dense<0.000000e+00> : vector<256x128xf32>
    %27 = tpu.matmul %24, %26, %cst_28 {dimension_numbers = #tpu.dot_dimension_numbers<[1], [0], [0], [1], [0, 0, 1, 1], [], []>} : vector<256x3xbf16>, vector<3x128xbf16>, vector<256x128xf32> -> vector<256x128xf32>
    %28 = arith.addf %23, %27 : vector<256x128xf32>
    %c0_29 = arith.constant 0 : index
    %c0_30 = arith.constant 0 : index
    %29 = vector.load %arg7[%c0_29, %c0_30] : memref<256x3xbf16, #tpu.memory_space<vmem>>, vector<256x3xbf16>
    %c6 = arith.constant 6 : index
    %c0_31 = arith.constant 0 : index
    %c0_32 = arith.constant 0 : index
    %30 = vector.load %arg10[%c6, %c0_31, %c0_32] : memref<9x3x128xbf16, #tpu.memory_space<vmem>>, vector<1x3x128xbf16>
    %31 = vector.shape_cast %30 : vector<1x3x128xbf16> to vector<3x128xbf16>
    %cst_33 = arith.constant dense<0.000000e+00> : vector<256x128xf32>
    %32 = tpu.matmul %29, %31, %cst_33 {dimension_numbers = #tpu.dot_dimension_numbers<[1], [0], [0], [1], [0, 0, 1, 1], [], []>} : vector<256x3xbf16>, vector<3x128xbf16>, vector<256x128xf32> -> vector<256x128xf32>
    %33 = arith.addf %28, %32 : vector<256x128xf32>
    %c0_34 = arith.constant 0 : index
    %c0_35 = arith.constant 0 : index
    %34 = vector.load %arg8[%c0_34, %c0_35] : memref<256x3xbf16, #tpu.memory_space<vmem>>, vector<256x3xbf16>
    %c7 = arith.constant 7 : index
    %c0_36 = arith.constant 0 : index
    %c0_37 = arith.constant 0 : index
    %35 = vector.load %arg10[%c7, %c0_36, %c0_37] : memref<9x3x128xbf16, #tpu.memory_space<vmem>>, vector<1x3x128xbf16>
    %36 = vector.shape_cast %35 : vector<1x3x128xbf16> to vector<3x128xbf16>
    %cst_38 = arith.constant dense<0.000000e+00> : vector<256x128xf32>
    %37 = tpu.matmul %34, %36, %cst_38 {dimension_numbers = #tpu.dot_dimension_numbers<[1], [0], [0], [1], [0, 0, 1, 1], [], []>} : vector<256x3xbf16>, vector<3x128xbf16>, vector<256x128xf32> -> vector<256x128xf32>
    %38 = arith.addf %33, %37 : vector<256x128xf32>
    %c0_39 = arith.constant 0 : index
    %c0_40 = arith.constant 0 : index
    %39 = vector.load %arg9[%c0_39, %c0_40] : memref<256x3xbf16, #tpu.memory_space<vmem>>, vector<256x3xbf16>
    %c8 = arith.constant 8 : index
    %c0_41 = arith.constant 0 : index
    %c0_42 = arith.constant 0 : index
    %40 = vector.load %arg10[%c8, %c0_41, %c0_42] : memref<9x3x128xbf16, #tpu.memory_space<vmem>>, vector<1x3x128xbf16>
    %41 = vector.shape_cast %40 : vector<1x3x128xbf16> to vector<3x128xbf16>
    %cst_43 = arith.constant dense<0.000000e+00> : vector<256x128xf32>
    %42 = tpu.matmul %39, %41, %cst_43 {dimension_numbers = #tpu.dot_dimension_numbers<[1], [0], [0], [1], [0, 0, 1, 1], [], []>} : vector<256x3xbf16>, vector<3x128xbf16>, vector<256x128xf32> -> vector<256x128xf32>
    %43 = arith.addf %38, %42 : vector<256x128xf32>
    %c0_44 = arith.constant 0 : index
    %c0_45 = arith.constant 0 : index
    %44 = vector.load %arg11[%c0_44, %c0_45] : memref<1x128xf32, #tpu.memory_space<vmem>>, vector<1x128xf32>
    %45 = vector.broadcast %44 : vector<1x128xf32> to vector<256x128xf32>
    %46 = arith.addf %43, %45 : vector<256x128xf32>
    %cst_46 = arith.constant 0.000000e+00 : f32
    %47 = vector.broadcast %cst_46 : f32 to vector<256x128xf32>
    %48 = arith.maximumf %46, %47 : vector<256x128xf32>
    %49 = arith.truncf %48 : vector<256x128xf32> to vector<256x128xbf16>
    %c0_47 = arith.constant 0 : index
    %c0_48 = arith.constant 0 : index
    %50 = vector.load %arg12[%c0_47, %c0_48] : memref<256x128xbf16, #tpu.memory_space<vmem>>, vector<256x128xbf16>
    tpu.vector_store %arg12[%c0_47, %c0_48], %49 {strides = array<i32>} : memref<256x128xbf16, #tpu.memory_space<vmem>>, vector<256x128xbf16>,
    return
  }
  func.func @transform_0(%arg0: i32) -> (i32, i32) {
    %c0_i32 = arith.constant 0 : i32
    %c0_i32_0 = arith.constant 0 : i32
    return %arg0, %c0_i32 : i32, i32
  }
  func.func @transform_1(%arg0: i32) -> (i32, i32) {
    %c0_i32 = arith.constant 0 : i32
    %c0_i32_0 = arith.constant 0 : i32
    return %arg0, %c0_i32 : i32, i32
  }
  func.func @transform_2(%arg0: i32) -> (i32, i32) {
    %c0_i32 = arith.constant 0 : i32
    %c0_i32_0 = arith.constant 0 : i32
    return %arg0, %c0_i32 : i32, i32
  }
  func.func @transform_3(%arg0: i32) -> (i32, i32) {
    %c0_i32 = arith.constant 0 : i32
    %c0_i32_0 = arith.constant 0 : i32
    return %arg0, %c0_i32 : i32, i32
  }
  func.func @transform_4(%arg0: i32) -> (i32, i32) {
    %c0_i32 = arith.constant 0 : i32
    %c0_i32_0 = arith.constant 0 : i32
    return %arg0, %c0_i32 : i32, i32
  }
  func.func @transform_5(%arg0: i32) -> (i32, i32) {
    %c0_i32 = arith.constant 0 : i32
    %c0_i32_0 = arith.constant 0 : i32
    return %arg0, %c0_i32 : i32, i32
  }
  func.func @transform_6(%arg0: i32) -> (i32, i32) {
    %c0_i32 = arith.constant 0 : i32
    %c0_i32_0 = arith.constant 0 : i32
    return %arg0, %c0_i32 : i32, i32
  }
  func.func @transform_7(%arg0: i32) -> (i32, i32) {
    %c0_i32 = arith.constant 0 : i32
    %c0_i32_0 = arith.constant 0 : i32
    return %arg0, %c0_i32 : i32, i32
  }
  func.func @transform_8(%arg0: i32) -> (i32, i32) {
    %c0_i32 = arith.constant 0 : i32
    %c0_i32_0 = arith.constant 0 : i32
    return %arg0, %c0_i32 : i32, i32
  }
  func.func @transform_9(%arg0: i32) -> (i32, i32, i32) {
    %c0_i32 = arith.constant 0 : i32
    %c0_i32_0 = arith.constant 0 : i32
    %c0_i32_1 = arith.constant 0 : i32
    %c0_i32_2 = arith.constant 0 : i32
    return %c0_i32, %c0_i32_0, %c0_i32_1 : i32, i32, i32
  }
  func.func @transform_10(%arg0: i32) -> (i32, i32) {
    %c0_i32 = arith.constant 0 : i32
    %c0_i32_0 = arith.constant 0 : i32
    %c0_i32_1 = arith.constant 0 : i32
    return %c0_i32, %c0_i32_0 : i32, i32
  }
  func.func @transform_11(%arg0: i32) -> (i32, i32) {
    %c0_i32 = arith.constant 0 : i32
    %c0_i32_0 = arith.constant 0 : i32
    return %arg0, %c0_i32 : i32, i32
  }
}

module attributes {stable_mosaic.version = 11 : i64} {
  func.func @kernel(%arg0: i32, %arg1: memref<256x128xbf16, #tpu.memory_space<vmem>>, %arg2: memref<256x128xbf16, #tpu.memory_space<vmem>>, %arg3: memref<256x128xbf16, #tpu.memory_space<vmem>>, %arg4: memref<256x128xbf16, #tpu.memory_space<vmem>>, %arg5: memref<4x128x128xbf16, #tpu.memory_space<vmem>>, %arg6: memref<1x128xf32, #tpu.memory_space<vmem>>, %arg7: memref<256x128xbf16, #tpu.memory_space<vmem>>) attributes {dimension_semantics = [#tpu.dimension_semantics<parallel>], iteration_bounds = array<i64: 2>, scalar_prefetch = 0 : i64, scratch_operands = 0 : i64, tpu.core_type = #tpu.core_type<tc>, window_params = [{transform_indices = @transform_0, window_bounds = array<i64: 256, 128>}, {transform_indices = @transform_1, window_bounds = array<i64: 256, 128>}, {transform_indices = @transform_2, window_bounds = array<i64: 256, 128>}, {transform_indices = @transform_3, window_bounds = array<i64: 256, 128>}, {pipeline_mode = #tpu.pipeline_mode<synchronous>, transform_indices = @transform_4, window_bounds = array<i64: 4, 128, 128>}, {pipeline_mode = #tpu.pipeline_mode<synchronous>, transform_indices = @transform_5, window_bounds = array<i64: 1, 128>}, {transform_indices = @transform_6, window_bounds = array<i64: 256, 128>}]} {
    %c0 = arith.constant 0 : index
    %c0_0 = arith.constant 0 : index
    %0 = vector.load %arg1[%c0, %c0_0] : memref<256x128xbf16, #tpu.memory_space<vmem>>, vector<256x128xbf16>
    %c0_1 = arith.constant 0 : index
    %c0_2 = arith.constant 0 : index
    %c0_3 = arith.constant 0 : index
    %1 = vector.load %arg5[%c0_1, %c0_2, %c0_3] : memref<4x128x128xbf16, #tpu.memory_space<vmem>>, vector<1x128x128xbf16>
    %2 = vector.shape_cast %1 : vector<1x128x128xbf16> to vector<128x128xbf16>
    %cst = arith.constant dense<0.000000e+00> : vector<256x128xf32>
    %3 = tpu.matmul %0, %2, %cst {dimension_numbers = #tpu.dot_dimension_numbers<[1], [0], [0], [1], [0, 0, 1, 1], [], []>} : vector<256x128xbf16>, vector<128x128xbf16>, vector<256x128xf32> -> vector<256x128xf32>
    %c0_4 = arith.constant 0 : index
    %c0_5 = arith.constant 0 : index
    %4 = vector.load %arg2[%c0_4, %c0_5] : memref<256x128xbf16, #tpu.memory_space<vmem>>, vector<256x128xbf16>
    %c1 = arith.constant 1 : index
    %c0_6 = arith.constant 0 : index
    %c0_7 = arith.constant 0 : index
    %5 = vector.load %arg5[%c1, %c0_6, %c0_7] : memref<4x128x128xbf16, #tpu.memory_space<vmem>>, vector<1x128x128xbf16>
    %6 = vector.shape_cast %5 : vector<1x128x128xbf16> to vector<128x128xbf16>
    %cst_8 = arith.constant dense<0.000000e+00> : vector<256x128xf32>
    %7 = tpu.matmul %4, %6, %cst_8 {dimension_numbers = #tpu.dot_dimension_numbers<[1], [0], [0], [1], [0, 0, 1, 1], [], []>} : vector<256x128xbf16>, vector<128x128xbf16>, vector<256x128xf32> -> vector<256x128xf32>
    %8 = arith.addf %3, %7 : vector<256x128xf32>
    %c0_9 = arith.constant 0 : index
    %c0_10 = arith.constant 0 : index
    %9 = vector.load %arg3[%c0_9, %c0_10] : memref<256x128xbf16, #tpu.memory_space<vmem>>, vector<256x128xbf16>
    %c2 = arith.constant 2 : index
    %c0_11 = arith.constant 0 : index
    %c0_12 = arith.constant 0 : index
    %10 = vector.load %arg5[%c2, %c0_11, %c0_12] : memref<4x128x128xbf16, #tpu.memory_space<vmem>>, vector<1x128x128xbf16>
    %11 = vector.shape_cast %10 : vector<1x128x128xbf16> to vector<128x128xbf16>
    %cst_13 = arith.constant dense<0.000000e+00> : vector<256x128xf32>
    %12 = tpu.matmul %9, %11, %cst_13 {dimension_numbers = #tpu.dot_dimension_numbers<[1], [0], [0], [1], [0, 0, 1, 1], [], []>} : vector<256x128xbf16>, vector<128x128xbf16>, vector<256x128xf32> -> vector<256x128xf32>
    %13 = arith.addf %8, %12 : vector<256x128xf32>
    %c0_14 = arith.constant 0 : index
    %c0_15 = arith.constant 0 : index
    %14 = vector.load %arg4[%c0_14, %c0_15] : memref<256x128xbf16, #tpu.memory_space<vmem>>, vector<256x128xbf16>
    %c3 = arith.constant 3 : index
    %c0_16 = arith.constant 0 : index
    %c0_17 = arith.constant 0 : index
    %15 = vector.load %arg5[%c3, %c0_16, %c0_17] : memref<4x128x128xbf16, #tpu.memory_space<vmem>>, vector<1x128x128xbf16>
    %16 = vector.shape_cast %15 : vector<1x128x128xbf16> to vector<128x128xbf16>
    %cst_18 = arith.constant dense<0.000000e+00> : vector<256x128xf32>
    %17 = tpu.matmul %14, %16, %cst_18 {dimension_numbers = #tpu.dot_dimension_numbers<[1], [0], [0], [1], [0, 0, 1, 1], [], []>} : vector<256x128xbf16>, vector<128x128xbf16>, vector<256x128xf32> -> vector<256x128xf32>
    %18 = arith.addf %13, %17 : vector<256x128xf32>
    %c0_19 = arith.constant 0 : index
    %c0_20 = arith.constant 0 : index
    %19 = vector.load %arg6[%c0_19, %c0_20] : memref<1x128xf32, #tpu.memory_space<vmem>>, vector<1x128xf32>
    %20 = vector.broadcast %19 : vector<1x128xf32> to vector<256x128xf32>
    %21 = arith.addf %18, %20 : vector<256x128xf32>
    %cst_21 = arith.constant 0.000000e+00 : f32
    %22 = vector.broadcast %cst_21 : f32 to vector<256x128xf32>
    %23 = arith.maximumf %21, %22 : vector<256x128xf32>
    %24 = arith.truncf %23 : vector<256x128xf32> to vector<256x128xbf16>
    %c0_22 = arith.constant 0 : index
    %c0_23 = arith.constant 0 : index
    %25 = vector.load %arg7[%c0_22, %c0_23] : memref<256x128xbf16, #tpu.memory_space<vmem>>, vector<256x128xbf16>
    tpu.vector_store %arg7[%c0_22, %c0_23], %24 {strides = array<i32>} : memref<256x128xbf16, #tpu.memory_space<vmem>>, vector<256x128xbf16>,
    return
  }
  func.func @transform_0(%arg0: i32) -> (i32, i32) {
    %c0_i32 = arith.constant 0 : i32
    %c0_i32_0 = arith.constant 0 : i32
    return %arg0, %c0_i32 : i32, i32
  }
  func.func @transform_1(%arg0: i32) -> (i32, i32) {
    %c0_i32 = arith.constant 0 : i32
    %c0_i32_0 = arith.constant 0 : i32
    return %arg0, %c0_i32 : i32, i32
  }
  func.func @transform_2(%arg0: i32) -> (i32, i32) {
    %c0_i32 = arith.constant 0 : i32
    %c0_i32_0 = arith.constant 0 : i32
    return %arg0, %c0_i32 : i32, i32
  }
  func.func @transform_3(%arg0: i32) -> (i32, i32) {
    %c0_i32 = arith.constant 0 : i32
    %c0_i32_0 = arith.constant 0 : i32
    return %arg0, %c0_i32 : i32, i32
  }
  func.func @transform_4(%arg0: i32) -> (i32, i32, i32) {
    %c0_i32 = arith.constant 0 : i32
    %c0_i32_0 = arith.constant 0 : i32
    %c0_i32_1 = arith.constant 0 : i32
    %c0_i32_2 = arith.constant 0 : i32
    return %c0_i32, %c0_i32_0, %c0_i32_1 : i32, i32, i32
  }
  func.func @transform_5(%arg0: i32) -> (i32, i32) {
    %c0_i32 = arith.constant 0 : i32
    %c0_i32_0 = arith.constant 0 : i32
    %c0_i32_1 = arith.constant 0 : i32
    return %c0_i32, %c0_i32_0 : i32, i32
  }
  func.func @transform_6(%arg0: i32) -> (i32, i32) {
    %c0_i32 = arith.constant 0 : i32
    %c0_i32_0 = arith.constant 0 : i32
    return %arg0, %c0_i32 : i32, i32
  }
}

module attributes {stable_mosaic.version = 11 : i64} {
  func.func @_maxpool2x2_kernel(%arg0: i32, %arg1: memref<1x17x17x128xbf16, #tpu.memory_space<vmem>>, %arg2: memref<1x16x16x128xbf16, #tpu.memory_space<vmem>>) attributes {dimension_semantics = [#tpu.dimension_semantics<parallel>], iteration_bounds = array<i64: 2>, scalar_prefetch = 0 : i64, scratch_operands = 0 : i64, tpu.core_type = #tpu.core_type<tc>, window_params = [{transform_indices = @transform_0, window_bounds = array<i64: 1, 17, 17, 128>}, {transform_indices = @transform_1, window_bounds = array<i64: 1, 16, 16, 128>}]} {
    %c0 = arith.constant 0 : index
    %c0_0 = arith.constant 0 : index
    %c0_1 = arith.constant 0 : index
    %c0_2 = arith.constant 0 : index
    %0 = vector.load %arg1[%c0, %c0_0, %c0_1, %c0_2] : memref<1x17x17x128xbf16, #tpu.memory_space<vmem>>, vector<1x17x17x128xbf16>
    %1 = vector.extract_strided_slice %0 {offsets = [0, 0, 0, 0], sizes = [1, 17, 16, 128], strides = [1, 1, 1, 1]} : vector<1x17x17x128xbf16> to vector<1x17x16x128xbf16>
    %2 = vector.extract_strided_slice %0 {offsets = [0, 0, 1, 0], sizes = [1, 17, 16, 128], strides = [1, 1, 1, 1]} : vector<1x17x17x128xbf16> to vector<1x17x16x128xbf16>
    %3 = arith.maximumf %1, %2 : vector<1x17x16x128xbf16>
    %4 = vector.extract_strided_slice %3 {offsets = [0, 0, 0, 0], sizes = [1, 16, 16, 128], strides = [1, 1, 1, 1]} : vector<1x17x16x128xbf16> to vector<1x16x16x128xbf16>
    %5 = vector.extract_strided_slice %3 {offsets = [0, 1, 0, 0], sizes = [1, 16, 16, 128], strides = [1, 1, 1, 1]} : vector<1x17x16x128xbf16> to vector<1x16x16x128xbf16>
    %6 = arith.maximumf %4, %5 : vector<1x16x16x128xbf16>
    %c0_3 = arith.constant 0 : index
    %c0_4 = arith.constant 0 : index
    %c0_5 = arith.constant 0 : index
    %c0_6 = arith.constant 0 : index
    %7 = vector.load %arg2[%c0_3, %c0_4, %c0_5, %c0_6] : memref<1x16x16x128xbf16, #tpu.memory_space<vmem>>, vector<1x16x16x128xbf16>
    tpu.vector_store %arg2[%c0_3, %c0_4, %c0_5, %c0_6], %6 {strides = array<i32>} : memref<1x16x16x128xbf16, #tpu.memory_space<vmem>>, vector<1x16x16x128xbf16>,
    return
  }
  func.func @transform_0(%arg0: i32) -> (i32, i32, i32, i32) {
    %c0_i32 = arith.constant 0 : i32
    %c0_i32_0 = arith.constant 0 : i32
    %c0_i32_1 = arith.constant 0 : i32
    %c0_i32_2 = arith.constant 0 : i32
    return %arg0, %c0_i32, %c0_i32_0, %c0_i32_1 : i32, i32, i32, i32
  }
  func.func @transform_1(%arg0: i32) -> (i32, i32, i32, i32) {
    %c0_i32 = arith.constant 0 : i32
    %c0_i32_0 = arith.constant 0 : i32
    %c0_i32_1 = arith.constant 0 : i32
    %c0_i32_2 = arith.constant 0 : i32
    return %arg0, %c0_i32, %c0_i32_0, %c0_i32_1 : i32, i32, i32, i32
  }
}

module attributes {stable_mosaic.version = 11 : i64} {
  func.func @kernel(%arg0: i32, %arg1: memref<64x256xbf16, #tpu.memory_space<vmem>>, %arg2: memref<64x256xbf16, #tpu.memory_space<vmem>>, %arg3: memref<64x256xbf16, #tpu.memory_space<vmem>>, %arg4: memref<64x256xbf16, #tpu.memory_space<vmem>>, %arg5: memref<64x256xbf16, #tpu.memory_space<vmem>>, %arg6: memref<64x256xbf16, #tpu.memory_space<vmem>>, %arg7: memref<64x256xbf16, #tpu.memory_space<vmem>>, %arg8: memref<64x256xbf16, #tpu.memory_space<vmem>>, %arg9: memref<64x256xbf16, #tpu.memory_space<vmem>>, %arg10: memref<9x256x128xbf16, #tpu.memory_space<vmem>>, %arg11: memref<1x128xf32, #tpu.memory_space<vmem>>, %arg12: memref<128x128xbf16, #tpu.memory_space<vmem>>, %arg13: memref<1x128xf32, #tpu.memory_space<vmem>>, %arg14: memref<64x128xf32, #tpu.memory_space<vmem>>) attributes {dimension_semantics = [#tpu.dimension_semantics<parallel>], iteration_bounds = array<i64: 2>, scalar_prefetch = 0 : i64, scratch_operands = 0 : i64, tpu.core_type = #tpu.core_type<tc>, window_params = [{transform_indices = @transform_0, window_bounds = array<i64: 64, 256>}, {transform_indices = @transform_1, window_bounds = array<i64: 64, 256>}, {transform_indices = @transform_2, window_bounds = array<i64: 64, 256>}, {transform_indices = @transform_3, window_bounds = array<i64: 64, 256>}, {transform_indices = @transform_4, window_bounds = array<i64: 64, 256>}, {transform_indices = @transform_5, window_bounds = array<i64: 64, 256>}, {transform_indices = @transform_6, window_bounds = array<i64: 64, 256>}, {transform_indices = @transform_7, window_bounds = array<i64: 64, 256>}, {transform_indices = @transform_8, window_bounds = array<i64: 64, 256>}, {pipeline_mode = #tpu.pipeline_mode<synchronous>, transform_indices = @transform_9, window_bounds = array<i64: 9, 256, 128>}, {pipeline_mode = #tpu.pipeline_mode<synchronous>, transform_indices = @transform_10, window_bounds = array<i64: 1, 128>}, {pipeline_mode = #tpu.pipeline_mode<synchronous>, transform_indices = @transform_11, window_bounds = array<i64: 128, 128>}, {pipeline_mode = #tpu.pipeline_mode<synchronous>, transform_indices = @transform_12, window_bounds = array<i64: 1, 128>}, {transform_indices = @transform_13, window_bounds = array<i64: 64, 128>}]} {
    %c0 = arith.constant 0 : index
    %c0_0 = arith.constant 0 : index
    %0 = vector.load %arg1[%c0, %c0_0] : memref<64x256xbf16, #tpu.memory_space<vmem>>, vector<64x256xbf16>
    %c0_1 = arith.constant 0 : index
    %c0_2 = arith.constant 0 : index
    %c0_3 = arith.constant 0 : index
    %1 = vector.load %arg10[%c0_1, %c0_2, %c0_3] : memref<9x256x128xbf16, #tpu.memory_space<vmem>>, vector<1x256x128xbf16>
    %2 = vector.shape_cast %1 : vector<1x256x128xbf16> to vector<256x128xbf16>
    %cst = arith.constant dense<0.000000e+00> : vector<64x128xf32>
    %3 = tpu.matmul %0, %2, %cst {dimension_numbers = #tpu.dot_dimension_numbers<[1], [0], [0], [1], [0, 0, 1, 1], [], []>} : vector<64x256xbf16>, vector<256x128xbf16>, vector<64x128xf32> -> vector<64x128xf32>
    %c0_4 = arith.constant 0 : index
    %c0_5 = arith.constant 0 : index
    %4 = vector.load %arg2[%c0_4, %c0_5] : memref<64x256xbf16, #tpu.memory_space<vmem>>, vector<64x256xbf16>
    %c1 = arith.constant 1 : index
    %c0_6 = arith.constant 0 : index
    %c0_7 = arith.constant 0 : index
    %5 = vector.load %arg10[%c1, %c0_6, %c0_7] : memref<9x256x128xbf16, #tpu.memory_space<vmem>>, vector<1x256x128xbf16>
    %6 = vector.shape_cast %5 : vector<1x256x128xbf16> to vector<256x128xbf16>
    %cst_8 = arith.constant dense<0.000000e+00> : vector<64x128xf32>
    %7 = tpu.matmul %4, %6, %cst_8 {dimension_numbers = #tpu.dot_dimension_numbers<[1], [0], [0], [1], [0, 0, 1, 1], [], []>} : vector<64x256xbf16>, vector<256x128xbf16>, vector<64x128xf32> -> vector<64x128xf32>
    %8 = arith.addf %3, %7 : vector<64x128xf32>
    %c0_9 = arith.constant 0 : index
    %c0_10 = arith.constant 0 : index
    %9 = vector.load %arg3[%c0_9, %c0_10] : memref<64x256xbf16, #tpu.memory_space<vmem>>, vector<64x256xbf16>
    %c2 = arith.constant 2 : index
    %c0_11 = arith.constant 0 : index
    %c0_12 = arith.constant 0 : index
    %10 = vector.load %arg10[%c2, %c0_11, %c0_12] : memref<9x256x128xbf16, #tpu.memory_space<vmem>>, vector<1x256x128xbf16>
    %11 = vector.shape_cast %10 : vector<1x256x128xbf16> to vector<256x128xbf16>
    %cst_13 = arith.constant dense<0.000000e+00> : vector<64x128xf32>
    %12 = tpu.matmul %9, %11, %cst_13 {dimension_numbers = #tpu.dot_dimension_numbers<[1], [0], [0], [1], [0, 0, 1, 1], [], []>} : vector<64x256xbf16>, vector<256x128xbf16>, vector<64x128xf32> -> vector<64x128xf32>
    %13 = arith.addf %8, %12 : vector<64x128xf32>
    %c0_14 = arith.constant 0 : index
    %c0_15 = arith.constant 0 : index
    %14 = vector.load %arg4[%c0_14, %c0_15] : memref<64x256xbf16, #tpu.memory_space<vmem>>, vector<64x256xbf16>
    %c3 = arith.constant 3 : index
    %c0_16 = arith.constant 0 : index
    %c0_17 = arith.constant 0 : index
    %15 = vector.load %arg10[%c3, %c0_16, %c0_17] : memref<9x256x128xbf16, #tpu.memory_space<vmem>>, vector<1x256x128xbf16>
    %16 = vector.shape_cast %15 : vector<1x256x128xbf16> to vector<256x128xbf16>
    %cst_18 = arith.constant dense<0.000000e+00> : vector<64x128xf32>
    %17 = tpu.matmul %14, %16, %cst_18 {dimension_numbers = #tpu.dot_dimension_numbers<[1], [0], [0], [1], [0, 0, 1, 1], [], []>} : vector<64x256xbf16>, vector<256x128xbf16>, vector<64x128xf32> -> vector<64x128xf32>
    %18 = arith.addf %13, %17 : vector<64x128xf32>
    %c0_19 = arith.constant 0 : index
    %c0_20 = arith.constant 0 : index
    %19 = vector.load %arg5[%c0_19, %c0_20] : memref<64x256xbf16, #tpu.memory_space<vmem>>, vector<64x256xbf16>
    %c4 = arith.constant 4 : index
    %c0_21 = arith.constant 0 : index
    %c0_22 = arith.constant 0 : index
    %20 = vector.load %arg10[%c4, %c0_21, %c0_22] : memref<9x256x128xbf16, #tpu.memory_space<vmem>>, vector<1x256x128xbf16>
    %21 = vector.shape_cast %20 : vector<1x256x128xbf16> to vector<256x128xbf16>
    %cst_23 = arith.constant dense<0.000000e+00> : vector<64x128xf32>
    %22 = tpu.matmul %19, %21, %cst_23 {dimension_numbers = #tpu.dot_dimension_numbers<[1], [0], [0], [1], [0, 0, 1, 1], [], []>} : vector<64x256xbf16>, vector<256x128xbf16>, vector<64x128xf32> -> vector<64x128xf32>
    %23 = arith.addf %18, %22 : vector<64x128xf32>
    %c0_24 = arith.constant 0 : index
    %c0_25 = arith.constant 0 : index
    %24 = vector.load %arg6[%c0_24, %c0_25] : memref<64x256xbf16, #tpu.memory_space<vmem>>, vector<64x256xbf16>
    %c5 = arith.constant 5 : index
    %c0_26 = arith.constant 0 : index
    %c0_27 = arith.constant 0 : index
    %25 = vector.load %arg10[%c5, %c0_26, %c0_27] : memref<9x256x128xbf16, #tpu.memory_space<vmem>>, vector<1x256x128xbf16>
    %26 = vector.shape_cast %25 : vector<1x256x128xbf16> to vector<256x128xbf16>
    %cst_28 = arith.constant dense<0.000000e+00> : vector<64x128xf32>
    %27 = tpu.matmul %24, %26, %cst_28 {dimension_numbers = #tpu.dot_dimension_numbers<[1], [0], [0], [1], [0, 0, 1, 1], [], []>} : vector<64x256xbf16>, vector<256x128xbf16>, vector<64x128xf32> -> vector<64x128xf32>
    %28 = arith.addf %23, %27 : vector<64x128xf32>
    %c0_29 = arith.constant 0 : index
    %c0_30 = arith.constant 0 : index
    %29 = vector.load %arg7[%c0_29, %c0_30] : memref<64x256xbf16, #tpu.memory_space<vmem>>, vector<64x256xbf16>
    %c6 = arith.constant 6 : index
    %c0_31 = arith.constant 0 : index
    %c0_32 = arith.constant 0 : index
    %30 = vector.load %arg10[%c6, %c0_31, %c0_32] : memref<9x256x128xbf16, #tpu.memory_space<vmem>>, vector<1x256x128xbf16>
    %31 = vector.shape_cast %30 : vector<1x256x128xbf16> to vector<256x128xbf16>
    %cst_33 = arith.constant dense<0.000000e+00> : vector<64x128xf32>
    %32 = tpu.matmul %29, %31, %cst_33 {dimension_numbers = #tpu.dot_dimension_numbers<[1], [0], [0], [1], [0, 0, 1, 1], [], []>} : vector<64x256xbf16>, vector<256x128xbf16>, vector<64x128xf32> -> vector<64x128xf32>
    %33 = arith.addf %28, %32 : vector<64x128xf32>
    %c0_34 = arith.constant 0 : index
    %c0_35 = arith.constant 0 : index
    %34 = vector.load %arg8[%c0_34, %c0_35] : memref<64x256xbf16, #tpu.memory_space<vmem>>, vector<64x256xbf16>
    %c7 = arith.constant 7 : index
    %c0_36 = arith.constant 0 : index
    %c0_37 = arith.constant 0 : index
    %35 = vector.load %arg10[%c7, %c0_36, %c0_37] : memref<9x256x128xbf16, #tpu.memory_space<vmem>>, vector<1x256x128xbf16>
    %36 = vector.shape_cast %35 : vector<1x256x128xbf16> to vector<256x128xbf16>
    %cst_38 = arith.constant dense<0.000000e+00> : vector<64x128xf32>
    %37 = tpu.matmul %34, %36, %cst_38 {dimension_numbers = #tpu.dot_dimension_numbers<[1], [0], [0], [1], [0, 0, 1, 1], [], []>} : vector<64x256xbf16>, vector<256x128xbf16>, vector<64x128xf32> -> vector<64x128xf32>
    %38 = arith.addf %33, %37 : vector<64x128xf32>
    %c0_39 = arith.constant 0 : index
    %c0_40 = arith.constant 0 : index
    %39 = vector.load %arg9[%c0_39, %c0_40] : memref<64x256xbf16, #tpu.memory_space<vmem>>, vector<64x256xbf16>
    %c8 = arith.constant 8 : index
    %c0_41 = arith.constant 0 : index
    %c0_42 = arith.constant 0 : index
    %40 = vector.load %arg10[%c8, %c0_41, %c0_42] : memref<9x256x128xbf16, #tpu.memory_space<vmem>>, vector<1x256x128xbf16>
    %41 = vector.shape_cast %40 : vector<1x256x128xbf16> to vector<256x128xbf16>
    %cst_43 = arith.constant dense<0.000000e+00> : vector<64x128xf32>
    %42 = tpu.matmul %39, %41, %cst_43 {dimension_numbers = #tpu.dot_dimension_numbers<[1], [0], [0], [1], [0, 0, 1, 1], [], []>} : vector<64x256xbf16>, vector<256x128xbf16>, vector<64x128xf32> -> vector<64x128xf32>
    %43 = arith.addf %38, %42 : vector<64x128xf32>
    %c0_44 = arith.constant 0 : index
    %c0_45 = arith.constant 0 : index
    %44 = vector.load %arg11[%c0_44, %c0_45] : memref<1x128xf32, #tpu.memory_space<vmem>>, vector<1x128xf32>
    %45 = vector.broadcast %44 : vector<1x128xf32> to vector<64x128xf32>
    %46 = arith.addf %43, %45 : vector<64x128xf32>
    %cst_46 = arith.constant 0.000000e+00 : f32
    %47 = vector.broadcast %cst_46 : f32 to vector<64x128xf32>
    %48 = arith.maximumf %46, %47 : vector<64x128xf32>
    %49 = arith.truncf %48 : vector<64x128xf32> to vector<64x128xbf16>
    %c0_47 = arith.constant 0 : index
    %c0_48 = arith.constant 0 : index
    %50 = vector.load %arg12[%c0_47, %c0_48] : memref<128x128xbf16, #tpu.memory_space<vmem>>, vector<128x128xbf16>
    %cst_49 = arith.constant dense<0.000000e+00> : vector<64x128xf32>
    %51 = tpu.matmul %49, %50, %cst_49 {dimension_numbers = #tpu.dot_dimension_numbers<[1], [0], [0], [1], [0, 0, 1, 1], [], []>} : vector<64x128xbf16>, vector<128x128xbf16>, vector<64x128xf32> -> vector<64x128xf32>
    %c0_50 = arith.constant 0 : index
    %c0_51 = arith.constant 0 : index
    %52 = vector.load %arg13[%c0_50, %c0_51] : memref<1x128xf32, #tpu.memory_space<vmem>>, vector<1x128xf32>
    %53 = vector.broadcast %52 : vector<1x128xf32> to vector<64x128xf32>
    %54 = arith.addf %51, %53 : vector<64x128xf32>
    %cst_52 = arith.constant 0.000000e+00 : f32
    %55 = vector.broadcast %cst_52 : f32 to vector<64x128xf32>
    %56 = arith.maximumf %54, %55 : vector<64x128xf32>
    %c0_53 = arith.constant 0 : index
    %c0_54 = arith.constant 0 : index
    %57 = vector.load %arg14[%c0_53, %c0_54] : memref<64x128xf32, #tpu.memory_space<vmem>>, vector<64x128xf32>
    tpu.vector_store %arg14[%c0_53, %c0_54], %56 {strides = array<i32>} : memref<64x128xf32, #tpu.memory_space<vmem>>, vector<64x128xf32>,
    return
  }
  func.func @transform_0(%arg0: i32) -> (i32, i32) {
    %c0_i32 = arith.constant 0 : i32
    %c0_i32_0 = arith.constant 0 : i32
    return %arg0, %c0_i32 : i32, i32
  }
  func.func @transform_1(%arg0: i32) -> (i32, i32) {
    %c0_i32 = arith.constant 0 : i32
    %c0_i32_0 = arith.constant 0 : i32
    return %arg0, %c0_i32 : i32, i32
  }
  func.func @transform_2(%arg0: i32) -> (i32, i32) {
    %c0_i32 = arith.constant 0 : i32
    %c0_i32_0 = arith.constant 0 : i32
    return %arg0, %c0_i32 : i32, i32
  }
  func.func @transform_3(%arg0: i32) -> (i32, i32) {
    %c0_i32 = arith.constant 0 : i32
    %c0_i32_0 = arith.constant 0 : i32
    return %arg0, %c0_i32 : i32, i32
  }
  func.func @transform_4(%arg0: i32) -> (i32, i32) {
    %c0_i32 = arith.constant 0 : i32
    %c0_i32_0 = arith.constant 0 : i32
    return %arg0, %c0_i32 : i32, i32
  }
  func.func @transform_5(%arg0: i32) -> (i32, i32) {
    %c0_i32 = arith.constant 0 : i32
    %c0_i32_0 = arith.constant 0 : i32
    return %arg0, %c0_i32 : i32, i32
  }
  func.func @transform_6(%arg0: i32) -> (i32, i32) {
    %c0_i32 = arith.constant 0 : i32
    %c0_i32_0 = arith.constant 0 : i32
    return %arg0, %c0_i32 : i32, i32
  }
  func.func @transform_7(%arg0: i32) -> (i32, i32) {
    %c0_i32 = arith.constant 0 : i32
    %c0_i32_0 = arith.constant 0 : i32
    return %arg0, %c0_i32 : i32, i32
  }
  func.func @transform_8(%arg0: i32) -> (i32, i32) {
    %c0_i32 = arith.constant 0 : i32
    %c0_i32_0 = arith.constant 0 : i32
    return %arg0, %c0_i32 : i32, i32
  }
  func.func @transform_9(%arg0: i32) -> (i32, i32, i32) {
    %c0_i32 = arith.constant 0 : i32
    %c0_i32_0 = arith.constant 0 : i32
    %c0_i32_1 = arith.constant 0 : i32
    %c0_i32_2 = arith.constant 0 : i32
    return %c0_i32, %c0_i32_0, %c0_i32_1 : i32, i32, i32
  }
  func.func @transform_10(%arg0: i32) -> (i32, i32) {
    %c0_i32 = arith.constant 0 : i32
    %c0_i32_0 = arith.constant 0 : i32
    %c0_i32_1 = arith.constant 0 : i32
    return %c0_i32, %c0_i32_0 : i32, i32
  }
  func.func @transform_11(%arg0: i32) -> (i32, i32) {
    %c0_i32 = arith.constant 0 : i32
    %c0_i32_0 = arith.constant 0 : i32
    %c0_i32_1 = arith.constant 0 : i32
    return %c0_i32, %c0_i32_0 : i32, i32
  }
  func.func @transform_12(%arg0: i32) -> (i32, i32) {
    %c0_i32 = arith.constant 0 : i32
    %c0_i32_0 = arith.constant 0 : i32
    %c0_i32_1 = arith.constant 0 : i32
    return %c0_i32, %c0_i32_0 : i32, i32
  }
  func.func @transform_13(%arg0: i32) -> (i32, i32) {
    %c0_i32 = arith.constant 0 : i32
    %c0_i32_0 = arith.constant 0 : i32
    return %arg0, %c0_i32 : i32, i32
  }
}

</mosaic_0001>

<bundles_post_ra>
// kernel: hgstem_forward.8
= control target key start
LH: loop header
LB: loop body
LE: loop exit
PB: predicated region body
PF: predicated region fallthrough
CT: control target
= control target key end

     0   :  { %s915_s6 = smov 0   ;;  %s1135_s0 = inlined_call_operand.vmem [shape: bf16[2,17,17,128], index: 0, kind: input, shape index: {}]   ;;  %s1136_s1 = inlined_call_operand.vmem [shape: bf16[2,16,16,128], index: 1, kind: output, shape index: {}]  }
   0x1 LB: > { %s766_s7 = sadd.s32 4294967295, %s903_s6   ;;  %p770_p0 = scmp.ge.s32.totalorder %s903_s6, 1  ;;  %s903_s6 = sphi %s915_s6, %s11_s6  }
   0x2   : > { %p87_p1 = scmp.lt.s32.totalorder %s903_s6, 3 }
   0x4   : > { %p88_p2 = pnand %p770_p0, %p87_p1 }
   0x5   : > { %p107_p3 = scmp.lt.s32.totalorder (!%p88_p2), %s766_s7, 1  ;;  %vm168_vm0 = vsmask.f32 (!%p88_p2), 3328  ;;  %vm169_vm1 = vsmask.f32 (!%p88_p2), 7440 }
   0x6   : > { %91 = sbr.rel (%p88_p2) target bundleno = 116 (0x74), region = 24  ;;  %vm947_vm2 = vmor (!%p88_p2), %vm168_vm0, %vm169_vm1 }
   0xd   : > { %s1140_s7 = smov (!%p107_p3, %s766_s7), 1 }
   0xe   : > { %s888_s8 = smul.u32 204, %s1140_s7  ;;  %s776_s12 = sshll.u32 %s1140_s7, 7 }
   0xf   : > { %s980_s15 = scalar_lea.vmem %s1136_s1, %s776_s12 }
  0x10   : > { %s929_s11 = scalar_lea.vmem %s1135_s0, %s888_s8 }
  0x11   : > { %v117_v0 = vld [vmem:[%s929_s11] sm:$0xf]  ;;  %v118_v1 = vld [vmem:[%s929_s11 + $0x4] sm:$0xf]  ;;  %v119_v2 = vld [vmem:[%s929_s11 + $0x8] sm:$0x1] }
  0x12   : > { %v120_v3 = vld [vmem:[%s929_s11 + $0xc] sm:$0xf]  ;;  %v936_v4 = vld [vmem:[%s929_s11 + $0x10] sm:$0xf]  ;;  %v122_v5 = vld [vmem:[%s929_s11 + $0x14] sm:$0x1] }
  0x13   : > { %v172_v6 = vshrl.u32 %v117_v0, 16  ;;  %v175_v7 = vshll.u32 %v117_v0, 16  ;;  %v181_v8 = vshll.u32 %v118_v1, 16  ;;  %v185_v9 = vshrl.u32 %v118_v1, 16  ;;  %v123_v14 = vld [vmem:[%s929_s11 + $0x18] sm:$0xf] }
  0x14   : > { %v191_v10 = vshll.u32 %v119_v2, 16  ;;  %v196_v11 = vshrl.u32 %v120_v3, 16  ;;  %v199_v12 = vshll.u32 %v120_v3, 16  ;;  %v205_v13 = vshll.u32 %v936_v4, 16  ;;  %v942_v19 = vld [vmem:[%s929_s11 + $0x1c] sm:$0xf] }
  0x15   : > { %v174_v15 = vrot.slane %v172_v6, 4  ;;  %v177_v16 = vrot.slane %v175_v7, 5  ;;  %v183_v17 = vrot.slane %v181_v8, 5  ;;  %v187_v18 = vrot.slane %v185_v9, 4  ;;  %v125_v38 = vld [vmem:[%s929_s11 + $0x20] sm:$0x1] }
  0x16   : > { %v193_v20 = vrot.slane %v191_v10, 5  ;;  %v198_v21 = vrot.slane %v196_v11, 4  ;;  %v201_v22 = vrot.slane %v199_v12, 5  ;;  %v207_v23 = vrot.slane %v205_v13, 5  ;;  %v126_v46 = vld [vmem:[%s929_s11 + $0x24] sm:$0xf] }
  0x17   : > { %v178_v24 = vor.u32 %v177_v16, %v174_v15  ;;  %v188_v25 = vor.u32 %v187_v18, %v183_v17  ;;  %v209_v26 = vshrl.u32 %v936_v4, 16  ;;  %v215_v27 = vshll.u32 %v122_v5, 16  ;;  %v960_v47 = vld [vmem:[%s929_s11 + $0x28] sm:$0xf]  ;;  %v130_v15 = vld [vmem:[%s929_s11 + $0x34] sm:$0xf] }
  0x18   : > { %v202_v29 = vor.u32 %v201_v22, %v198_v21  ;;  %v220_v30 = vshrl.u32 %v123_v14, 16  ;;  %v223_v31 = vshll.u32 %v123_v14, 16  ;;  %v229_v32 = vshll.u32 %v942_v19, 16  ;;  %v131_v18 = vld [vmem:[%s929_s11 + $0x38] sm:$0x1] }
  0x19   : > { %v179_v33 = vrot.slane %v178_v24, 4  ;;  %v189_v34 = vrot.slane %v188_v25, 4  ;;  %v211_v35 = vrot.slane %v209_v26, 4  ;;  %v217_v36 = vrot.slane %v215_v27, 5 }
  0x1a   : > { %v203_v37 = vrot.slane %v202_v29, 4  ;;  %v222_v39 = vrot.slane %v220_v30, 4  ;;  %v225_v40 = vrot.slane %v223_v31, 5  ;;  %v231_v41 = vrot.slane %v229_v32, 5  ;;  %v132_v30 = vld [vmem:[%s929_s11 + $0x3c] sm:$0xf] }
  0x1b   : > { %v184_v42 = vsel %vm947_vm2, %v179_v33, %v183_v17  ;;  %v194_v43 = vsel %vm947_vm2, %v189_v34, %v193_v20  ;;  %v212_v44 = vor.u32 %v211_v35, %v207_v23  ;;  %v233_v45 = vshrl.u32 %v942_v19, 16 }
  0x1c   : > { %v208_v48 = vsel %vm947_vm2, %v203_v37, %v207_v23  ;;  %v613_v49 = vmax.bf16 %v184_v42, %v117_v0  ;;  %v614_v50 = vmax.bf16 %v194_v43, %v118_v1  ;;  %v226_v51 = vor.u32 %v225_v40, %v222_v39  ;;  %v128_v0 = vld [vmem:[%s929_s11 + $0x2c] sm:$0x1]  ;;  %v129_v1 = vld [vmem:[%s929_s11 + $0x30] sm:$0xf]  ;;  %v134_v42 = vld [vmem:[%s929_s11 + $0x44] sm:$0x1] }
  0x1d   : > { %v213_v52 = vrot.slane %v212_v44, 4  ;;  %v615_v53 = vmax.bf16 %v208_v48, %v120_v3  ;;  %v235_v54 = vrot.slane %v233_v45, 4  ;;  %v239_v55 = vshll.u32 %v125_v38, 16  ;;  %v133_v38 = vld [vmem:[%s929_s11 + $0x40] sm:$0xf] }
  0x1e   : > { %v227_v56 = vrot.slane %v226_v51, 4  ;;  %v244_v57 = vshrl.u32 %v126_v46, 16  ;;  %v247_v58 = vshll.u32 %v126_v46, 16  ;;  %v253_v59 = vshll.u32 %v960_v47, 16 }
  0x1f   : > { %v218_v60 = vsel %vm947_vm2, %v213_v52, %v217_v36  ;;  %v647_v61 = vmax.bf16 %v615_v53, %v613_v49  ;;  %v236_v62 = vor.u32 %v235_v54, %v231_v41  ;;  %v241_v63 = vrot.slane %v239_v55, 5 }
  0x20   : > { %v616_v2 = vmax.bf16 %v218_v60, %v936_v4  ;;  %v232_v3 = vsel %vm947_vm2, %v227_v56, %v231_v41  ;;  %v246_v5 = vrot.slane %v244_v57, 4  ;;  %v249_v6 = vrot.slane %v247_v58, 5 }
  0x21   : > { %v237_v7 = vrot.slane %v236_v62, 4  ;;  %v973_v8 = vmax.bf16 %v232_v3, %v123_v14  ;;  %v255_v9 = vrot.slane %v253_v59, 5  ;;  %v257_v10 = vshrl.u32 %v960_v47, 16  ;;  %v136_v62 = vld [vmem:[%s929_s11 + $0x4c] sm:$0xf] }
  0x22   : > { %v648_v11 = vmax.bf16 %v616_v2, %v614_v50  ;;  %v250_v12 = vor.u32 %v249_v6, %v246_v5  ;;  %v263_v13 = vshll.u32 %v128_v0, 16  ;;  %v268_v16 = vshrl.u32 %v129_v1, 16 }
  0x23   : > { %v242_v4 = vsel %vm947_vm2, %v237_v7, %v241_v63  ;;  %v649_v14 = vmax.bf16 %v973_v8, %v615_v53  ;;  %v259_v17 = vrot.slane %v257_v10, 4  ;;  %v271_v20 = vshll.u32 %v129_v1, 16  ;;  %v135_v53 = vld [vmem:[%s929_s11 + $0x48] sm:$0xf] }
  0x24   : > { %v857_v21 = vcombine.low %v647_v61, %v648_v11  ;;  %v618_v22 = vmax.bf16 %v242_v4, %v942_v19  ;;  %v251_v23 = vrot.slane %v250_v12, 4  ;;  %v265_v24 = vrot.slane %v263_v13, 5 }
  0x25   : > { %v260_v25 = vor.u32 %v259_v17, %v255_v9  ;;  %v270_v26 = vrot.slane %v268_v16, 4  ;;  %v273_v27 = vrot.slane %v271_v20, 5  ;;  %v277_v29 = vshll.u32 %v130_v15, 16 }
  0x26   : > { %781 = vst [vmem:[%s980_s15] sm:$0xff] %v857_v21   ;;  %v650_v31 = vmax.bf16 %v618_v22, %v616_v2  ;;  %v256_v32 = vsel %vm947_vm2, %v251_v23, %v255_v9  ;;  %v281_v33 = vshrl.u32 %v130_v15, 16  ;;  %v287_v34 = vshll.u32 %v131_v18, 16  ;;  %v137_v2 = vld [vmem:[%s929_s11 + $0x50] sm:$0x1]  ;;  %v1006_v9 = vld [vmem:[%s929_s11 + $0x54] sm:$0xf] }
  0x27   : > { %v261_v35 = vrot.slane %v260_v25, 4  ;;  %v619_v36 = vmax.bf16 %v256_v32, %v126_v46  ;;  %v274_v19 = vor.u32 %v273_v27, %v270_v26  ;;  %v279_v37 = vrot.slane %v277_v29, 5  ;;  %v139_v25 = vld [vmem:[%s929_s11 + $0x58] sm:$0xf]  ;;  %v140_v26 = vld [vmem:[%s929_s11 + $0x5c] sm:$0x1] }
  0x28   : > { %v858_v39 = vcombine.low %v649_v14, %v650_v31  ;;  %v283_v40 = vrot.slane %v281_v33, 4  ;;  %v289_v41 = vrot.slane %v287_v34, 5  ;;  %v292_v43 = vshrl.u32 %v132_v30, 16  ;;  %v1017_v33 = vld [vmem:[%s929_s11 + $0x60] sm:$0xf] }
  0x29   : > { %v266_v44 = vsel %vm947_vm2, %v261_v35, %v265_v24  ;;  %v651_v45 = vmax.bf16 %v619_v36, %v973_v8  ;;  %v275_v48 = vrot.slane %v274_v19, 4  ;;  %v295_v49 = vshll.u32 %v132_v30, 16 }
  0x2a   : > { %859 = vst [vmem:[%s980_s15 + $0x8] sm:$0xff] %v858_v39   ;;  %v620_v46 = vmax.bf16 %v266_v44, %v960_v47  ;;  %v284_v50 = vor.u32 %v283_v40, %v279_v37  ;;  %v294_v51 = vrot.slane %v292_v43, 4  ;;  %v301_v52 = vshll.u32 %v133_v38, 16  ;;  %v142_v44 = vld [vmem:[%s929_s11 + $0x64] sm:$0xf] }
  0x2b   : > { %v280_v54 = vsel %vm947_vm2, %v275_v48, %v279_v37  ;;  %v297_v55 = vrot.slane %v295_v49, 5  ;;  %v305_v56 = vshrl.u32 %v133_v38, 16  ;;  %v311_v57 = vshll.u32 %v134_v42, 16 }
  0x2c   : > { %v652_v58 = vmax.bf16 %v620_v46, %v618_v22  ;;  %v285_v59 = vrot.slane %v284_v50, 4  ;;  %v621_v60 = vmax.bf16 %v280_v54, %v129_v1  ;;  %v303_v61 = vrot.slane %v301_v52, 5  ;;  %v143_v50 = vld [vmem:[%s929_s11 + $0x68] sm:$0x1] }
  0x2d   : > { %v298_v63 = vor.u32 %v297_v55, %v294_v51  ;;  %v307_v47 = vrot.slane %v305_v56, 4  ;;  %v313_v0 = vrot.slane %v311_v57, 5  ;;  %v316_v3 = vshrl.u32 %v135_v53, 16  ;;  %v1029_v56 = vld [vmem:[%s929_s11 + $0x6c] sm:$0xf] }
  0x2e   : > { %v860_v5 = vcombine.low %v651_v45, %v652_v58  ;;  %v290_v6 = vsel %vm947_vm2, %v285_v59, %v289_v41  ;;  %v653_v7 = vmax.bf16 %v621_v60, %v619_v36  ;;  %v319_v8 = vshll.u32 %v135_v53, 16 }
  0x2f   : > { %v622_v10 = vmax.bf16 %v290_v6, %v130_v15  ;;  %v299_v11 = vrot.slane %v298_v63, 4  ;;  %v308_v1 = vor.u32 %v307_v47, %v303_v61  ;;  %v318_v12 = vrot.slane %v316_v3, 4 }
  0x30   : > { %861 = vst [vmem:[%s980_s15 + $0x10] sm:$0xff] %v860_v5   ;;  %v321_v13 = vrot.slane %v319_v8, 5  ;;  %v325_v16 = vshll.u32 %v136_v62, 16  ;;  %v329_v4 = vshrl.u32 %v136_v62, 16  ;;  %v335_v14 = vshll.u32 %v137_v2, 16 }
  0x31   : > { %v654_v17 = vmax.bf16 %v622_v10, %v620_v46  ;;  %v304_v18 = vsel %vm947_vm2, %v299_v11, %v303_v61  ;;  %v309_v20 = vrot.slane %v308_v1, 4  ;;  %v340_v21 = vshrl.u32 %v1006_v9, 16  ;;  %v145_v5 = vld [vmem:[%s929_s11 + $0x70] sm:$0xf]  ;;  %v146_v11 = vld [vmem:[%s929_s11 + $0x74] sm:$0x1] }
  0x32   : > { %v623_v15 = vmax.bf16 %v304_v18, %v132_v30  ;;  %v322_v22 = vor.u32 %v321_v13, %v318_v12  ;;  %v327_v23 = vrot.slane %v325_v16, 5  ;;  %v331_v24 = vrot.slane %v329_v4, 4 }
  0x33   : > { %v862_v27 = vcombine.low %v653_v7, %v654_v17  ;;  %v314_v29 = vsel %vm947_vm2, %v309_v20, %v313_v0  ;;  %v337_v31 = vrot.slane %v335_v14, 5  ;;  %v342_v32 = vrot.slane %v340_v21, 4 }
  0x34   : > { %v624_v34 = vmax.bf16 %v314_v29, %v133_v38  ;;  %v655_v35 = vmax.bf16 %v623_v15, %v621_v60  ;;  %v323_v36 = vrot.slane %v322_v22, 4  ;;  %v332_v19 = vor.u32 %v331_v24, %v327_v23 }
  0x35   : > { %863 = vst [vmem:[%s980_s15 + $0x18] sm:$0xff] %v862_v27   ;;  %v343_v30 = vshll.u32 %v1006_v9, 16  ;;  %v349_v37 = vshll.u32 %v139_v25, 16  ;;  %v353_v39 = vshrl.u32 %v139_v25, 16  ;;  %v359_v40 = vshll.u32 %v140_v26, 16 }
  0x36   : > { %v656_v41 = vmax.bf16 %v624_v34, %v622_v10  ;;  %v328_v42 = vsel %vm947_vm2, %v323_v36, %v327_v23  ;;  %v333_v43 = vrot.slane %v332_v19, 4  ;;  %v364_v38 = vshrl.u32 %v1017_v33, 16  ;;  %v147_v23 = vld [vmem:[%s929_s11 + $0x78] sm:$0xf] }
  0x37   : > { %v625_v45 = vmax.bf16 %v328_v42, %v135_v53  ;;  %v345_v48 = vrot.slane %v343_v30, 5  ;;  %v351_v49 = vrot.slane %v349_v37, 5  ;;  %v355_v46 = vrot.slane %v353_v39, 4  ;;  %v149_v42 = vld [vmem:[%s929_s11 + $0x80] sm:$0x1] }
  0x38   : > { %v864_v51 = vcombine.low %v655_v35, %v656_v41  ;;  %v338_v52 = vsel %vm947_vm2, %v333_v43, %v337_v31  ;;  %v361_v54 = vrot.slane %v359_v40, 5  ;;  %v366_v55 = vrot.slane %v364_v38, 4 }
  0x39   : > { %v626_v57 = vmax.bf16 %v338_v52, %v136_v62  ;;  %v657_v58 = vmax.bf16 %v625_v45, %v623_v15  ;;  %v346_v59 = vor.u32 %v345_v48, %v342_v32  ;;  %v356_v60 = vor.u32 %v355_v46, %v351_v49 }
  0x3a   : > { %865 = vst [vmem:[%s980_s15 + $0x20] sm:$0xff] %v864_v51   ;;  %v367_v53 = vshll.u32 %v1017_v33, 16  ;;  %v373_v61 = vshll.u32 %v142_v44, 16  ;;  %v377_v63 = vshrl.u32 %v142_v44, 16  ;;  %v383_v47 = vshll.u32 %v143_v50, 16 }
  0x3b   : > { %v658_v0 = vmax.bf16 %v626_v57, %v624_v34  ;;  %v347_v2 = vrot.slane %v346_v59, 4  ;;  %v357_v3 = vrot.slane %v356_v60, 4  ;;  %v388_v6 = vshrl.u32 %v1029_v56, 16  ;;  %v148_v34 = vld [vmem:[%s929_s11 + $0x7c] sm:$0xf] }
  0x3c   : > { %v369_v7 = vrot.slane %v367_v53, 5  ;;  %v375_v8 = vrot.slane %v373_v61, 5  ;;  %v379_v62 = vrot.slane %v377_v63, 4  ;;  %v385_v10 = vrot.slane %v383_v47, 5 }
  0x3d   : > { %v866_v1 = vcombine.low %v657_v58, %v658_v0  ;;  %v352_v12 = vsel %vm947_vm2, %v347_v2, %v351_v49  ;;  %v362_v13 = vsel %vm947_vm2, %v357_v3, %v361_v54  ;;  %v390_v16 = vrot.slane %v388_v6, 4  ;;  %v150_v49 = vld [vmem:[%s929_s11 + $0x84] sm:$0xf]  ;;  %v152_v2 = vld [vmem:[%s929_s11 + $0x8c] sm:$0x1] }
  0x3e   : > { %v627_v4 = vmax.bf16 %v352_v12, %v1006_v9  ;;  %v628_v14 = vmax.bf16 %v362_v13, %v139_v25  ;;  %v370_v17 = vor.u32 %v369_v7, %v366_v55  ;;  %v380_v18 = vor.u32 %v379_v62, %v375_v8  ;;  %v153_v62 = vld [vmem:[%s929_s11 + $0x90] sm:$0xf] }
  0x3f   : > { %867 = vst [vmem:[%s980_s15 + $0x28] sm:$0xff] %v866_v1   ;;  %v391_v20 = vshll.u32 %v1029_v56, 16  ;;  %v397_v21 = vshll.u32 %v145_v5, 16  ;;  %v401_v15 = vshrl.u32 %v145_v5, 16  ;;  %v407_v22 = vshll.u32 %v146_v11, 16 }
  0x40   : > { %v659_v24 = vmax.bf16 %v627_v4, %v625_v45  ;;  %v660_v26 = vmax.bf16 %v628_v14, %v626_v57  ;;  %v371_v27 = vrot.slane %v370_v17, 4  ;;  %v381_v29 = vrot.slane %v380_v18, 4  ;;  %v1054_v57 = vld [vmem:[%s929_s11 + $0x88] sm:$0xf] }
  0x41   : > { %v393_v31 = vrot.slane %v391_v20, 5  ;;  %v399_v32 = vrot.slane %v397_v21, 5  ;;  %v403_v9 = vrot.slane %v401_v15, 4  ;;  %v409_v25 = vrot.slane %v407_v22, 5 }
  0x42   : > { %v868_v35 = vcombine.low %v659_v24, %v660_v26  ;;  %v376_v36 = vsel %vm947_vm2, %v371_v27, %v375_v8  ;;  %v386_v19 = vsel %vm947_vm2, %v381_v29, %v385_v10  ;;  %v412_v30 = vshrl.u32 %v147_v23, 16  ;;  %v155_v26 = vld [vmem:[%s929_s11 + $0x98] sm:$0x1] }
  0x43   : > { %v629_v37 = vmax.bf16 %v376_v36, %v1017_v33  ;;  %v630_v39 = vmax.bf16 %v386_v19, %v142_v44  ;;  %v394_v40 = vor.u32 %v393_v31, %v390_v16  ;;  %v404_v41 = vor.u32 %v403_v9, %v399_v32  ;;  %v156_v9 = vld [vmem:[%s929_s11 + $0x9c] sm:$0xf] }
  0x44   : > { %869 = vst [vmem:[%s980_s15 + $0x30] sm:$0xff] %v868_v35   ;;  %v414_v43 = vrot.slane %v412_v30, 4  ;;  %v415_v38 = vshll.u32 %v147_v23, 16  ;;  %v421_v45 = vshll.u32 %v148_v34, 16  ;;  %v425_v48 = vshrl.u32 %v148_v34, 16 }
  0x45   : > { %v661_v46 = vmax.bf16 %v629_v37, %v627_v4  ;;  %v662_v50 = vmax.bf16 %v630_v39, %v628_v14  ;;  %v395_v51 = vrot.slane %v394_v40, 4  ;;  %v405_v52 = vrot.slane %v404_v41, 4  ;;  %v1067_v4 = vld [vmem:[%s929_s11 + $0x94] sm:$0xf] }
  0x46   : > { %v417_v54 = vrot.slane %v415_v38, 5  ;;  %v423_v55 = vrot.slane %v421_v45, 5  ;;  %v427_v33 = vrot.slane %v425_v48, 4  ;;  %v431_v44 = vshll.u32 %v149_v42, 16 }
  0x47   : > { %v870_v58 = vcombine.low %v661_v46, %v662_v50  ;;  %v400_v59 = vsel %vm947_vm2, %v395_v51, %v399_v32  ;;  %v410_v60 = vsel %vm947_vm2, %v405_v52, %v409_v25  ;;  %v436_v53 = vshrl.u32 %v150_v49, 16  ;;  %v158_v50 = vld [vmem:[%s929_s11 + $0xa4] sm:$0x1] }
  0x48   : > { %v631_v61 = vmax.bf16 %v400_v59, %v1029_v56  ;;  %v632_v63 = vmax.bf16 %v410_v60, %v145_v5  ;;  %v418_v47 = vor.u32 %v417_v54, %v414_v43  ;;  %v428_v0 = vor.u32 %v427_v33, %v423_v55  ;;  %v159_v33 = vld [vmem:[%s929_s11 + $0xa8] sm:$0xf] }
  0x49   : > { %871 = vst [vmem:[%s980_s15 + $0x38] sm:$0xff] %v870_v58   ;;  %v433_v3 = vrot.slane %v431_v44, 5  ;;  %v438_v6 = vrot.slane %v436_v53, 4  ;;  %v439_v7 = vshll.u32 %v150_v49, 16  ;;  %v445_v8 = vshll.u32 %v1054_v57, 16 }
  0x4a   : > { %v663_v10 = vmax.bf16 %v631_v61, %v629_v37  ;;  %v664_v11 = vmax.bf16 %v632_v63, %v630_v39  ;;  %v419_v1 = vrot.slane %v418_v47, 4  ;;  %v429_v12 = vrot.slane %v428_v0, 4  ;;  %v1079_v39 = vld [vmem:[%s929_s11 + $0xa0] sm:$0xf] }
  0x4b   : > { %v441_v13 = vrot.slane %v439_v7, 5  ;;  %v447_v56 = vrot.slane %v445_v8, 5  ;;  %v449_v5 = vshrl.u32 %v1054_v57, 16  ;;  %v455_v16 = vshll.u32 %v152_v2, 16 }
  0x4c   : > { %v872_v14 = vcombine.low %v663_v10, %v664_v11  ;;  %v424_v17 = vsel %vm947_vm2, %v419_v1, %v423_v55  ;;  %v434_v18 = vsel %vm947_vm2, %v429_v12, %v433_v3  ;;  %v460_v20 = vshrl.u32 %v153_v62, 16  ;;  %v160_v10 = vld [vmem:[%s929_s11 + $0xac] sm:$0xf]  ;;  %v161_v11 = vld [vmem:[%s929_s11 + $0xb0] sm:$0x1] }
  0x4d   : > { %v633_v21 = vmax.bf16 %v424_v17, %v147_v23  ;;  %v634_v15 = vmax.bf16 %v434_v18, %v148_v34  ;;  %v442_v22 = vor.u32 %v441_v13, %v438_v6  ;;  %v451_v24 = vrot.slane %v449_v5, 4  ;;  %v1098_v5 = vld [vmem:[%s929_s11 + $0xb4] sm:$0xf] }
  0x4e   : > { %873 = vst [vmem:[%s980_s15 + $0x40] sm:$0xff] %v872_v14   ;;  %v457_v27 = vrot.slane %v455_v16, 5  ;;  %v462_v29 = vrot.slane %v460_v20, 4  ;;  %v463_v31 = vshll.u32 %v153_v62, 16  ;;  %v469_v32 = vshll.u32 %v1067_v4, 16 }
  0x4f   : > { %v665_v25 = vmax.bf16 %v633_v21, %v631_v61  ;;  %v666_v35 = vmax.bf16 %v634_v15, %v632_v63  ;;  %v443_v36 = vrot.slane %v442_v22, 4  ;;  %v452_v19 = vor.u32 %v451_v24, %v447_v56 }
  0x50   : > { %v465_v30 = vrot.slane %v463_v31, 5  ;;  %v471_v23 = vrot.slane %v469_v32, 5  ;;  %v473_v34 = vshrl.u32 %v1067_v4, 16  ;;  %v479_v37 = vshll.u32 %v155_v26, 16 }
  0x51   : > { %v874_v40 = vcombine.low %v665_v25, %v666_v35  ;;  %v448_v41 = vsel %vm947_vm2, %v443_v36, %v447_v56  ;;  %v453_v42 = vrot.slane %v452_v19, 4  ;;  %v484_v43 = vshrl.u32 %v156_v9, 16  ;;  %v163_v25 = vld [vmem:[%s929_s11 + $0xb8] sm:$0xf]  ;;  %v164_v35 = vld [vmem:[%s929_s11 + $0xbc] sm:$0x1] }
  0x52   : > { %v635_v38 = vmax.bf16 %v448_v41, %v150_v49  ;;  %v466_v45 = vor.u32 %v465_v30, %v462_v29  ;;  %v475_v48 = vrot.slane %v473_v34, 4  ;;  %v481_v46 = vrot.slane %v479_v37, 5  ;;  %v165_v34 = vld [vmem:[%s929_s11 + $0xc0] sm:$0xf] }
  0x53   : > { %875 = vst [vmem:[%s980_s15 + $0x48] sm:$0xff] %v874_v40   ;;  %v458_v51 = vsel %vm947_vm2, %v453_v42, %v457_v27  ;;  %v486_v52 = vrot.slane %v484_v43, 4  ;;  %v487_v54 = vshll.u32 %v156_v9, 16  ;;  %v493_v55 = vshll.u32 %v1079_v39, 16 }
  0x54   : > { %v636_v44 = vmax.bf16 %v458_v51, %v1054_v57  ;;  %v667_v58 = vmax.bf16 %v635_v38, %v633_v21  ;;  %v467_v59 = vrot.slane %v466_v45, 4  ;;  %v476_v49 = vor.u32 %v475_v48, %v471_v23  ;;  %v166_v51 = vld [vmem:[%s929_s11 + $0xc4] sm:$0xf] }
  0x55   : > { %v489_v60 = vrot.slane %v487_v54, 5  ;;  %v495_v53 = vrot.slane %v493_v55, 5  ;;  %v497_v61 = vshrl.u32 %v1079_v39, 16  ;;  %v503_v63 = vshll.u32 %v158_v50, 16 }
  0x56   : > { %v668_v47 = vmax.bf16 %v636_v44, %v634_v15  ;;  %v472_v0 = vsel %vm947_vm2, %v467_v59, %v471_v23  ;;  %v477_v2 = vrot.slane %v476_v49, 4  ;;  %v508_v3 = vshrl.u32 %v159_v33, 16 }
  0x57   : > { %v637_v6 = vmax.bf16 %v472_v0, %v153_v62  ;;  %v490_v57 = vor.u32 %v489_v60, %v486_v52  ;;  %v499_v7 = vrot.slane %v497_v61, 4  ;;  %v505_v8 = vrot.slane %v503_v63, 5 }
  0x58   : > { %v876_v1 = vcombine.low %v667_v58, %v668_v47  ;;  %v482_v12 = vsel %vm947_vm2, %v477_v2, %v481_v46  ;;  %v510_v13 = vrot.slane %v508_v3, 4  ;;  %v511_v56 = vshll.u32 %v159_v33, 16  ;;  %v167_v58 = vld [vmem:[%s929_s11 + $0xc8] sm:$0x1] }
  0x59   : > { %v638_v16 = vmax.bf16 %v482_v12, %v1067_v4  ;;  %v669_v14 = vmax.bf16 %v637_v6, %v635_v38  ;;  %v491_v17 = vrot.slane %v490_v57, 4  ;;  %v500_v62 = vor.u32 %v499_v7, %v495_v53 }
  0x5a   : > { %877 = vst [vmem:[%s980_s15 + $0x50] sm:$0xff] %v876_v1   ;;  %v513_v18 = vrot.slane %v511_v56, 5  ;;  %v517_v20 = vshll.u32 %v160_v10, 16  ;;  %v521_v21 = vshrl.u32 %v160_v10, 16  ;;  %v527_v15 = vshll.u32 %v161_v11, 16 }
  0x5b   : > { %v670_v22 = vmax.bf16 %v638_v16, %v636_v44  ;;  %v496_v24 = vsel %vm947_vm2, %v491_v17, %v495_v53  ;;  %v501_v26 = vrot.slane %v500_v62, 4  ;;  %v532_v27 = vshrl.u32 %v1098_v5, 16 }
  0x5c   : > { %v639_v4 = vmax.bf16 %v496_v24, %v156_v9  ;;  %v514_v29 = vor.u32 %v513_v18, %v510_v13  ;;  %v519_v31 = vrot.slane %v517_v20, 5  ;;  %v523_v32 = vrot.slane %v521_v21, 4 }
  0x5d   : > { %v878_v36 = vcombine.low %v669_v14, %v670_v22  ;;  %v506_v19 = vsel %vm947_vm2, %v501_v26, %v505_v8  ;;  %v529_v30 = vrot.slane %v527_v15, 5  ;;  %v534_v23 = vrot.slane %v532_v27, 4 }
  0x5e   : > { %v640_v37 = vmax.bf16 %v506_v19, %v1079_v39  ;;  %v671_v40 = vmax.bf16 %v639_v4, %v637_v6  ;;  %v515_v41 = vrot.slane %v514_v29, 4  ;;  %v524_v42 = vor.u32 %v523_v32, %v519_v31 }
  0x5f   : > { %879 = vst [vmem:[%s980_s15 + $0x58] sm:$0xff] %v878_v36   ;;  %v535_v9 = vshll.u32 %v1098_v5, 16  ;;  %v541_v43 = vshll.u32 %v163_v25, 16  ;;  %v545_v38 = vshrl.u32 %v163_v25, 16  ;;  %v551_v45 = vshll.u32 %v164_v35, 16 }
  0x60   : > { %v672_v48 = vmax.bf16 %v640_v37, %v638_v16  ;;  %v520_v46 = vsel %vm947_vm2, %v515_v41, %v519_v31  ;;  %v525_v50 = vrot.slane %v524_v42, 4  ;;  %v556_v52 = vshrl.u32 %v165_v34, 16 }
  0x61   : > { %v641_v54 = vmax.bf16 %v520_v46, %v159_v33  ;;  %v537_v39 = vrot.slane %v535_v9, 5  ;;  %v543_v55 = vrot.slane %v541_v43, 5  ;;  %v547_v44 = vrot.slane %v545_v38, 4 }
  0x62   : > { %v880_v59 = vcombine.low %v671_v40, %v672_v48  ;;  %v530_v49 = vsel %vm947_vm2, %v525_v50, %v529_v30  ;;  %v553_v60 = vrot.slane %v551_v45, 5  ;;  %v558_v53 = vrot.slane %v556_v52, 4 }
  0x63   : > { %v642_v61 = vmax.bf16 %v530_v49, %v160_v10  ;;  %v673_v63 = vmax.bf16 %v641_v54, %v639_v4  ;;  %v538_v47 = vor.u32 %v537_v39, %v534_v23  ;;  %v548_v0 = vor.u32 %v547_v44, %v543_v55 }
  0x64   : > { %881 = vst [vmem:[%s980_s15 + $0x60] sm:$0xff] %v880_v59   ;;  %v559_v2 = vshll.u32 %v165_v34, 16  ;;  %v565_v3 = vshll.u32 %v166_v51, 16  ;;  %v569_v6 = vshrl.u32 %v166_v51, 16  ;;  %v575_v33 = vshll.u32 %v167_v58, 16 }
  0x65   : > { %v674_v57 = vmax.bf16 %v642_v61, %v640_v37  ;;  %v539_v7 = vrot.slane %v538_v47, 4  ;;  %v549_v8 = vrot.slane %v548_v0, 4 }
  0x66   : > { %v561_v11 = vrot.slane %v559_v2, 5  ;;  %v567_v1 = vrot.slane %v565_v3, 5  ;;  %v571_v12 = vrot.slane %v569_v6, 4  ;;  %v577_v16 = vrot.slane %v575_v33, 5 }
  0x67   : > { %v882_v13 = vcombine.low %v673_v63, %v674_v57  ;;  %v544_v56 = vsel %vm947_vm2, %v539_v7, %v543_v55  ;;  %v554_v10 = vsel %vm947_vm2, %v549_v8, %v553_v60 }
  0x68   : > { %v643_v14 = vmax.bf16 %v544_v56, %v1098_v5  ;;  %v644_v17 = vmax.bf16 %v554_v10, %v163_v25  ;;  %v562_v62 = vor.u32 %v561_v11, %v558_v53  ;;  %v572_v18 = vor.u32 %v571_v12, %v567_v1 }
  0x69   : > { %883 = vst [vmem:[%s980_s15 + $0x68] sm:$0xff] %v882_v13  }
  0x6a   : > { %v675_v20 = vmax.bf16 %v643_v14, %v641_v54  ;;  %v676_v21 = vmax.bf16 %v644_v17, %v642_v61  ;;  %v563_v15 = vrot.slane %v562_v62, 4  ;;  %v573_v22 = vrot.slane %v572_v18, 4 }
  0x6c   : > { %v884_v24 = vcombine.low %v675_v20, %v676_v21  ;;  %v568_v26 = vsel %vm947_vm2, %v563_v15, %v567_v1  ;;  %v578_v27 = vsel %vm947_vm2, %v573_v22, %v577_v16 }
  0x6d   : > { %v645_v4 = vmax.bf16 %v568_v26, %v165_v34  ;;  %v646_v29 = vmax.bf16 %v578_v27, %v166_v51 }
  0x6e   : > { %885 = vst [vmem:[%s980_s15 + $0x70] sm:$0xff] %v884_v24  }
  0x6f   : > { %v677_v5 = vmax.bf16 %v645_v4, %v643_v14  ;;  %v678_v31 = vmax.bf16 %v646_v29, %v644_v17 }
  0x71   : > { %v886_v32 = vcombine.low %v677_v5, %v678_v31 }
  0x73   : > { %887 = vst [vmem:[%s980_s15 + $0x78] sm:$0xff] %v886_v32  }
  0x74 PF: > { %s11_s6 = sadd.s32 1, %s903_s6  }
  0x75   : > { %p8_p4 = scmp.ge.s32.totalorder %s11_s6, 4  }
  0x77   :  { %10 = sbr.rel (!%p8_p4) target bundleno = 1 (0x1), region = 54 }

// kernel: hgstem_forward.6
= control target key start
LH: loop header
LB: loop body
LE: loop exit
PB: predicated region body
PF: predicated region fallthrough
CT: control target
= control target key end

     0   :  { %s2976_s21 = smov 0   ;;  %s3232_s0 = inlined_call_operand.vmem [shape: bf16[512,128], index: 0, kind: input, shape index: {}]   ;;  %s3233_s1 = inlined_call_operand.vmem [shape: bf16[512,128], index: 1, kind: input, shape index: {}]   ;;  %s3234_s2 = inlined_call_operand.vmem [shape: bf16[512,128], index: 2, kind: input, shape index: {}]   ;;  %s3235_s3 = inlined_call_operand.vmem [shape: bf16[512,128], index: 3, kind: input, shape index: {}]   ;;  %s3236_s4 = inlined_call_operand.vmem [shape: bf16[4,128,128], index: 4, kind: input, shape index: {}]   ;;  %s3237_s5 = inlined_call_operand.vmem [shape: f32[1,128], index: 5, kind: input, shape index: {}]   ;;  %s3238_s6 = inlined_call_operand.vmem [shape: bf16[512,128], index: 6, kind: output, shape index: {}]  }
   0x1 LB: > { %s2124_s22 = sadd.s32 4294967295, %s2939_s21   ;;  %p2128_p0 = scmp.ge.s32.totalorder %s2939_s21, 1  ;;  %s2939_s21 = sphi %s2976_s21, %s16_s21  }
   0x2   : > { %p246_p1 = scmp.lt.s32.totalorder %s2939_s21, 3 }
   0x4   : > { %p247_p2 = pnand %p2128_p0, %p246_p1 }
   0x5   : > { %v2837_v0 = vld [vmem:[%s3236_s4 + $0x40] sm:$0xff] (!%p247_p2)   ;;  %s2129_s25 = sshll.u32 (!%p247_p2), %s2124_s22, 5  ;;  %v2839_v2 = vld [vmem:[%s3236_s4 + $0x48] sm:$0xff] (!%p247_p2)   ;;  %v2841_v4 = vld [vmem:[%s3236_s4 + $0x50] sm:$0xff] (!%p247_p2)  }
   0x6   : > { %250 = sbr.rel (%p247_p2) target bundleno = 383 (0x17f), region = 44  ;;  %v2838_v1 = vld [vmem:[%s3236_s4 + $0x80] sm:$0xff] (!%p247_p2)   ;;  %2541 = vmatprep.subr.bf16.mxu1 (!%p247_p2), %v2837_v0  ;;  %p292_p3 = scmp.lt.s32.totalorder (!%p247_p2), %s2129_s25, 63  ;;  %v2840_v3 = vld [vmem:[%s3236_s4 + $0x88] sm:$0xff] (!%p247_p2)   ;;  %v2842_v5 = vld [vmem:[%s3236_s4 + $0x90] sm:$0xff] (!%p247_p2)  }
   0x7   : > { %2637 = vmatprep.subr.bf16.mxu0 (!%p247_p2), %v2838_v1  ;;  %2542 = vmatpush3.bf16.msra.mxu1 (!%p247_p2), %v2837_v0  ;;  %v2843_v6 = vld [vmem:[%s3236_s4 + $0x58] sm:$0xff] (!%p247_p2)   ;;  %v2845_v8 = vld [vmem:[%s3236_s4 + $0x60] sm:$0xff] (!%p247_p2)   ;;  %v2847_v10 = vld [vmem:[%s3236_s4 + $0x68] sm:$0xff] (!%p247_p2)  }
   0x8   : > { %2638 = vmatpush3.bf16.msra.mxu0 (!%p247_p2), %v2838_v1  ;;  %2543 = vmatprep.subr.bf16.mxu1 (!%p247_p2), %v2839_v2  ;;  %v2844_v7 = vld [vmem:[%s3236_s4 + $0x98] sm:$0xff] (!%p247_p2)   ;;  %v2846_v9 = vld [vmem:[%s3236_s4 + $0xa0] sm:$0xff] (!%p247_p2)   ;;  %v2848_v11 = vld [vmem:[%s3236_s4 + $0xa8] sm:$0xff] (!%p247_p2)  }
   0x9   : > { %2639 = vmatprep.subr.bf16.mxu0 (!%p247_p2), %v2840_v3  ;;  %v2849_v14 = vld [vmem:[%s3236_s4 + $0x70] sm:$0xff] (!%p247_p2)   ;;  %v2851_v16 = vld [vmem:[%s3236_s4 + $0x78] sm:$0xff] (!%p247_p2)   ;;  %v2856_v19 = vld [vmem:[%s3236_s4] sm:$0xff] (!%p247_p2)  }
   0xa   : > { %v2850_v15 = vld [vmem:[%s3236_s4 + $0xb0] sm:$0xff] (!%p247_p2)   ;;  %v2852_v17 = vld [vmem:[%s3236_s4 + $0xb8] sm:$0xff] (!%p247_p2)   ;;  %v2858_v20 = vld [vmem:[%s3236_s4 + $0xc0] sm:$0xff] (!%p247_p2)  }
   0xb   : > { %2544 = vmatpush3.bf16.msra.mxu1 (!%p247_p2), %v2839_v2  ;;  %v2862_v24 = vld [vmem:[%s3236_s4 + $0x8] sm:$0xff] (!%p247_p2)   ;;  %v2868_v27 = vld [vmem:[%s3236_s4 + $0x10] sm:$0xff] (!%p247_p2)   ;;  %v2874_v32 = vld [vmem:[%s3236_s4 + $0x18] sm:$0xff] (!%p247_p2)  }
   0xc   : > { %2640 = vmatpush3.bf16.msra.mxu0 (!%p247_p2), %v2840_v3  ;;  %2545 = vmatprep.subr.bf16.mxu1 (!%p247_p2), %v2841_v4  ;;  %v2864_v25 = vld [vmem:[%s3236_s4 + $0xc8] sm:$0xff] (!%p247_p2)   ;;  %v2870_v28 = vld [vmem:[%s3236_s4 + $0xd0] sm:$0xff] (!%p247_p2)   ;;  %v2876_v33 = vld [vmem:[%s3236_s4 + $0xd8] sm:$0xff] (!%p247_p2)  }
   0xd   : > { %s3240_s25 = smov (!%p292_p3, %s2129_s25), 63  ;;  %2641 = vmatprep.subr.bf16.mxu0 %v2842_v5  ;;  %v2880_v36 = vld [vmem:[%s3236_s4 + $0x20] sm:$0xff]   ;;  %v2886_v40 = vld [vmem:[%s3236_s4 + $0x28] sm:$0xff]   ;;  %v2892_v45 = vld [vmem:[%s3236_s4 + $0x30] sm:$0xff]  }
   0xe   : > { %s3008_s16 = sshll.u32 %s3240_s25, 2  ;;  %v2882_v37 = vld [vmem:[%s3236_s4 + $0xe0] sm:$0xff]   ;;  %v2888_v41 = vld [vmem:[%s3236_s4 + $0xe8] sm:$0xff]   ;;  %v2894_v47 = vld [vmem:[%s3236_s4 + $0xf0] sm:$0xff]  }
   0xf   : > { %2546 = vmatpush3.bf16.msra.mxu1 %v2841_v4  ;;  %s3020_s24 = scalar_lea.vmem %s3233_s1, %s3008_s16  ;;  %s3029_s29 = scalar_lea.vmem %s3234_s2, %s3008_s16  ;;  %v2898_v50 = vld [vmem:[%s3236_s4 + $0x38] sm:$0xff]  }
  0x10   : > { %2642 = vmatpush3.bf16.msra.mxu0 %v2842_v5  ;;  %2547 = vmatprep.subr.bf16.mxu1 %v2843_v6  ;;  %v2853_v12 = vld [vmem:[%s3020_s24] sm:$0xff]   ;;  %v2855_v18 = vld [vmem:[%s3020_s24 + $0x8] sm:$0xff]   ;;  %v2859_v22 = vld [vmem:[%s3020_s24 + $0x10] sm:$0xff]   ;;  %s3119_s10 = scalar_lea.vmem %s3232_s0, %s3008_s16  ;;  %s3126_s13 = scalar_lea.vmem %s3235_s3, %s3008_s16 }
  0x11   : > { %2643 = vmatprep.subr.bf16.mxu0 %v2844_v7  ;;  %v2854_v13 = vld [vmem:[%s3029_s29] sm:$0xff]   ;;  %2557 = vmatprep.mubr.bf16.mxu1 %v2853_v12  ;;  %v2857_v21 = vld [vmem:[%s3029_s29 + $0x8] sm:$0xff]   ;;  %v2860_v23 = vld [vmem:[%s3029_s29 + $0x10] sm:$0xff]   ;;  %s3183_s17 = scalar_lea.vmem %s3238_s6, %s3008_s16 }
  0x12   : > { %2653 = vmatprep.mubr.bf16.mxu0 %v2854_v13  ;;  %v2861_v26 = vld [vmem:[%s3020_s24 + $0x18] sm:$0xff]   ;;  %v2865_v30 = vld [vmem:[%s3020_s24 + $0x20] sm:$0xff]   ;;  %v2867_v34 = vld [vmem:[%s3020_s24 + $0x28] sm:$0xff]  }
  0x13   : > { %2548 = vmatpush3.bf16.msra.mxu1 %v2843_v6  ;;  %v2863_v29 = vld [vmem:[%s3029_s29 + $0x18] sm:$0xff]   ;;  %v2866_v31 = vld [vmem:[%s3029_s29 + $0x20] sm:$0xff]   ;;  %v2869_v35 = vld [vmem:[%s3029_s29 + $0x28] sm:$0xff]  }
  0x14   : > { %2644 = vmatpush3.bf16.msra.mxu0 %v2844_v7  ;;  %2549 = vmatprep.subr.bf16.mxu1 %v2845_v8  ;;  %v2871_v38 = vld [vmem:[%s3020_s24 + $0x30] sm:$0xff]   ;;  %v2873_v42 = vld [vmem:[%s3020_s24 + $0x38] sm:$0xff]   ;;  %v2877_v44 = vld [vmem:[%s3020_s24 + $0x40] sm:$0xff]  }
  0x15   : > { %2645 = vmatprep.subr.bf16.mxu0 %v2846_v9  ;;  %v2872_v39 = vld [vmem:[%s3029_s29 + $0x30] sm:$0xff]   ;;  %v2875_v43 = vld [vmem:[%s3029_s29 + $0x38] sm:$0xff]   ;;  %v2878_v46 = vld [vmem:[%s3029_s29 + $0x40] sm:$0xff]  }
  0x16   : > { %v2879_v48 = vld [vmem:[%s3020_s24 + $0x48] sm:$0xff]   ;;  %v2883_v51 = vld [vmem:[%s3020_s24 + $0x50] sm:$0xff]   ;;  %v2900_v52 = vld [vmem:[%s3236_s4 + $0xf8] sm:$0xff]  }
  0x17   : > { %2550 = vmatpush3.bf16.msra.mxu1 %v2845_v8  ;;  %v2881_v49 = vld [vmem:[%s3029_s29 + $0x48] sm:$0xff]   ;;  %v2884_v53 = vld [vmem:[%s3029_s29 + $0x50] sm:$0xff]   ;;  %v2885_v54 = vld [vmem:[%s3020_s24 + $0x58] sm:$0xff]  }
  0x18   : > { %2646 = vmatpush3.bf16.msra.mxu0 %v2846_v9  ;;  %2551 = vmatprep.subr.bf16.mxu1 %v2847_v10  ;;  %v2887_v55 = vld [vmem:[%s3029_s29 + $0x58] sm:$0xff]   ;;  %v2889_v56 = vld [vmem:[%s3020_s24 + $0x60] sm:$0xff]   ;;  %v2891_v58 = vld [vmem:[%s3020_s24 + $0x68] sm:$0xff]  }
  0x19   : > { %2647 = vmatprep.subr.bf16.mxu0 %v2848_v11  ;;  %v2890_v57 = vld [vmem:[%s3029_s29 + $0x60] sm:$0xff]   ;;  %v2893_v59 = vld [vmem:[%s3029_s29 + $0x68] sm:$0xff]   ;;  %v2895_v60 = vld [vmem:[%s3020_s24 + $0x70] sm:$0xff]  }
  0x1a   : > { %v2896_v61 = vld [vmem:[%s3029_s29 + $0x70] sm:$0xff]   ;;  %v2897_v62 = vld [vmem:[%s3020_s24 + $0x78] sm:$0xff]   ;;  %v2901_v0 = vld [vmem:[%s3119_s10] sm:$0xff]  }
  0x1b   : > { %2552 = vmatpush3.bf16.msra.mxu1 %v2847_v10  ;;  %v2899_v63 = vld [vmem:[%s3029_s29 + $0x78] sm:$0xff]   ;;  %v2902_v1 = vld [vmem:[%s3126_s13] sm:$0xff]   ;;  %v2903_v2 = vld [vmem:[%s3119_s10 + $0x8] sm:$0xff]  }
  0x1c   : > { %2648 = vmatpush3.bf16.msra.mxu0 %v2848_v11  ;;  %2553 = vmatprep.subr.bf16.mxu1 %v2849_v14  ;;  %v2904_v3 = vld [vmem:[%s3126_s13 + $0x8] sm:$0xff]   ;;  %v2905_v4 = vld [vmem:[%s3119_s10 + $0x10] sm:$0xff]   ;;  %v2907_v6 = vld [vmem:[%s3119_s10 + $0x18] sm:$0xff]  }
  0x1d   : > { %2649 = vmatprep.subr.bf16.mxu0 %v2850_v15  ;;  %v2906_v5 = vld [vmem:[%s3126_s13 + $0x10] sm:$0xff]   ;;  %v2908_v7 = vld [vmem:[%s3126_s13 + $0x18] sm:$0xff]   ;;  %v2909_v8 = vld [vmem:[%s3119_s10 + $0x20] sm:$0xff]  }
  0x1e   : > { %v2910_v9 = vld [vmem:[%s3126_s13 + $0x20] sm:$0xff]   ;;  %v2911_v10 = vld [vmem:[%s3119_s10 + $0x28] sm:$0xff]   ;;  %v2913_v12 = vld [vmem:[%s3119_s10 + $0x30] sm:$0xff]  }
  0x1f   : > { %2554 = vmatpush3.bf16.msra.mxu1 %v2849_v14  ;;  %v2912_v11 = vld [vmem:[%s3126_s13 + $0x28] sm:$0xff]   ;;  %v2914_v13 = vld [vmem:[%s3126_s13 + $0x30] sm:$0xff]   ;;  %v2915_v14 = vld [vmem:[%s3119_s10 + $0x38] sm:$0xff]  }
  0x20   : > { %2650 = vmatpush3.bf16.msra.mxu0 %v2850_v15  ;;  %2555 = vmatprep.subr.bf16.mxu1 %v2851_v16  ;;  %v2916_v15 = vld [vmem:[%s3126_s13 + $0x38] sm:$0xff]  }
  0x21   : > { %2651 = vmatprep.subr.bf16.mxu0 %v2852_v17 }
  0x23   : > { %2556 = vmatpush3.bf16.msra.mxu1 %v2851_v16  ;;  %v2917_v16 = vld [vmem:[%s3119_s10 + $0x40] sm:$0xff]  }
  0x24   : > { %2652 = vmatpush3.bf16.msra.mxu0 %v2852_v17  ;;  %2589 = vmatprep.subr.bf16.mxu1 %v2856_v19  ;;  %v2918_v17 = vld [vmem:[%s3126_s13 + $0x40] sm:$0xff]  }
  0x25   : > { %2685 = vmatprep.subr.bf16.mxu0 %v2858_v20 }
  0x26   : > { %2558 = vmatmul.mubr.bf16.vlgmr.msra.gmra.mrb[0].mxu1 %v2855_v18  ;;  %v2919_v18 = vld [vmem:[%s3119_s10 + $0x48] sm:$0xff]  }
  0x27   : > { %2654 = vmatmul.mubr.bf16.vlgmr.msra.gmra.mrb[0].mxu0 %v2857_v21  ;;  %2590 = vmatpush3.bf16.msra.mxu1 %v2856_v19  ;;  %v2920_v19 = vld [vmem:[%s3126_s13 + $0x48] sm:$0xff]   ;;  %v2922_v21 = vld [vmem:[%s3126_s13 + $0x50] sm:$0xff]  }
  0x28   : > { %2686 = vmatpush3.bf16.msra.mxu0 %v2858_v20  ;;  %2561 = vmatprep.mubr.bf16.mxu1 %v2859_v22  ;;  %v2921_v20 = vld [vmem:[%s3119_s10 + $0x50] sm:$0xff]   ;;  %v2923_v22 = vld [vmem:[%s3119_s10 + $0x58] sm:$0xff]  }
  0x29   : > { %2657 = vmatprep.mubr.bf16.mxu0 %v2860_v23  ;;  %2591 = vmatprep.subr.bf16.mxu1 %v2862_v24  ;;  %v2924_v23 = vld [vmem:[%s3126_s13 + $0x58] sm:$0xff]  }
  0x2a   : > { %2687 = vmatprep.subr.bf16.mxu0 %v2864_v25 }
  0x2b   : > { %2592 = vmatpush3.bf16.msra.mxu1 %v2862_v24  ;;  %v2925_v24 = vld [vmem:[%s3119_s10 + $0x60] sm:$0xff]  }
  0x2c   : > { %2688 = vmatpush3.bf16.msra.mxu0 %v2864_v25  ;;  %2593 = vmatprep.subr.bf16.mxu1 %v2868_v27  ;;  %v2926_v25 = vld [vmem:[%s3126_s13 + $0x60] sm:$0xff]  }
  0x2d   : > { %2689 = vmatprep.subr.bf16.mxu0 %v2870_v28 }
  0x2e   : > { %2562 = vmatmul.mubr.bf16.gmra.mrb[4].mxu1 %v2861_v26  ;;  %v2927_v26 = vld [vmem:[%s3119_s10 + $0x68] sm:$0xff]  }
  0x2f   : > { %2658 = vmatmul.mubr.bf16.gmra.mrb[4].mxu0 %v2863_v29  ;;  %2565 = vmatprep.mubr.bf16.mxu1 %v2865_v30  ;;  %v2930_v29 = vld [vmem:[%s3126_s13 + $0x70] sm:$0xff]   ;;  %v2931_v30 = vld [vmem:[%s3119_s10 + $0x78] sm:$0xff]  }
  0x30   : > { %2661 = vmatprep.mubr.bf16.mxu0 %v2866_v31  ;;  %2594 = vmatpush3.bf16.msra.mxu1 %v2868_v27  ;;  %v2928_v27 = vld [vmem:[%s3126_s13 + $0x68] sm:$0xff]   ;;  %v2932_v31 = vld [vmem:[%s3126_s13 + $0x78] sm:$0xff]  }
  0x31   : > { %2690 = vmatpush3.bf16.msra.mxu0 %v2870_v28  ;;  %2595 = vmatprep.subr.bf16.mxu1 %v2874_v32  ;;  %v2929_v28 = vld [vmem:[%s3119_s10 + $0x70] sm:$0xff]  }
  0x32   : > { %2691 = vmatprep.subr.bf16.mxu0 %v2876_v33 }
  0x34   : > { %2596 = vmatpush3.bf16.msra.mxu1 %v2874_v32 }
  0x35   : > { %2692 = vmatpush3.bf16.msra.mxu0 %v2876_v33  ;;  %2597 = vmatprep.subr.bf16.mxu1 %v2880_v36 }
  0x36   : > { %2566 = vmatmul.mubr.bf16.gmra.mrb[8].mxu1 %v2867_v34  ;;  %2693 = vmatprep.subr.bf16.mxu0 %v2882_v37  ;;  %v3173_v34 = vld [vmem:[%s3237_s5] ss:$0 sm:$0xff] }
  0x37   : > { %2662 = vmatmul.mubr.bf16.gmra.mrb[8].mxu0 %v2869_v35  ;;  %2569 = vmatprep.mubr.bf16.mxu1 %v2871_v38 }
  0x38   : > { %2665 = vmatprep.mubr.bf16.mxu0 %v2872_v39  ;;  %2598 = vmatpush3.bf16.msra.mxu1 %v2880_v36 }
  0x39   : > { %2694 = vmatpush3.bf16.msra.mxu0 %v2882_v37  ;;  %2599 = vmatprep.subr.bf16.mxu1 %v2886_v40 }
  0x3a   : > { %2695 = vmatprep.subr.bf16.mxu0 %v2888_v41 }
  0x3c   : > { %2600 = vmatpush3.bf16.msra.mxu1 %v2886_v40 }
  0x3d   : > { %2696 = vmatpush3.bf16.msra.mxu0 %v2888_v41  ;;  %2601 = vmatprep.subr.bf16.mxu1 %v2892_v45 }
  0x3e   : > { %2570 = vmatmul.mubr.bf16.gmra.mrb[12].mxu1 %v2873_v42  ;;  %2697 = vmatprep.subr.bf16.mxu0 %v2894_v47 }
  0x3f   : > { %2666 = vmatmul.mubr.bf16.gmra.mrb[12].mxu0 %v2875_v43  ;;  %2573 = vmatprep.mubr.bf16.mxu1 %v2877_v44 }
  0x40   : > { %2669 = vmatprep.mubr.bf16.mxu0 %v2878_v46  ;;  %2602 = vmatpush3.bf16.msra.mxu1 %v2892_v45 }
  0x41   : > { %2698 = vmatpush3.bf16.msra.mxu0 %v2894_v47  ;;  %2603 = vmatprep.subr.bf16.mxu1 %v2898_v50 }
  0x42   : > { %2699 = vmatprep.subr.bf16.mxu0 %v2900_v52 }
  0x44   : > { %2604 = vmatpush3.bf16.msra.mxu1 %v2898_v50 }
  0x45   : > { %2700 = vmatpush3.bf16.msra.mxu0 %v2900_v52 }
  0x46   : > { %2574 = vmatmul.mubr.bf16.gmra.mrb[16].mxu1 %v2879_v48 }
  0x47   : > { %2670 = vmatmul.mubr.bf16.gmra.mrb[16].mxu0 %v2881_v49  ;;  %2577 = vmatprep.mubr.bf16.mxu1 %v2883_v51 }
  0x48   : > { %2673 = vmatprep.mubr.bf16.mxu0 %v2884_v53 }
  0x4e   : > { %2578 = vmatmul.mubr.bf16.gmra.mrb[20].mxu1 %v2885_v54 }
  0x4f   : > { %2674 = vmatmul.mubr.bf16.gmra.mrb[20].mxu0 %v2887_v55  ;;  %2581 = vmatprep.mubr.bf16.mxu1 %v2889_v56 }
  0x50   : > { %2677 = vmatprep.mubr.bf16.mxu0 %v2890_v57 }
  0x56   : > { %2582 = vmatmul.mubr.bf16.gmra.mrb[24].mxu1 %v2891_v58 }
  0x57   : > { %2678 = vmatmul.mubr.bf16.gmra.mrb[24].mxu0 %v2893_v59  ;;  %2585 = vmatprep.mubr.bf16.mxu1 %v2895_v60 }
  0x58   : > { %2681 = vmatprep.mubr.bf16.mxu0 %v2896_v61 }
  0x5e   : > { %2586 = vmatmul.mubr.bf16.gmra.mrb[28].mxu1 %v2897_v62 }
  0x5f   : > { %2682 = vmatmul.mubr.bf16.gmra.mrb[28].mxu0 %v2899_v63  ;;  %2605 = vmatprep.mubr.bf16.mxu1 %v2901_v0 }
  0x60   : > { %2701 = vmatprep.mubr.bf16.mxu0 %v2902_v1 }
  0x66   : > { %2606 = vmatmul.mubr.bf16.vlgmr.msra.gmra.mrb[0].mxu1 %v2903_v2 }
  0x67   : > { %2702 = vmatmul.mubr.bf16.vlgmr.msra.gmra.mrb[0].mxu0 %v2904_v3  ;;  %2609 = vmatprep.mubr.bf16.mxu1 %v2905_v4 }
  0x68   : > { %2705 = vmatprep.mubr.bf16.mxu0 %v2906_v5 }
  0x6e   : > { %2610 = vmatmul.mubr.bf16.gmra.mrb[4].mxu1 %v2907_v6 }
  0x6f   : > { %2706 = vmatmul.mubr.bf16.gmra.mrb[4].mxu0 %v2908_v7  ;;  %2613 = vmatprep.mubr.bf16.mxu1 %v2909_v8 }
  0x70   : > { %2709 = vmatprep.mubr.bf16.mxu0 %v2910_v9 }
  0x76   : > { %2614 = vmatmul.mubr.bf16.gmra.mrb[8].mxu1 %v2911_v10 }
  0x77   : > { %2710 = vmatmul.mubr.bf16.gmra.mrb[8].mxu0 %v2912_v11  ;;  %2617 = vmatprep.mubr.bf16.mxu1 %v2913_v12 }
  0x78   : > { %2713 = vmatprep.mubr.bf16.mxu0 %v2914_v13 }
  0x7e   : > { %2618 = vmatmul.mubr.bf16.gmra.mrb[12].mxu1 %v2915_v14 }
  0x7f   : > { %2714 = vmatmul.mubr.bf16.gmra.mrb[12].mxu0 %v2916_v15  ;;  %2621 = vmatprep.mubr.bf16.mxu1 %v2917_v16 }
  0x80   : > { %2717 = vmatprep.mubr.bf16.mxu0 %v2918_v17 }
  0x86   : > { %2622 = vmatmul.mubr.bf16.gmra.mrb[16].mxu1 %v2919_v18 }
  0x87   : > { %2718 = vmatmul.mubr.bf16.gmra.mrb[16].mxu0 %v2920_v19  ;;  %2625 = vmatprep.mubr.bf16.mxu1 %v2921_v20 }
  0x88   : > { %2721 = vmatprep.mubr.bf16.mxu0 %v2922_v21 }
  0x8e   : > { %2626 = vmatmul.mubr.bf16.gmra.mrb[20].mxu1 %v2923_v22 }
  0x8f   : > { %2722 = vmatmul.mubr.bf16.gmra.mrb[20].mxu0 %v2924_v23  ;;  %2629 = vmatprep.mubr.bf16.mxu1 %v2925_v24 }
  0x90   : > { %2725 = vmatprep.mubr.bf16.mxu0 %v2926_v25 }
  0x96   : > { %2630 = vmatmul.mubr.bf16.gmra.mrb[24].mxu1 %v2927_v26 }
  0x97   : > { %2726 = vmatmul.mubr.bf16.gmra.mrb[24].mxu0 %v2928_v27  ;;  %2633 = vmatprep.mubr.bf16.mxu1 %v2929_v28 }
  0x98   : > { %2729 = vmatprep.mubr.bf16.mxu0 %v2930_v29 }
  0x9e   : > { %2634 = vmatmul.mubr.bf16.gmra.mrb[28].mxu1 %v2931_v30 }
  0x9f   : > { %2730 = vmatmul.mubr.bf16.gmra.mrb[28].mxu0 %v2932_v31 }
 0x139   : > { %v2607_v32 = vpop.f32.mrb[0].mxu1 }
 0x13a   : > { %v2703_v33 = vpop.f32.mrb[0].mxu0  ;;  %v902_v35 = vpop.f32.mrb[1].mxu1 }
 0x13b   : > { %v2733_v36 = vadd.f32 %v2703_v33, %v2607_v32  ;;  %v1642_v37 = vpop.f32.mrb[1].mxu0  ;;  %v2608_v38 = vpop.f32.mrb[2].mxu1 }
 0x13c   : > { %v2734_v39 = vadd.f32 %v1642_v37, %v902_v35  ;;  %v2704_v40 = vpop.f32.mrb[2].mxu0  ;;  %v905_v41 = vpop.f32.mrb[3].mxu1 }
 0x13d   : > { %v1810_v42 = vadd.f32 %v2733_v36, %v3173_v34  ;;  %v2735_v43 = vadd.f32 %v2704_v40, %v2608_v38  ;;  %v1645_v44 = vpop.f32.mrb[3].mxu0 }
 0x13e   : > { %v1808_v45 = vadd.f32 %v2734_v39, %v3173_v34  ;;  %v2736_v46 = vadd.f32 %v1645_v44, %v905_v41 }
 0x13f   : > { %v1811_v47 = vadd.f32 %v2735_v43, %v3173_v34  ;;  %v1842_v49 = vmax.f32 %v1810_v42, 0.0 }
 0x140   : > { %v1809_v48 = vadd.f32 %v2736_v46, %v3173_v34  ;;  %v1840_v52 = vmax.f32 %v1808_v45, 0.0 }
 0x141   : > { %v1843_v50 = vmax.f32 %v1811_v47, 0.0  ;;  %v2611_v51 = vpop.f32.mrb[4].mxu1 }
 0x142   : > { %v1841_v53 = vmax.f32 %v1809_v48, 0.0  ;;  %v2707_v54 = vpop.f32.mrb[4].mxu0  ;;  %v918_v55 = vpop.f32.mrb[5].mxu1 }
 0x143   : > { %v2358_v56 = vpack.c.bf16 %v1843_v50, %v1842_v49  ;;  %v2737_v57 = vadd.f32 %v2707_v54, %v2611_v51  ;;  %v1658_v58 = vpop.f32.mrb[5].mxu0  ;;  %v2612_v59 = vpop.f32.mrb[6].mxu1 }
 0x144   : > { %v2353_v60 = vpack.c.bf16 %v1841_v53, %v1840_v52  ;;  %v2738_v61 = vadd.f32 %v1658_v58, %v918_v55  ;;  %v2708_v62 = vpop.f32.mrb[6].mxu0  ;;  %v921_v63 = vpop.f32.mrb[7].mxu1 }
 0x145   : > { %2430 = vst [vmem:[%s3183_s17 + $0x8] sm:$0xff] %v2358_v56   ;;  %v1814_v0 = vadd.f32 %v2737_v57, %v3173_v34  ;;  %v2739_v1 = vadd.f32 %v2708_v62, %v2612_v59  ;;  %v1661_v2 = vpop.f32.mrb[7].mxu0 }
 0x146   : > { %2354 = vst [vmem:[%s3183_s17] sm:$0xff] %v2353_v60   ;;  %v1812_v3 = vadd.f32 %v2738_v61, %v3173_v34  ;;  %v2740_v4 = vadd.f32 %v1661_v2, %v921_v63 }
 0x147   : > { %v1815_v5 = vadd.f32 %v2739_v1, %v3173_v34  ;;  %v1846_v7 = vmax.f32 %v1814_v0, 0.0 }
 0x148   : > { %v1813_v6 = vadd.f32 %v2740_v4, %v3173_v34  ;;  %v1844_v10 = vmax.f32 %v1812_v3, 0.0 }
 0x149   : > { %v1847_v8 = vmax.f32 %v1815_v5, 0.0  ;;  %v2615_v9 = vpop.f32.mrb[8].mxu1 }
 0x14a   : > { %v1845_v11 = vmax.f32 %v1813_v6, 0.0  ;;  %v2711_v12 = vpop.f32.mrb[8].mxu0  ;;  %v934_v13 = vpop.f32.mrb[9].mxu1 }
 0x14b   : > { %v2368_v14 = vpack.c.bf16 %v1847_v8, %v1846_v7  ;;  %v2741_v15 = vadd.f32 %v2711_v12, %v2615_v9  ;;  %v1674_v16 = vpop.f32.mrb[9].mxu0  ;;  %v2616_v17 = vpop.f32.mrb[10].mxu1 }
 0x14c   : > { %v2363_v18 = vpack.c.bf16 %v1845_v11, %v1844_v10  ;;  %v2742_v19 = vadd.f32 %v1674_v16, %v934_v13  ;;  %v2712_v20 = vpop.f32.mrb[10].mxu0  ;;  %v937_v21 = vpop.f32.mrb[11].mxu1 }
 0x14d   : > { %2432 = vst [vmem:[%s3183_s17 + $0x18] sm:$0xff] %v2368_v14   ;;  %v1818_v22 = vadd.f32 %v2741_v15, %v3173_v34  ;;  %v2743_v23 = vadd.f32 %v2712_v20, %v2616_v17  ;;  %v1677_v24 = vpop.f32.mrb[11].mxu0 }
 0x14e   : > { %2431 = vst [vmem:[%s3183_s17 + $0x10] sm:$0xff] %v2363_v18   ;;  %v1816_v25 = vadd.f32 %v2742_v19, %v3173_v34  ;;  %v2744_v26 = vadd.f32 %v1677_v24, %v937_v21 }
 0x14f   : > { %v1819_v27 = vadd.f32 %v2743_v23, %v3173_v34  ;;  %v1850_v29 = vmax.f32 %v1818_v22, 0.0 }
 0x150   : > { %v1817_v28 = vadd.f32 %v2744_v26, %v3173_v34  ;;  %v1848_v32 = vmax.f32 %v1816_v25, 0.0 }
 0x151   : > { %v1851_v30 = vmax.f32 %v1819_v27, 0.0  ;;  %v2619_v31 = vpop.f32.mrb[12].mxu1 }
 0x152   : > { %v1849_v33 = vmax.f32 %v1817_v28, 0.0  ;;  %v2715_v35 = vpop.f32.mrb[12].mxu0  ;;  %v950_v36 = vpop.f32.mrb[13].mxu1 }
 0x153   : > { %v2378_v37 = vpack.c.bf16 %v1851_v30, %v1850_v29  ;;  %v2745_v38 = vadd.f32 %v2715_v35, %v2619_v31  ;;  %v1690_v39 = vpop.f32.mrb[13].mxu0  ;;  %v2620_v40 = vpop.f32.mrb[14].mxu1 }
 0x154   : > { %v2373_v41 = vpack.c.bf16 %v1849_v33, %v1848_v32  ;;  %v2746_v42 = vadd.f32 %v1690_v39, %v950_v36  ;;  %v2716_v43 = vpop.f32.mrb[14].mxu0  ;;  %v953_v44 = vpop.f32.mrb[15].mxu1 }
 0x155   : > { %2434 = vst [vmem:[%s3183_s17 + $0x28] sm:$0xff] %v2378_v37   ;;  %v1822_v45 = vadd.f32 %v2745_v38, %v3173_v34  ;;  %v2747_v46 = vadd.f32 %v2716_v43, %v2620_v40  ;;  %v1693_v47 = vpop.f32.mrb[15].mxu0 }
 0x156   : > { %2433 = vst [vmem:[%s3183_s17 + $0x20] sm:$0xff] %v2373_v41   ;;  %v1820_v48 = vadd.f32 %v2746_v42, %v3173_v34  ;;  %v2748_v49 = vadd.f32 %v1693_v47, %v953_v44 }
 0x157   : > { %v1823_v50 = vadd.f32 %v2747_v46, %v3173_v34  ;;  %v1854_v52 = vmax.f32 %v1822_v45, 0.0 }
 0x158   : > { %v1821_v51 = vadd.f32 %v2748_v49, %v3173_v34  ;;  %v1852_v55 = vmax.f32 %v1820_v48, 0.0 }
 0x159   : > { %v1855_v53 = vmax.f32 %v1823_v50, 0.0  ;;  %v2623_v54 = vpop.f32.mrb[16].mxu1 }
 0x15a   : > { %v1853_v56 = vmax.f32 %v1821_v51, 0.0  ;;  %v2719_v57 = vpop.f32.mrb[16].mxu0  ;;  %v966_v58 = vpop.f32.mrb[17].mxu1 }
 0x15b   : > { %v2388_v59 = vpack.c.bf16 %v1855_v53, %v1854_v52  ;;  %v2749_v60 = vadd.f32 %v2719_v57, %v2623_v54  ;;  %v1706_v61 = vpop.f32.mrb[17].mxu0  ;;  %v2624_v62 = vpop.f32.mrb[18].mxu1 }
 0x15c   : > { %v2383_v63 = vpack.c.bf16 %v1853_v56, %v1852_v55  ;;  %v2750_v0 = vadd.f32 %v1706_v61, %v966_v58  ;;  %v2720_v1 = vpop.f32.mrb[18].mxu0  ;;  %v969_v2 = vpop.f32.mrb[19].mxu1 }
 0x15d   : > { %2436 = vst [vmem:[%s3183_s17 + $0x38] sm:$0xff] %v2388_v59   ;;  %v1826_v3 = vadd.f32 %v2749_v60, %v3173_v34  ;;  %v2751_v4 = vadd.f32 %v2720_v1, %v2624_v62  ;;  %v1709_v5 = vpop.f32.mrb[19].mxu0 }
 0x15e   : > { %2435 = vst [vmem:[%s3183_s17 + $0x30] sm:$0xff] %v2383_v63   ;;  %v1824_v6 = vadd.f32 %v2750_v0, %v3173_v34  ;;  %v2752_v7 = vadd.f32 %v1709_v5, %v969_v2 }
 0x15f   : > { %v1827_v8 = vadd.f32 %v2751_v4, %v3173_v34  ;;  %v1858_v10 = vmax.f32 %v1826_v3, 0.0 }
 0x160   : > { %v1825_v9 = vadd.f32 %v2752_v7, %v3173_v34  ;;  %v1856_v13 = vmax.f32 %v1824_v6, 0.0 }
 0x161   : > { %v1859_v11 = vmax.f32 %v1827_v8, 0.0  ;;  %v2627_v12 = vpop.f32.mrb[20].mxu1 }
 0x162   : > { %v1857_v14 = vmax.f32 %v1825_v9, 0.0  ;;  %v2723_v15 = vpop.f32.mrb[20].mxu0  ;;  %v982_v16 = vpop.f32.mrb[21].mxu1 }
 0x163   : > { %v2398_v17 = vpack.c.bf16 %v1859_v11, %v1858_v10  ;;  %v2753_v18 = vadd.f32 %v2723_v15, %v2627_v12  ;;  %v1722_v19 = vpop.f32.mrb[21].mxu0  ;;  %v2628_v20 = vpop.f32.mrb[22].mxu1 }
 0x164   : > { %v2393_v21 = vpack.c.bf16 %v1857_v14, %v1856_v13  ;;  %v2754_v22 = vadd.f32 %v1722_v19, %v982_v16  ;;  %v2724_v23 = vpop.f32.mrb[22].mxu0  ;;  %v985_v24 = vpop.f32.mrb[23].mxu1 }
 0x165   : > { %2438 = vst [vmem:[%s3183_s17 + $0x48] sm:$0xff] %v2398_v17   ;;  %v1830_v25 = vadd.f32 %v2753_v18, %v3173_v34  ;;  %v2755_v26 = vadd.f32 %v2724_v23, %v2628_v20  ;;  %v1725_v27 = vpop.f32.mrb[23].mxu0 }
 0x166   : > { %2437 = vst [vmem:[%s3183_s17 + $0x40] sm:$0xff] %v2393_v21   ;;  %v1828_v28 = vadd.f32 %v2754_v22, %v3173_v34  ;;  %v2756_v29 = vadd.f32 %v1725_v27, %v985_v24 }
 0x167   : > { %v1831_v30 = vadd.f32 %v2755_v26, %v3173_v34  ;;  %v1862_v32 = vmax.f32 %v1830_v25, 0.0 }
 0x168   : > { %v1829_v31 = vadd.f32 %v2756_v29, %v3173_v34  ;;  %v1860_v36 = vmax.f32 %v1828_v28, 0.0 }
 0x169   : > { %v1863_v33 = vmax.f32 %v1831_v30, 0.0  ;;  %v2631_v35 = vpop.f32.mrb[24].mxu1 }
 0x16a   : > { %v1861_v37 = vmax.f32 %v1829_v31, 0.0  ;;  %v2727_v38 = vpop.f32.mrb[24].mxu0  ;;  %v998_v39 = vpop.f32.mrb[25].mxu1 }
 0x16b   : > { %v2408_v40 = vpack.c.bf16 %v1863_v33, %v1862_v32  ;;  %v2757_v41 = vadd.f32 %v2727_v38, %v2631_v35  ;;  %v1738_v42 = vpop.f32.mrb[25].mxu0  ;;  %v2632_v43 = vpop.f32.mrb[26].mxu1 }
 0x16c   : > { %v2403_v44 = vpack.c.bf16 %v1861_v37, %v1860_v36  ;;  %v2758_v45 = vadd.f32 %v1738_v42, %v998_v39  ;;  %v2728_v46 = vpop.f32.mrb[26].mxu0  ;;  %v1001_v47 = vpop.f32.mrb[27].mxu1 }
 0x16d   : > { %2440 = vst [vmem:[%s3183_s17 + $0x58] sm:$0xff] %v2408_v40   ;;  %v1834_v48 = vadd.f32 %v2757_v41, %v3173_v34  ;;  %v2759_v49 = vadd.f32 %v2728_v46, %v2632_v43  ;;  %v1741_v50 = vpop.f32.mrb[27].mxu0 }
 0x16e   : > { %2439 = vst [vmem:[%s3183_s17 + $0x50] sm:$0xff] %v2403_v44   ;;  %v1832_v51 = vadd.f32 %v2758_v45, %v3173_v34  ;;  %v2760_v52 = vadd.f32 %v1741_v50, %v1001_v47 }
 0x16f   : > { %v1835_v53 = vadd.f32 %v2759_v49, %v3173_v34  ;;  %v1866_v55 = vmax.f32 %v1834_v48, 0.0 }
 0x170   : > { %v1833_v54 = vadd.f32 %v2760_v52, %v3173_v34  ;;  %v1864_v58 = vmax.f32 %v1832_v51, 0.0 }
 0x171   : > { %v1867_v56 = vmax.f32 %v1835_v53, 0.0  ;;  %v2635_v57 = vpop.f32.mrb[28].mxu1 }
 0x172   : > { %v1865_v59 = vmax.f32 %v1833_v54, 0.0  ;;  %v2731_v60 = vpop.f32.mrb[28].mxu0  ;;  %v1014_v61 = vpop.f32.mrb[29].mxu1 }
 0x173   : > { %v2418_v62 = vpack.c.bf16 %v1867_v56, %v1866_v55  ;;  %v2761_v63 = vadd.f32 %v2731_v60, %v2635_v57  ;;  %v1754_v0 = vpop.f32.mrb[29].mxu0  ;;  %v2636_v1 = vpop.f32.mrb[30].mxu1 }
 0x174   : > { %v2413_v2 = vpack.c.bf16 %v1865_v59, %v1864_v58  ;;  %v2762_v3 = vadd.f32 %v1754_v0, %v1014_v61  ;;  %v2732_v4 = vpop.f32.mrb[30].mxu0  ;;  %v1017_v5 = vpop.f32.mrb[31].mxu1 }
 0x175   : > { %2442 = vst [vmem:[%s3183_s17 + $0x68] sm:$0xff] %v2418_v62   ;;  %v1838_v6 = vadd.f32 %v2761_v63, %v3173_v34  ;;  %v2763_v7 = vadd.f32 %v2732_v4, %v2636_v1  ;;  %v1757_v8 = vpop.f32.mrb[31].mxu0 }
 0x176   : > { %2441 = vst [vmem:[%s3183_s17 + $0x60] sm:$0xff] %v2413_v2   ;;  %v1836_v9 = vadd.f32 %v2762_v3, %v3173_v34  ;;  %v2764_v10 = vadd.f32 %v1757_v8, %v1017_v5 }
 0x177   : > { %v1839_v11 = vadd.f32 %v2763_v7, %v3173_v34  ;;  %v1870_v13 = vmax.f32 %v1838_v6, 0.0 }
 0x178   : > { %v1837_v12 = vadd.f32 %v2764_v10, %v3173_v34  ;;  %v1868_v15 = vmax.f32 %v1836_v9, 0.0 }
 0x179   : > { %v1871_v14 = vmax.f32 %v1839_v11, 0.0 }
 0x17a   : > { %v1869_v16 = vmax.f32 %v1837_v12, 0.0 }
 0x17b   : > { %v2428_v17 = vpack.c.bf16 %v1871_v14, %v1870_v13 }
 0x17c   : > { %v2423_v18 = vpack.c.bf16 %v1869_v16, %v1868_v15 }
 0x17d   : > { %2444 = vst [vmem:[%s3183_s17 + $0x78] sm:$0xff] %v2428_v17  }
 0x17e   : > { %2443 = vst [vmem:[%s3183_s17 + $0x70] sm:$0xff] %v2423_v18  }
 0x17f PF: > { %s16_s21 = sadd.s32 1, %s2939_s21  }
 0x180   : > { %p13_p4 = scmp.ge.s32.totalorder %s16_s21, 4  }
 0x182   :  { %15 = sbr.rel (!%p13_p4) target bundleno = 1 (0x1), region = 86 }

// kernel: hgstem_forward.5
= control target key start
LH: loop header
LB: loop body
LE: loop exit
PB: predicated region body
PF: predicated region fallthrough
CT: control target
= control target key end

     0   :  { %s5534_s17 = smov 0   ;;  %s6020_s0 = inlined_call_operand.vmem [shape: bf16[512,3], index: 0, kind: input, shape index: {}]   ;;  %s6021_s1 = inlined_call_operand.vmem [shape: bf16[512,3], index: 1, kind: input, shape index: {}]   ;;  %s6022_s2 = inlined_call_operand.vmem [shape: bf16[512,3], index: 2, kind: input, shape index: {}]   ;;  %s6023_s3 = inlined_call_operand.vmem [shape: bf16[512,3], index: 3, kind: input, shape index: {}]   ;;  %s6024_s4 = inlined_call_operand.vmem [shape: bf16[512,3], index: 4, kind: input, shape index: {}]   ;;  %s6025_s5 = inlined_call_operand.vmem [shape: bf16[512,3], index: 5, kind: input, shape index: {}]   ;;  %s6026_s6 = inlined_call_operand.vmem [shape: bf16[512,3], index: 6, kind: input, shape index: {}]   ;;  %s6027_s7 = inlined_call_operand.vmem [shape: bf16[512,3], index: 7, kind: input, shape index: {}]   ;;  %s6028_s8 = inlined_call_operand.vmem [shape: bf16[512,3], index: 8, kind: input, shape index: {}]   ;;  %s6029_s9 = inlined_call_operand.vmem [shape: bf16[9,3,128], index: 9, kind: input, shape index: {}]   ;;  %s6030_s10 = inlined_call_operand.vmem [shape: f32[1,128], index: 10, kind: input, shape index: {}]   ;;  %s6031_s11 = inlined_call_operand.vmem [shape: bf16[512,128], index: 11, kind: output, shape index: {}]  }
   0x1 LB: > { %s4112_s18 = sadd.s32 4294967295, %s5471_s17   ;;  %p4116_p0 = scmp.ge.s32.totalorder %s5471_s17, 1  ;;  %s5471_s17 = sphi %s5534_s17, %s21_s17  }
   0x2   : > { %p426_p1 = scmp.lt.s32.totalorder %s5471_s17, 3 }
   0x4   : > { %p427_p2 = pnand %p4116_p0, %p426_p1 }
   0x5   : > { %v4137_v0 = vld [vmem:[%s6029_s9 + $0x2] sm:$0x3] (!%p427_p2)  ;;  %vm763_vm0 = vcmask (!%p427_p2), 1040384   ;;  %vm764_vm1 = vcmask (!%p427_p2), 1041408   ;;  %s4117_s21 = sshll.u32 (!%p427_p2), %s4112_s18, 5  ;;  %v5473_v1 = vmov (!%p427_p2), 65535  }
   0x6   : > { %430 = sbr.rel (%p427_p2) target bundleno = 523 (0x20b), region = 64  ;;  %v765_v2 = vsel (!%p427_p2), %vm763_vm0, 4294967295, %v5473_v1  ;;  %v4268_v3 = vld [vmem:[%s6029_s9 + $0x8] sm:$0x3] (!%p427_p2)  ;;  %p507_p3 = scmp.lt.s32.totalorder (!%p427_p2), %s4117_s21, 63  ;;  %vm714_vm2 = vcmask (!%p427_p2), 23552  }
   0x7   : > { %v5548_v4 = vsel (!%p427_p2), %vm764_vm1, %v765_v2, 0  ;;  %v599_v5 = vld [vmem:[%s6029_s9] sm:$0x3] (!%p427_p2)  ;;  %v4301_v6 = vld [vmem:[%s6029_s9 + $0xa] sm:$0x3] (!%p427_p2) }
   0x8   : > { %v768_v7 = vand.u32 (!%p427_p2), %v4137_v0, %v5548_v4  ;;  %v5558_v8 = vand.u32 (!%p427_p2), %v4268_v3, %v5548_v4  ;;  %v1060_v9 = vand.u32 (!%p427_p2), %v5548_v4, %v599_v5  ;;  %v2460_v10 = vand.u32 (!%p427_p2), %v4301_v6, %v5548_v4  ;;  %v4334_v11 = vld [vmem:[%s6029_s9 + $0xc] sm:$0x3] (!%p427_p2)  ;;  %v4202_v12 = vld [vmem:[%s6029_s9 + $0x4] sm:$0x3] (!%p427_p2)  ;;  %v4367_v33 = vld [vmem:[%s6029_s9 + $0xe] sm:$0x3] (!%p427_p2) }
   0x9   : > { %v2818_v17 = vand.u32 (!%p427_p2), %v4334_v11, %v5548_v4  ;;  %v5594_v19 = vand.u32 (!%p427_p2), %v4202_v12, %v5548_v4  ;;  %v5645_v38 = vand.u32 (!%p427_p2), %v4367_v33, %v5548_v4  ;;  %v4235_v51 = vld [vmem:[%s6029_s9 + $0x6] sm:$0x3] (!%p427_p2) }
   0xa   : > { %4748 = vmatprep.subr.bf16.mxu1 (!%p427_p2), %v768_v7  ;;  %4884 = vmatprep.subr.bf16.mxu0 (!%p427_p2), %v5558_v8  ;;  %v5696_v56 = vand.u32 (!%p427_p2), %v4235_v51, %v5548_v4 }
   0xb   : > { %4749 = vmatpush3.bf16.msra.mxu1 (!%p427_p2), %v768_v7  ;;  %4885 = vmatpush3.bf16.msra.mxu0 (!%p427_p2), %v5558_v8 }
   0xc   : > { %4782 = vmatprep.subr.bf16.mxu1 (!%p427_p2), %v1060_v9  ;;  %4918 = vmatprep.subr.bf16.mxu0 (!%p427_p2), %v2460_v10 }
   0xd   : > { %s6033_s21 = smov (!%p507_p3, %s4117_s21), 63 }
   0xe   : > { %s5563_s28 = sshll.u32 %s6033_s21, 2 }
   0xf   : > { %s5570_s12 = scalar_lea.vmem %s6021_s1, %s5563_s28  ;;  %s5576_s15 = scalar_lea.vmem %s6024_s4, %s5563_s28 }
  0x10   : > { %v5321_v13 = vld [vmem:[%s5570_s12] sm:$0xff]   ;;  %v5323_v15 = vld [vmem:[%s5570_s12 + $0x8] sm:$0xff]   ;;  %v5325_v18 = vld [vmem:[%s5570_s12 + $0x10] sm:$0xff]   ;;  %s5615_s23 = scalar_lea.vmem %s6025_s5, %s5563_s28  ;;  %s5639_s29 = scalar_lea.vmem %s6020_s0, %s5563_s28 }
  0x11   : > { %v5322_v14 = vld [vmem:[%s5576_s15] sm:$0xff]   ;;  %4750 = vmatprep.mubr.msk.bf16.mxu1 %vm714_vm2, %v5321_v13  ;;  %v5324_v16 = vld [vmem:[%s5576_s15 + $0x8] sm:$0xff]   ;;  %v5326_v20 = vld [vmem:[%s5576_s15 + $0x10] sm:$0xff]   ;;  %s5666_s14 = scalar_lea.vmem %s6026_s6, %s5563_s28  ;;  %s5690_s20 = scalar_lea.vmem %s6022_s2, %s5563_s28 }
  0x12   : > { %4886 = vmatprep.mubr.msk.bf16.mxu0 %vm714_vm2, %v5322_v14  ;;  %4751 = vmatmul.mubr.msk.bf16.vlgmr.msra.gmra.mrb[0].mxu1 %vm714_vm2, %v5323_v15  ;;  %v5327_v21 = vld [vmem:[%s5570_s12 + $0x18] sm:$0xff]   ;;  %v5329_v23 = vld [vmem:[%s5570_s12 + $0x20] sm:$0xff]   ;;  %v5331_v25 = vld [vmem:[%s5570_s12 + $0x28] sm:$0xff]   ;;  %s5718_s24 = scalar_lea.vmem %s6027_s7, %s5563_s28  ;;  %s5770_s18 = scalar_lea.vmem %s6028_s8, %s5563_s28 }
  0x13   : > { %4783 = vmatpush3.bf16.msra.mxu1 %v1060_v9  ;;  %4887 = vmatmul.mubr.msk.bf16.vlgmr.msra.gmra.mrb[0].mxu0 %vm714_vm2, %v5324_v16  ;;  %v5328_v22 = vld [vmem:[%s5576_s15 + $0x18] sm:$0xff]   ;;  %v5330_v24 = vld [vmem:[%s5576_s15 + $0x20] sm:$0xff]   ;;  %v5332_v26 = vld [vmem:[%s5576_s15 + $0x28] sm:$0xff]   ;;  %s5967_s19 = scalar_lea.vmem %s6031_s11, %s5563_s28 }
  0x14   : > { %4919 = vmatpush3.bf16.msra.mxu0 %v2460_v10  ;;  %4754 = vmatprep.mubr.msk.bf16.mxu1 %vm714_vm2, %v5325_v18  ;;  %v5333_v27 = vld [vmem:[%s5570_s12 + $0x30] sm:$0xff]   ;;  %v5335_v29 = vld [vmem:[%s5570_s12 + $0x38] sm:$0xff]   ;;  %v5337_v31 = vld [vmem:[%s5570_s12 + $0x40] sm:$0xff]  }
  0x15   : > { %4890 = vmatprep.mubr.msk.bf16.mxu0 %vm714_vm2, %v5326_v20  ;;  %4952 = vmatprep.subr.bf16.mxu0 %v2818_v17  ;;  %v5334_v28 = vld [vmem:[%s5576_s15 + $0x30] sm:$0xff]   ;;  %v5336_v30 = vld [vmem:[%s5576_s15 + $0x38] sm:$0xff]   ;;  %v5338_v32 = vld [vmem:[%s5615_s23] sm:$0xff]  }
  0x16   : > { %4816 = vmatprep.subr.bf16.mxu1 %v5594_v19  ;;  %v5339_v34 = vld [vmem:[%s5570_s12 + $0x48] sm:$0xff]   ;;  %v5341_v36 = vld [vmem:[%s5570_s12 + $0x50] sm:$0xff]   ;;  %v5343_v39 = vld [vmem:[%s5570_s12 + $0x58] sm:$0xff]  }
  0x17   : > { %v5340_v35 = vld [vmem:[%s5615_s23 + $0x8] sm:$0xff]   ;;  %v5342_v37 = vld [vmem:[%s5615_s23 + $0x10] sm:$0xff]   ;;  %v5344_v40 = vld [vmem:[%s5615_s23 + $0x18] sm:$0xff]  }
  0x18   : > { %v5345_v41 = vld [vmem:[%s5570_s12 + $0x60] sm:$0xff]   ;;  %v5347_v43 = vld [vmem:[%s5570_s12 + $0x68] sm:$0xff]   ;;  %v5349_v45 = vld [vmem:[%s5570_s12 + $0x70] sm:$0xff]  }
  0x19   : > { %v5346_v42 = vld [vmem:[%s5615_s23 + $0x20] sm:$0xff]   ;;  %v5348_v44 = vld [vmem:[%s5615_s23 + $0x28] sm:$0xff]   ;;  %v5350_v46 = vld [vmem:[%s5615_s23 + $0x30] sm:$0xff]  }
  0x1a   : > { %4755 = vmatmul.mubr.msk.bf16.gmra.mrb[4].mxu1 %vm714_vm2, %v5327_v21  ;;  %v5351_v47 = vld [vmem:[%s5570_s12 + $0x78] sm:$0xff]   ;;  %v5353_v49 = vld [vmem:[%s5639_s29] sm:$0xff]   ;;  %v5355_v52 = vld [vmem:[%s5639_s29 + $0x8] sm:$0xff]  }
  0x1b   : > { %4891 = vmatmul.mubr.msk.bf16.gmra.mrb[4].mxu0 %vm714_vm2, %v5328_v22  ;;  %4758 = vmatprep.mubr.msk.bf16.mxu1 %vm714_vm2, %v5329_v23  ;;  %v5352_v48 = vld [vmem:[%s5615_s23 + $0x38] sm:$0xff]   ;;  %v5354_v50 = vld [vmem:[%s5615_s23 + $0x40] sm:$0xff]   ;;  %v5356_v53 = vld [vmem:[%s5615_s23 + $0x48] sm:$0xff]  }
  0x1c   : > { %4894 = vmatprep.mubr.msk.bf16.mxu0 %vm714_vm2, %v5330_v24  ;;  %v5357_v54 = vld [vmem:[%s5639_s29 + $0x10] sm:$0xff]   ;;  %v5359_v57 = vld [vmem:[%s5639_s29 + $0x18] sm:$0xff]   ;;  %v5361_v59 = vld [vmem:[%s5639_s29 + $0x20] sm:$0xff]  }
  0x1d   : > { %v5358_v55 = vld [vmem:[%s5615_s23 + $0x50] sm:$0xff]   ;;  %v5360_v58 = vld [vmem:[%s5615_s23 + $0x58] sm:$0xff]   ;;  %v5362_v60 = vld [vmem:[%s5615_s23 + $0x60] sm:$0xff]  }
  0x1e   : > { %v5363_v61 = vld [vmem:[%s5639_s29 + $0x28] sm:$0xff]   ;;  %v5365_v63 = vld [vmem:[%s5639_s29 + $0x30] sm:$0xff]   ;;  %v5367_v1 = vld [vmem:[%s5639_s29 + $0x38] sm:$0xff]  }
  0x1f   : > { %v5364_v62 = vld [vmem:[%s5615_s23 + $0x68] sm:$0xff]   ;;  %v5366_v0 = vld [vmem:[%s5615_s23 + $0x70] sm:$0xff]   ;;  %v5368_v2 = vld [vmem:[%s5615_s23 + $0x78] sm:$0xff]   ;;  %s5740_s23 = scalar_lea.vmem %s6023_s3, %s5563_s28 }
  0x20   : > { %v5369_v3 = vld [vmem:[%s5639_s29 + $0x40] sm:$0xff]   ;;  %v5371_v6 = vld [vmem:[%s5639_s29 + $0x48] sm:$0xff]   ;;  %v4400_v9 = vld [vmem:[%s6029_s9 + $0x10] sm:$0x3] }
  0x21   : > { %v5370_v5 = vld [vmem:[%s5666_s14] sm:$0xff]   ;;  %v5372_v7 = vld [vmem:[%s5666_s14 + $0x8] sm:$0xff]   ;;  %v5373_v10 = vld [vmem:[%s5639_s29 + $0x50] sm:$0xff]   ;;  %v5748_v12 = vand.u32 %v4400_v9, %v5548_v4 }
  0x22   : > { %4759 = vmatmul.mubr.msk.bf16.gmra.mrb[8].mxu1 %vm714_vm2, %v5331_v25  ;;  %v5374_v11 = vld [vmem:[%s5666_s14 + $0x10] sm:$0xff]   ;;  %v5375_v13 = vld [vmem:[%s5639_s29 + $0x58] sm:$0xff]   ;;  %v5377_v4 = vld [vmem:[%s5639_s29 + $0x60] sm:$0xff]  }
  0x23   : > { %4895 = vmatmul.mubr.msk.bf16.gmra.mrb[8].mxu0 %vm714_vm2, %v5332_v26  ;;  %4762 = vmatprep.mubr.msk.bf16.mxu1 %vm714_vm2, %v5333_v27  ;;  %v5376_v14 = vld [vmem:[%s5666_s14 + $0x18] sm:$0xff]   ;;  %v5378_v15 = vld [vmem:[%s5666_s14 + $0x20] sm:$0xff]   ;;  %v5379_v16 = vld [vmem:[%s5639_s29 + $0x68] sm:$0xff]  }
  0x24   : > { %4898 = vmatprep.mubr.msk.bf16.mxu0 %vm714_vm2, %v5334_v28  ;;  %v5381_v18 = vld [vmem:[%s5639_s29 + $0x70] sm:$0xff]   ;;  %v5383_v20 = vld [vmem:[%s5639_s29 + $0x78] sm:$0xff]   ;;  %v5385_v22 = vld [vmem:[%s5690_s20] sm:$0xff]  }
  0x25   : > { %v5384_v21 = vld [vmem:[%s5666_s14 + $0x38] sm:$0xff]   ;;  %v5386_v23 = vld [vmem:[%s5666_s14 + $0x40] sm:$0xff]   ;;  %v5387_v24 = vld [vmem:[%s5690_s20 + $0x8] sm:$0xff]  }
  0x26   : > { %v5388_v25 = vld [vmem:[%s5666_s14 + $0x48] sm:$0xff]   ;;  %v5389_v26 = vld [vmem:[%s5690_s20 + $0x10] sm:$0xff]   ;;  %v5391_v28 = vld [vmem:[%s5690_s20 + $0x18] sm:$0xff]  }
  0x27   : > { %v5390_v27 = vld [vmem:[%s5666_s14 + $0x50] sm:$0xff]   ;;  %v5396_v33 = vld [vmem:[%s5666_s14 + $0x68] sm:$0xff]  }
  0x28   : > { %v5414_v51 = vld [vmem:[%s5718_s24 + $0x30] sm:$0xff]   ;;  %v5435_v9 = vld [vmem:[%s5740_s23 + $0x48] sm:$0xff]  }
  0x2a   : > { %4763 = vmatmul.mubr.msk.bf16.gmra.mrb[12].mxu1 %vm714_vm2, %v5335_v29  ;;  %v5392_v29 = vld [vmem:[%s5666_s14 + $0x58] sm:$0xff]  }
  0x2b   : > { %4899 = vmatmul.mubr.msk.bf16.gmra.mrb[12].mxu0 %vm714_vm2, %v5336_v30  ;;  %4766 = vmatprep.mubr.msk.bf16.mxu1 %vm714_vm2, %v5337_v31  ;;  %v5393_v30 = vld [vmem:[%s5690_s20 + $0x20] sm:$0xff]  }
  0x2c   : > { %4920 = vmatprep.mubr.msk.bf16.mxu0 %vm714_vm2, %v5338_v32  ;;  %v5394_v31 = vld [vmem:[%s5666_s14 + $0x60] sm:$0xff]   ;;  %v5395_v32 = vld [vmem:[%s5690_s20 + $0x28] sm:$0xff]  }
  0x32   : > { %4767 = vmatmul.mubr.msk.bf16.gmra.mrb[16].mxu1 %vm714_vm2, %v5339_v34  ;;  %v5397_v34 = vld [vmem:[%s5690_s20 + $0x30] sm:$0xff]  }
  0x33   : > { %4921 = vmatmul.mubr.msk.bf16.vlgmr.msra.gmra.mrb[0].mxu0 %vm714_vm2, %v5340_v35  ;;  %4770 = vmatprep.mubr.msk.bf16.mxu1 %vm714_vm2, %v5341_v36  ;;  %v5398_v35 = vld [vmem:[%s5666_s14 + $0x70] sm:$0xff]   ;;  %v5399_v36 = vld [vmem:[%s5690_s20 + $0x38] sm:$0xff]  }
  0x34   : > { %4953 = vmatpush3.bf16.msra.mxu0 %v2818_v17  ;;  %4924 = vmatprep.mubr.msk.bf16.mxu0 %vm714_vm2, %v5342_v37  ;;  %v5380_v17 = vld [vmem:[%s5666_s14 + $0x28] sm:$0xff]   ;;  %v5400_v37 = vld [vmem:[%s5666_s14 + $0x78] sm:$0xff]  }
  0x35   : > { %4986 = vmatprep.subr.bf16.mxu0 %v5645_v38 }
  0x3a   : > { %4771 = vmatmul.mubr.msk.bf16.gmra.mrb[20].mxu1 %vm714_vm2, %v5343_v39  ;;  %v5402_v39 = vld [vmem:[%s5718_s24] sm:$0xff]  }
  0x3b   : > { %4925 = vmatmul.mubr.msk.bf16.gmra.mrb[4].mxu0 %vm714_vm2, %v5344_v40  ;;  %4774 = vmatprep.mubr.msk.bf16.mxu1 %vm714_vm2, %v5345_v41  ;;  %v5403_v40 = vld [vmem:[%s5690_s20 + $0x48] sm:$0xff]  }
  0x3c   : > { %4928 = vmatprep.mubr.msk.bf16.mxu0 %vm714_vm2, %v5346_v42  ;;  %v5404_v41 = vld [vmem:[%s5718_s24 + $0x8] sm:$0xff]   ;;  %v5405_v42 = vld [vmem:[%s5690_s20 + $0x50] sm:$0xff]  }
  0x42   : > { %4775 = vmatmul.mubr.msk.bf16.gmra.mrb[24].mxu1 %vm714_vm2, %v5347_v43  ;;  %v5406_v43 = vld [vmem:[%s5718_s24 + $0x10] sm:$0xff]  }
  0x43   : > { %4929 = vmatmul.mubr.msk.bf16.gmra.mrb[8].mxu0 %vm714_vm2, %v5348_v44  ;;  %4778 = vmatprep.mubr.msk.bf16.mxu1 %vm714_vm2, %v5349_v45  ;;  %v5407_v44 = vld [vmem:[%s5690_s20 + $0x58] sm:$0xff]  }
  0x44   : > { %4932 = vmatprep.mubr.msk.bf16.mxu0 %vm714_vm2, %v5350_v46  ;;  %v5408_v45 = vld [vmem:[%s5718_s24 + $0x18] sm:$0xff]   ;;  %v5409_v46 = vld [vmem:[%s5690_s20 + $0x60] sm:$0xff]  }
  0x4a   : > { %4779 = vmatmul.mubr.msk.bf16.gmra.mrb[28].mxu1 %vm714_vm2, %v5351_v47  ;;  %v5410_v47 = vld [vmem:[%s5718_s24 + $0x20] sm:$0xff]  }
  0x4b   : > { %4933 = vmatmul.mubr.msk.bf16.gmra.mrb[12].mxu0 %vm714_vm2, %v5352_v48  ;;  %4784 = vmatprep.mubr.msk.bf16.mxu1 %vm714_vm2, %v5353_v49  ;;  %v5411_v48 = vld [vmem:[%s5690_s20 + $0x68] sm:$0xff]  }
  0x4c   : > { %4936 = vmatprep.mubr.msk.bf16.mxu0 %vm714_vm2, %v5354_v50  ;;  %v5412_v49 = vld [vmem:[%s5718_s24 + $0x28] sm:$0xff]   ;;  %v5413_v50 = vld [vmem:[%s5690_s20 + $0x70] sm:$0xff]  }
  0x52   : > { %4785 = vmatmul.mubr.msk.bf16.vlgmr.msra.gmra.mrb[0].mxu1 %vm714_vm2, %v5355_v52  ;;  %v5415_v52 = vld [vmem:[%s5690_s20 + $0x78] sm:$0xff]  }
  0x53   : > { %4817 = vmatpush3.bf16.msra.mxu1 %v5594_v19  ;;  %4937 = vmatmul.mubr.msk.bf16.gmra.mrb[16].mxu0 %vm714_vm2, %v5356_v53  ;;  %v5382_v19 = vld [vmem:[%s5666_s14 + $0x30] sm:$0xff]   ;;  %v5416_v53 = vld [vmem:[%s5718_s24 + $0x38] sm:$0xff]  }
  0x54   : > { %4788 = vmatprep.mubr.msk.bf16.mxu1 %vm714_vm2, %v5357_v54  ;;  %4940 = vmatprep.mubr.msk.bf16.mxu0 %vm714_vm2, %v5358_v55  ;;  %v5417_v54 = vld [vmem:[%s5740_s23] sm:$0xff]  }
  0x55   : > { %4850 = vmatprep.subr.bf16.mxu1 %v5696_v56  ;;  %v5418_v55 = vld [vmem:[%s5718_s24 + $0x40] sm:$0xff]  }
  0x5a   : > { %4789 = vmatmul.mubr.msk.bf16.gmra.mrb[4].mxu1 %vm714_vm2, %v5359_v57  ;;  %v5420_v57 = vld [vmem:[%s5718_s24 + $0x48] sm:$0xff]  }
  0x5b   : > { %4941 = vmatmul.mubr.msk.bf16.gmra.mrb[20].mxu0 %vm714_vm2, %v5360_v58  ;;  %4792 = vmatprep.mubr.msk.bf16.mxu1 %vm714_vm2, %v5361_v59  ;;  %v5421_v58 = vld [vmem:[%s5740_s23 + $0x10] sm:$0xff]  }
  0x5c   : > { %4944 = vmatprep.mubr.msk.bf16.mxu0 %vm714_vm2, %v5362_v60  ;;  %v5422_v59 = vld [vmem:[%s5718_s24 + $0x50] sm:$0xff]   ;;  %v5423_v60 = vld [vmem:[%s5740_s23 + $0x18] sm:$0xff]  }
  0x62   : > { %4793 = vmatmul.mubr.msk.bf16.gmra.mrb[8].mxu1 %vm714_vm2, %v5363_v61  ;;  %v5424_v61 = vld [vmem:[%s5718_s24 + $0x58] sm:$0xff]  }
  0x63   : > { %4945 = vmatmul.mubr.msk.bf16.gmra.mrb[24].mxu0 %vm714_vm2, %v5364_v62  ;;  %4796 = vmatprep.mubr.msk.bf16.mxu1 %vm714_vm2, %v5365_v63  ;;  %v5425_v62 = vld [vmem:[%s5740_s23 + $0x20] sm:$0xff]  }
  0x64   : > { %4948 = vmatprep.mubr.msk.bf16.mxu0 %vm714_vm2, %v5366_v0  ;;  %v5426_v63 = vld [vmem:[%s5718_s24 + $0x60] sm:$0xff]   ;;  %v5428_v0 = vld [vmem:[%s5718_s24 + $0x68] sm:$0xff]  }
  0x6a   : > { %4797 = vmatmul.mubr.msk.bf16.gmra.mrb[12].mxu1 %vm714_vm2, %v5367_v1  ;;  %v5429_v1 = vld [vmem:[%s5740_s23 + $0x30] sm:$0xff]  }
  0x6b   : > { %4949 = vmatmul.mubr.msk.bf16.gmra.mrb[28].mxu0 %vm714_vm2, %v5368_v2  ;;  %4800 = vmatprep.mubr.msk.bf16.mxu1 %vm714_vm2, %v5369_v3  ;;  %v5430_v2 = vld [vmem:[%s5718_s24 + $0x70] sm:$0xff]   ;;  %v5431_v3 = vld [vmem:[%s5740_s23 + $0x38] sm:$0xff]  }
  0x6c   : > { %4954 = vmatprep.mubr.msk.bf16.mxu0 %vm714_vm2, %v5370_v5  ;;  %v5432_v5 = vld [vmem:[%s5718_s24 + $0x78] sm:$0xff]  }
  0x72   : > { %4801 = vmatmul.mubr.msk.bf16.gmra.mrb[16].mxu1 %vm714_vm2, %v5371_v6  ;;  %v5433_v6 = vld [vmem:[%s5740_s23 + $0x40] sm:$0xff]  }
  0x73   : > { %4955 = vmatmul.mubr.msk.bf16.vlgmr.msra.gmra.mrb[0].mxu0 %vm714_vm2, %v5372_v7  ;;  %4804 = vmatprep.mubr.msk.bf16.mxu1 %vm714_vm2, %v5373_v10  ;;  %v5434_v7 = vld [vmem:[%s5770_s18] sm:$0xff]   ;;  %v5436_v10 = vld [vmem:[%s5770_s18 + $0x8] sm:$0xff]  }
  0x74   : > { %4987 = vmatpush3.bf16.msra.mxu0 %v5645_v38  ;;  %4958 = vmatprep.mubr.msk.bf16.mxu0 %vm714_vm2, %v5374_v11  ;;  %v5401_v38 = vld [vmem:[%s5690_s20 + $0x40] sm:$0xff]   ;;  %v5437_v11 = vld [vmem:[%s5740_s23 + $0x50] sm:$0xff]  }
  0x75   : > { %5020 = vmatprep.subr.bf16.mxu0 %v5748_v12 }
  0x7a   : > { %4805 = vmatmul.mubr.msk.bf16.gmra.mrb[20].mxu1 %vm714_vm2, %v5375_v13  ;;  %v5439_v13 = vld [vmem:[%s5740_s23 + $0x58] sm:$0xff]  }
  0x7b   : > { %4959 = vmatmul.mubr.msk.bf16.gmra.mrb[4].mxu0 %vm714_vm2, %v5376_v14  ;;  %4808 = vmatprep.mubr.msk.bf16.mxu1 %vm714_vm2, %v5377_v4  ;;  %v5440_v14 = vld [vmem:[%s5770_s18 + $0x18] sm:$0xff]   ;;  %v5441_v4 = vld [vmem:[%s5740_s23 + $0x60] sm:$0xff]  }
  0x7c   : > { %4962 = vmatprep.mubr.msk.bf16.mxu0 %vm714_vm2, %v5378_v15  ;;  %v5442_v15 = vld [vmem:[%s5770_s18 + $0x20] sm:$0xff]  }
  0x82   : > { %4809 = vmatmul.mubr.msk.bf16.gmra.mrb[24].mxu1 %vm714_vm2, %v5379_v16  ;;  %v5443_v16 = vld [vmem:[%s5740_s23 + $0x68] sm:$0xff]  }
  0x83   : > { %4963 = vmatmul.mubr.msk.bf16.gmra.mrb[8].mxu0 %vm714_vm2, %v5380_v17  ;;  %4812 = vmatprep.mubr.msk.bf16.mxu1 %vm714_vm2, %v5381_v18  ;;  %v5444_v17 = vld [vmem:[%s5770_s18 + $0x28] sm:$0xff]   ;;  %v5445_v18 = vld [vmem:[%s5740_s23 + $0x70] sm:$0xff]  }
  0x84   : > { %4966 = vmatprep.mubr.msk.bf16.mxu0 %vm714_vm2, %v5382_v19  ;;  %v5446_v19 = vld [vmem:[%s5770_s18 + $0x30] sm:$0xff]  }
  0x8a   : > { %4813 = vmatmul.mubr.msk.bf16.gmra.mrb[28].mxu1 %vm714_vm2, %v5383_v20  ;;  %v5447_v20 = vld [vmem:[%s5740_s23 + $0x78] sm:$0xff]  }
  0x8b   : > { %4967 = vmatmul.mubr.msk.bf16.gmra.mrb[12].mxu0 %vm714_vm2, %v5384_v21  ;;  %4818 = vmatprep.mubr.msk.bf16.mxu1 %vm714_vm2, %v5385_v22  ;;  %v5448_v21 = vld [vmem:[%s5770_s18 + $0x38] sm:$0xff]   ;;  %v5449_v22 = vld [vmem:[%s5576_s15 + $0x40] sm:$0xff]  }
  0x8c   : > { %4970 = vmatprep.mubr.msk.bf16.mxu0 %vm714_vm2, %v5386_v23  ;;  %v5450_v23 = vld [vmem:[%s5770_s18 + $0x40] sm:$0xff]  }
  0x92   : > { %4819 = vmatmul.mubr.msk.bf16.vlgmr.msra.gmra.mrb[0].mxu1 %vm714_vm2, %v5387_v24  ;;  %v5451_v24 = vld [vmem:[%s5576_s15 + $0x48] sm:$0xff]  }
  0x93   : > { %4851 = vmatpush3.bf16.msra.mxu1 %v5696_v56  ;;  %4971 = vmatmul.mubr.msk.bf16.gmra.mrb[16].mxu0 %vm714_vm2, %v5388_v25  ;;  %v5419_v56 = vld [vmem:[%s5740_s23 + $0x8] sm:$0xff]  }
  0x94   : > { %4822 = vmatprep.mubr.msk.bf16.mxu1 %vm714_vm2, %v5389_v26  ;;  %4974 = vmatprep.mubr.msk.bf16.mxu0 %vm714_vm2, %v5390_v27  ;;  %v5452_v25 = vld [vmem:[%s5770_s18 + $0x48] sm:$0xff]   ;;  %v5453_v26 = vld [vmem:[%s5576_s15 + $0x50] sm:$0xff]  }
  0x95   : > { %5054 = vmatprep.subr.bf16.mxu1 %v5558_v8  ;;  %v5454_v27 = vld [vmem:[%s5770_s18 + $0x50] sm:$0xff]  }
  0x9a   : > { %4823 = vmatmul.mubr.msk.bf16.gmra.mrb[4].mxu1 %vm714_vm2, %v5391_v28  ;;  %v5455_v28 = vld [vmem:[%s5576_s15 + $0x58] sm:$0xff]  }
  0x9b   : > { %4975 = vmatmul.mubr.msk.bf16.gmra.mrb[20].mxu0 %vm714_vm2, %v5392_v29  ;;  %4826 = vmatprep.mubr.msk.bf16.mxu1 %vm714_vm2, %v5393_v30  ;;  %v5456_v29 = vld [vmem:[%s5770_s18 + $0x58] sm:$0xff]   ;;  %v5457_v30 = vld [vmem:[%s5576_s15 + $0x60] sm:$0xff]  }
  0x9c   : > { %4978 = vmatprep.mubr.msk.bf16.mxu0 %vm714_vm2, %v5394_v31  ;;  %v5458_v31 = vld [vmem:[%s5770_s18 + $0x60] sm:$0xff]  }
  0xa2   : > { %4827 = vmatmul.mubr.msk.bf16.gmra.mrb[8].mxu1 %vm714_vm2, %v5395_v32  ;;  %v5459_v32 = vld [vmem:[%s5576_s15 + $0x68] sm:$0xff]  }
  0xa3   : > { %4979 = vmatmul.mubr.msk.bf16.gmra.mrb[24].mxu0 %vm714_vm2, %v5396_v33  ;;  %4830 = vmatprep.mubr.msk.bf16.mxu1 %vm714_vm2, %v5397_v34  ;;  %v5460_v33 = vld [vmem:[%s5770_s18 + $0x68] sm:$0xff]   ;;  %v5461_v34 = vld [vmem:[%s5576_s15 + $0x70] sm:$0xff]  }
  0xa4   : > { %4982 = vmatprep.mubr.msk.bf16.mxu0 %vm714_vm2, %v5398_v35  ;;  %v5462_v35 = vld [vmem:[%s5770_s18 + $0x70] sm:$0xff]  }
  0xaa   : > { %4831 = vmatmul.mubr.msk.bf16.gmra.mrb[12].mxu1 %vm714_vm2, %v5399_v36  ;;  %v5463_v36 = vld [vmem:[%s5576_s15 + $0x78] sm:$0xff]  }
  0xab   : > { %4983 = vmatmul.mubr.msk.bf16.gmra.mrb[28].mxu0 %vm714_vm2, %v5400_v37  ;;  %4834 = vmatprep.mubr.msk.bf16.mxu1 %vm714_vm2, %v5401_v38  ;;  %v5464_v37 = vld [vmem:[%s5770_s18 + $0x78] sm:$0xff]  }
  0xac   : > { %4988 = vmatprep.mubr.msk.bf16.mxu0 %vm714_vm2, %v5402_v39 }
  0xb2   : > { %4835 = vmatmul.mubr.msk.bf16.gmra.mrb[16].mxu1 %vm714_vm2, %v5403_v40 }
  0xb3   : > { %4989 = vmatmul.mubr.msk.bf16.vlgmr.msra.gmra.mrb[0].mxu0 %vm714_vm2, %v5404_v41  ;;  %4838 = vmatprep.mubr.msk.bf16.mxu1 %vm714_vm2, %v5405_v42 }
  0xb4   : > { %5021 = vmatpush3.bf16.msra.mxu0 %v5748_v12  ;;  %4992 = vmatprep.mubr.msk.bf16.mxu0 %vm714_vm2, %v5406_v43  ;;  %v5438_v12 = vld [vmem:[%s5770_s18 + $0x10] sm:$0xff]  }
  0xba   : > { %4839 = vmatmul.mubr.msk.bf16.gmra.mrb[20].mxu1 %vm714_vm2, %v5407_v44 }
  0xbb   : > { %4993 = vmatmul.mubr.msk.bf16.gmra.mrb[4].mxu0 %vm714_vm2, %v5408_v45  ;;  %4842 = vmatprep.mubr.msk.bf16.mxu1 %vm714_vm2, %v5409_v46 }
  0xbc   : > { %4996 = vmatprep.mubr.msk.bf16.mxu0 %vm714_vm2, %v5410_v47 }
  0xc2   : > { %4843 = vmatmul.mubr.msk.bf16.gmra.mrb[24].mxu1 %vm714_vm2, %v5411_v48 }
  0xc3   : > { %4997 = vmatmul.mubr.msk.bf16.gmra.mrb[8].mxu0 %vm714_vm2, %v5412_v49  ;;  %4846 = vmatprep.mubr.msk.bf16.mxu1 %vm714_vm2, %v5413_v50 }
  0xc4   : > { %5000 = vmatprep.mubr.msk.bf16.mxu0 %vm714_vm2, %v5414_v51 }
  0xca   : > { %4847 = vmatmul.mubr.msk.bf16.gmra.mrb[28].mxu1 %vm714_vm2, %v5415_v52 }
  0xcb   : > { %5001 = vmatmul.mubr.msk.bf16.gmra.mrb[12].mxu0 %vm714_vm2, %v5416_v53  ;;  %4852 = vmatprep.mubr.msk.bf16.mxu1 %vm714_vm2, %v5417_v54 }
  0xcc   : > { %5004 = vmatprep.mubr.msk.bf16.mxu0 %vm714_vm2, %v5418_v55  ;;  %v5957_v55 = vld [vmem:[%s6030_s10] ss:$0 sm:$0xff] }
  0xd2   : > { %4853 = vmatmul.mubr.msk.bf16.vlgmr.msra.gmra.mrb[0].mxu1 %vm714_vm2, %v5419_v56 }
  0xd3   : > { %5055 = vmatpush3.bf16.msra.mxu1 %v5558_v8  ;;  %5005 = vmatmul.mubr.msk.bf16.gmra.mrb[16].mxu0 %vm714_vm2, %v5420_v57  ;;  %v5427_v8 = vld [vmem:[%s5740_s23 + $0x28] sm:$0xff]  }
  0xd4   : > { %4856 = vmatprep.mubr.msk.bf16.mxu1 %vm714_vm2, %v5421_v58  ;;  %5008 = vmatprep.mubr.msk.bf16.mxu0 %vm714_vm2, %v5422_v59 }
  0xda   : > { %4857 = vmatmul.mubr.msk.bf16.gmra.mrb[4].mxu1 %vm714_vm2, %v5423_v60 }
  0xdb   : > { %5009 = vmatmul.mubr.msk.bf16.gmra.mrb[20].mxu0 %vm714_vm2, %v5424_v61  ;;  %4860 = vmatprep.mubr.msk.bf16.mxu1 %vm714_vm2, %v5425_v62 }
  0xdc   : > { %5012 = vmatprep.mubr.msk.bf16.mxu0 %vm714_vm2, %v5426_v63 }
  0xe2   : > { %4861 = vmatmul.mubr.msk.bf16.gmra.mrb[8].mxu1 %vm714_vm2, %v5427_v8 }
  0xe3   : > { %5013 = vmatmul.mubr.msk.bf16.gmra.mrb[24].mxu0 %vm714_vm2, %v5428_v0  ;;  %4864 = vmatprep.mubr.msk.bf16.mxu1 %vm714_vm2, %v5429_v1 }
  0xe4   : > { %5016 = vmatprep.mubr.msk.bf16.mxu0 %vm714_vm2, %v5430_v2 }
  0xea   : > { %4865 = vmatmul.mubr.msk.bf16.gmra.mrb[12].mxu1 %vm714_vm2, %v5431_v3 }
  0xeb   : > { %5017 = vmatmul.mubr.msk.bf16.gmra.mrb[28].mxu0 %vm714_vm2, %v5432_v5  ;;  %4868 = vmatprep.mubr.msk.bf16.mxu1 %vm714_vm2, %v5433_v6 }
  0xec   : > { %5022 = vmatprep.mubr.msk.bf16.mxu0 %vm714_vm2, %v5434_v7 }
  0xf2   : > { %4869 = vmatmul.mubr.msk.bf16.gmra.mrb[16].mxu1 %vm714_vm2, %v5435_v9 }
  0xf3   : > { %5023 = vmatmul.mubr.msk.bf16.vlgmr.msra.gmra.mrb[0].mxu0 %vm714_vm2, %v5436_v10  ;;  %4872 = vmatprep.mubr.msk.bf16.mxu1 %vm714_vm2, %v5437_v11 }
  0xf4   : > { %5026 = vmatprep.mubr.msk.bf16.mxu0 %vm714_vm2, %v5438_v12 }
  0xfa   : > { %4873 = vmatmul.mubr.msk.bf16.gmra.mrb[20].mxu1 %vm714_vm2, %v5439_v13 }
  0xfb   : > { %5027 = vmatmul.mubr.msk.bf16.gmra.mrb[4].mxu0 %vm714_vm2, %v5440_v14  ;;  %4876 = vmatprep.mubr.msk.bf16.mxu1 %vm714_vm2, %v5441_v4 }
  0xfc   : > { %5030 = vmatprep.mubr.msk.bf16.mxu0 %vm714_vm2, %v5442_v15 }
 0x102   : > { %4877 = vmatmul.mubr.msk.bf16.gmra.mrb[24].mxu1 %vm714_vm2, %v5443_v16 }
 0x103   : > { %5031 = vmatmul.mubr.msk.bf16.gmra.mrb[8].mxu0 %vm714_vm2, %v5444_v17  ;;  %4880 = vmatprep.mubr.msk.bf16.mxu1 %vm714_vm2, %v5445_v18 }
 0x104   : > { %5034 = vmatprep.mubr.msk.bf16.mxu0 %vm714_vm2, %v5446_v19 }
 0x10a   : > { %4881 = vmatmul.mubr.msk.bf16.gmra.mrb[28].mxu1 %vm714_vm2, %v5447_v20 }
 0x10b   : > { %5035 = vmatmul.mubr.msk.bf16.gmra.mrb[12].mxu0 %vm714_vm2, %v5448_v21  ;;  %4902 = vmatprep.mubr.msk.bf16.mxu1 %vm714_vm2, %v5449_v22 }
 0x10c   : > { %5038 = vmatprep.mubr.msk.bf16.mxu0 %vm714_vm2, %v5450_v23 }
 0x112   : > { %4903 = vmatmul.mubr.msk.bf16.vlgmr.msra.gmra.mrb[16].mxu1 %vm714_vm2, %v5451_v24 }
 0x113   : > { %5039 = vmatmul.mubr.msk.bf16.gmra.mrb[16].mxu0 %vm714_vm2, %v5452_v25  ;;  %4906 = vmatprep.mubr.msk.bf16.mxu1 %vm714_vm2, %v5453_v26 }
 0x114   : > { %5042 = vmatprep.mubr.msk.bf16.mxu0 %vm714_vm2, %v5454_v27 }
 0x11a   : > { %4907 = vmatmul.mubr.msk.bf16.gmra.mrb[20].mxu1 %vm714_vm2, %v5455_v28 }
 0x11b   : > { %5043 = vmatmul.mubr.msk.bf16.gmra.mrb[20].mxu0 %vm714_vm2, %v5456_v29  ;;  %4910 = vmatprep.mubr.msk.bf16.mxu1 %vm714_vm2, %v5457_v30 }
 0x11c   : > { %5046 = vmatprep.mubr.msk.bf16.mxu0 %vm714_vm2, %v5458_v31 }
 0x122   : > { %4911 = vmatmul.mubr.msk.bf16.gmra.mrb[24].mxu1 %vm714_vm2, %v5459_v32 }
 0x123   : > { %5047 = vmatmul.mubr.msk.bf16.gmra.mrb[24].mxu0 %vm714_vm2, %v5460_v33  ;;  %4914 = vmatprep.mubr.msk.bf16.mxu1 %vm714_vm2, %v5461_v34 }
 0x124   : > { %5050 = vmatprep.mubr.msk.bf16.mxu0 %vm714_vm2, %v5462_v35 }
 0x12a   : > { %4915 = vmatmul.mubr.msk.bf16.gmra.mrb[28].mxu1 %vm714_vm2, %v5463_v36 }
 0x12b   : > { %5051 = vmatmul.mubr.msk.bf16.gmra.mrb[28].mxu0 %vm714_vm2, %v5464_v37 }
 0x1a5   : > { %v4854_v38 = vpop.f32.mrb[0].mxu1 }
 0x1a6   : > { %v1780_v39 = vpop.f32.mrb[1].mxu1 }
 0x1a7   : > { %v4855_v40 = vpop.f32.mrb[2].mxu1 }
 0x1a8   : > { %v1783_v41 = vpop.f32.mrb[3].mxu1 }
 0x1ad   : > { %v4858_v42 = vpop.f32.mrb[4].mxu1 }
 0x1ae   : > { %v1796_v43 = vpop.f32.mrb[5].mxu1 }
 0x1af   : > { %v4859_v44 = vpop.f32.mrb[6].mxu1 }
 0x1b0   : > { %v1799_v45 = vpop.f32.mrb[7].mxu1 }
 0x1b5   : > { %v4862_v46 = vpop.f32.mrb[8].mxu1 }
 0x1b6   : > { %v1812_v47 = vpop.f32.mrb[9].mxu1 }
 0x1b7   : > { %v4863_v48 = vpop.f32.mrb[10].mxu1 }
 0x1b8   : > { %v1815_v49 = vpop.f32.mrb[11].mxu1 }
 0x1bd   : > { %v5946_v50 = vpop.f32.mrb[12].mxu1 }
 0x1be   : > { %v5948_v51 = vpop.f32.mrb[13].mxu1 }
 0x1bf   : > { %v5950_v52 = vpop.f32.mrb[14].mxu1 }
 0x1c0   : > { %v5952_v53 = vpop.f32.mrb[15].mxu1 }
 0x1c6   : > { %v5024_v54 = vpop.f32.mrb[0].mxu0 }
 0x1c7   : > { %v5056_v56 = vadd.f32 %v5024_v54, %v4854_v38  ;;  %v3570_v57 = vpop.f32.mrb[1].mxu0 }
 0x1c8   : > { %v5057_v58 = vadd.f32 %v3570_v57, %v1780_v39  ;;  %v5025_v59 = vpop.f32.mrb[2].mxu0 }
 0x1c9   : > { %v3738_v60 = vadd.f32 %v5056_v56, %v5957_v55  ;;  %v5058_v61 = vadd.f32 %v5025_v59, %v4855_v40  ;;  %v3573_v62 = vpop.f32.mrb[3].mxu0 }
 0x1ca   : > { %v3736_v63 = vadd.f32 %v5057_v58, %v5957_v55  ;;  %v5059_v8 = vadd.f32 %v3573_v62, %v1783_v41 }
 0x1cb   : > { %v3739_v0 = vadd.f32 %v5058_v61, %v5957_v55  ;;  %v3770_v2 = vmax.f32 %v3738_v60, 0.0 }
 0x1cc   : > { %v3737_v1 = vadd.f32 %v5059_v8, %v5957_v55  ;;  %v3768_v5 = vmax.f32 %v3736_v63, 0.0 }
 0x1cd   : > { %v3771_v3 = vmax.f32 %v3739_v0, 0.0 }
 0x1ce   : > { %v3769_v6 = vmax.f32 %v3737_v1, 0.0  ;;  %v5028_v7 = vpop.f32.mrb[4].mxu0 }
 0x1cf   : > { %v4508_v9 = vpack.c.bf16 %v3771_v3, %v3770_v2  ;;  %v5060_v10 = vadd.f32 %v5028_v7, %v4858_v42  ;;  %v3586_v11 = vpop.f32.mrb[5].mxu0 }
 0x1d0   : > { %v4503_v12 = vpack.c.bf16 %v3769_v6, %v3768_v5  ;;  %v5061_v13 = vadd.f32 %v3586_v11, %v1796_v43  ;;  %v5029_v14 = vpop.f32.mrb[6].mxu0 }
 0x1d1   : > { %4580 = vst [vmem:[%s5967_s19 + $0x8] sm:$0xff] %v4508_v9   ;;  %v3742_v4 = vadd.f32 %v5060_v10, %v5957_v55  ;;  %v5062_v15 = vadd.f32 %v5029_v14, %v4859_v44  ;;  %v3589_v16 = vpop.f32.mrb[7].mxu0 }
 0x1d2   : > { %4504 = vst [vmem:[%s5967_s19] sm:$0xff] %v4503_v12   ;;  %v3740_v17 = vadd.f32 %v5061_v13, %v5957_v55  ;;  %v5063_v18 = vadd.f32 %v3589_v16, %v1799_v45 }
 0x1d3   : > { %v3743_v19 = vadd.f32 %v5062_v15, %v5957_v55  ;;  %v3774_v21 = vmax.f32 %v3742_v4, 0.0 }
 0x1d4   : > { %v3741_v20 = vadd.f32 %v5063_v18, %v5957_v55  ;;  %v3772_v23 = vmax.f32 %v3740_v17, 0.0 }
 0x1d5   : > { %v3775_v22 = vmax.f32 %v3743_v19, 0.0 }
 0x1d6   : > { %v3773_v24 = vmax.f32 %v3741_v20, 0.0  ;;  %v5032_v25 = vpop.f32.mrb[8].mxu0 }
 0x1d7   : > { %v4518_v26 = vpack.c.bf16 %v3775_v22, %v3774_v21  ;;  %v5064_v27 = vadd.f32 %v5032_v25, %v4862_v46  ;;  %v3602_v28 = vpop.f32.mrb[9].mxu0 }
 0x1d8   : > { %v4513_v29 = vpack.c.bf16 %v3773_v24, %v3772_v23  ;;  %v5065_v30 = vadd.f32 %v3602_v28, %v1812_v47  ;;  %v5033_v31 = vpop.f32.mrb[10].mxu0 }
 0x1d9   : > { %4582 = vst [vmem:[%s5967_s19 + $0x18] sm:$0xff] %v4518_v26   ;;  %v3746_v32 = vadd.f32 %v5064_v27, %v5957_v55  ;;  %v5066_v33 = vadd.f32 %v5033_v31, %v4863_v48  ;;  %v3605_v34 = vpop.f32.mrb[11].mxu0 }
 0x1da   : > { %4581 = vst [vmem:[%s5967_s19 + $0x10] sm:$0xff] %v4513_v29   ;;  %v3744_v35 = vadd.f32 %v5065_v30, %v5957_v55  ;;  %v5067_v36 = vadd.f32 %v3605_v34, %v1815_v49 }
 0x1db   : > { %v3747_v37 = vadd.f32 %v5066_v33, %v5957_v55  ;;  %v3778_v39 = vmax.f32 %v3746_v32, 0.0 }
 0x1dc   : > { %v3745_v38 = vadd.f32 %v5067_v36, %v5957_v55  ;;  %v3776_v41 = vmax.f32 %v3744_v35, 0.0 }
 0x1dd   : > { %v3779_v40 = vmax.f32 %v3747_v37, 0.0 }
 0x1de   : > { %v3777_v42 = vmax.f32 %v3745_v38, 0.0  ;;  %v5036_v43 = vpop.f32.mrb[12].mxu0 }
 0x1df   : > { %v4528_v44 = vpack.c.bf16 %v3779_v40, %v3778_v39  ;;  %v5068_v45 = vadd.f32 %v5036_v43, %v5946_v50  ;;  %v3618_v46 = vpop.f32.mrb[13].mxu0 }
 0x1e0   : > { %v4523_v47 = vpack.c.bf16 %v3777_v42, %v3776_v41  ;;  %v5069_v48 = vadd.f32 %v3618_v46, %v5948_v51  ;;  %v5037_v54 = vpop.f32.mrb[14].mxu0 }
 0x1e1   : > { %4584 = vst [vmem:[%s5967_s19 + $0x28] sm:$0xff] %v4528_v44   ;;  %v3750_v49 = vadd.f32 %v5068_v45, %v5957_v55  ;;  %v5070_v56 = vadd.f32 %v5037_v54, %v5950_v52  ;;  %v3621_v57 = vpop.f32.mrb[15].mxu0 }
 0x1e2   : > { %4583 = vst [vmem:[%s5967_s19 + $0x20] sm:$0xff] %v4523_v47   ;;  %v3748_v58 = vadd.f32 %v5069_v48, %v5957_v55  ;;  %v5071_v59 = vadd.f32 %v3621_v57, %v5952_v53 }
 0x1e3   : > { %v3751_v60 = vadd.f32 %v5070_v56, %v5957_v55  ;;  %v3782_v61 = vmax.f32 %v3750_v49, 0.0 }
 0x1e4   : > { %v3749_v50 = vadd.f32 %v5071_v59, %v5957_v55  ;;  %v3780_v63 = vmax.f32 %v3748_v58, 0.0 }
 0x1e5   : > { %v3783_v62 = vmax.f32 %v3751_v60, 0.0  ;;  %v4904_v51 = vpop.f32.mrb[16].mxu1 }
 0x1e6   : > { %v3781_v8 = vmax.f32 %v3749_v50, 0.0  ;;  %v5040_v0 = vpop.f32.mrb[16].mxu0  ;;  %v2202_v1 = vpop.f32.mrb[17].mxu1 }
 0x1e7   : > { %v4538_v52 = vpack.c.bf16 %v3783_v62, %v3782_v61  ;;  %v5072_v2 = vadd.f32 %v5040_v0, %v4904_v51  ;;  %v3634_v3 = vpop.f32.mrb[17].mxu0  ;;  %v4905_v5 = vpop.f32.mrb[18].mxu1 }
 0x1e8   : > { %v4533_v6 = vpack.c.bf16 %v3781_v8, %v3780_v63  ;;  %v5073_v7 = vadd.f32 %v3634_v3, %v2202_v1  ;;  %v5041_v53 = vpop.f32.mrb[18].mxu0  ;;  %v2205_v9 = vpop.f32.mrb[19].mxu1 }
 0x1e9   : > { %4586 = vst [vmem:[%s5967_s19 + $0x38] sm:$0xff] %v4538_v52   ;;  %v3754_v10 = vadd.f32 %v5072_v2, %v5957_v55  ;;  %v5074_v11 = vadd.f32 %v5041_v53, %v4905_v5  ;;  %v3637_v12 = vpop.f32.mrb[19].mxu0 }
 0x1ea   : > { %4585 = vst [vmem:[%s5967_s19 + $0x30] sm:$0xff] %v4533_v6   ;;  %v3752_v13 = vadd.f32 %v5073_v7, %v5957_v55  ;;  %v5075_v14 = vadd.f32 %v3637_v12, %v2205_v9 }
 0x1eb   : > { %v3755_v4 = vadd.f32 %v5074_v11, %v5957_v55  ;;  %v3786_v16 = vmax.f32 %v3754_v10, 0.0 }
 0x1ec   : > { %v3753_v15 = vadd.f32 %v5075_v14, %v5957_v55  ;;  %v3784_v19 = vmax.f32 %v3752_v13, 0.0 }
 0x1ed   : > { %v3787_v17 = vmax.f32 %v3755_v4, 0.0  ;;  %v4908_v18 = vpop.f32.mrb[20].mxu1 }
 0x1ee   : > { %v3785_v20 = vmax.f32 %v3753_v15, 0.0  ;;  %v5044_v21 = vpop.f32.mrb[20].mxu0  ;;  %v2218_v22 = vpop.f32.mrb[21].mxu1 }
 0x1ef   : > { %v4548_v23 = vpack.c.bf16 %v3787_v17, %v3786_v16  ;;  %v5076_v24 = vadd.f32 %v5044_v21, %v4908_v18  ;;  %v3650_v25 = vpop.f32.mrb[21].mxu0  ;;  %v4909_v26 = vpop.f32.mrb[22].mxu1 }
 0x1f0   : > { %v4543_v27 = vpack.c.bf16 %v3785_v20, %v3784_v19  ;;  %v5077_v28 = vadd.f32 %v3650_v25, %v2218_v22  ;;  %v5045_v29 = vpop.f32.mrb[22].mxu0  ;;  %v2221_v30 = vpop.f32.mrb[23].mxu1 }
 0x1f1   : > { %4588 = vst [vmem:[%s5967_s19 + $0x48] sm:$0xff] %v4548_v23   ;;  %v3758_v31 = vadd.f32 %v5076_v24, %v5957_v55  ;;  %v5078_v32 = vadd.f32 %v5045_v29, %v4909_v26  ;;  %v3653_v33 = vpop.f32.mrb[23].mxu0 }
 0x1f2   : > { %4587 = vst [vmem:[%s5967_s19 + $0x40] sm:$0xff] %v4543_v27   ;;  %v3756_v34 = vadd.f32 %v5077_v28, %v5957_v55  ;;  %v5079_v35 = vadd.f32 %v3653_v33, %v2221_v30 }
 0x1f3   : > { %v3759_v36 = vadd.f32 %v5078_v32, %v5957_v55  ;;  %v3790_v38 = vmax.f32 %v3758_v31, 0.0 }
 0x1f4   : > { %v3757_v37 = vadd.f32 %v5079_v35, %v5957_v55  ;;  %v3788_v41 = vmax.f32 %v3756_v34, 0.0 }
 0x1f5   : > { %v3791_v39 = vmax.f32 %v3759_v36, 0.0  ;;  %v4912_v40 = vpop.f32.mrb[24].mxu1 }
 0x1f6   : > { %v3789_v42 = vmax.f32 %v3757_v37, 0.0  ;;  %v5048_v43 = vpop.f32.mrb[24].mxu0  ;;  %v2234_v44 = vpop.f32.mrb[25].mxu1 }
 0x1f7   : > { %v4558_v45 = vpack.c.bf16 %v3791_v39, %v3790_v38  ;;  %v5080_v46 = vadd.f32 %v5048_v43, %v4912_v40  ;;  %v3666_v47 = vpop.f32.mrb[25].mxu0  ;;  %v4913_v48 = vpop.f32.mrb[26].mxu1 }
 0x1f8   : > { %v4553_v54 = vpack.c.bf16 %v3789_v42, %v3788_v41  ;;  %v5081_v49 = vadd.f32 %v3666_v47, %v2234_v44  ;;  %v5049_v56 = vpop.f32.mrb[26].mxu0  ;;  %v2237_v57 = vpop.f32.mrb[27].mxu1 }
 0x1f9   : > { %4590 = vst [vmem:[%s5967_s19 + $0x58] sm:$0xff] %v4558_v45   ;;  %v3762_v58 = vadd.f32 %v5080_v46, %v5957_v55  ;;  %v5082_v59 = vadd.f32 %v5049_v56, %v4913_v48  ;;  %v3669_v60 = vpop.f32.mrb[27].mxu0 }
 0x1fa   : > { %4589 = vst [vmem:[%s5967_s19 + $0x50] sm:$0xff] %v4553_v54   ;;  %v3760_v50 = vadd.f32 %v5081_v49, %v5957_v55  ;;  %v5083_v61 = vadd.f32 %v3669_v60, %v2237_v57 }
 0x1fb   : > { %v3763_v62 = vadd.f32 %v5082_v59, %v5957_v55  ;;  %v3794_v63 = vmax.f32 %v3762_v58, 0.0 }
 0x1fc   : > { %v3761_v51 = vadd.f32 %v5083_v61, %v5957_v55  ;;  %v3792_v1 = vmax.f32 %v3760_v50, 0.0 }
 0x1fd   : > { %v3795_v8 = vmax.f32 %v3763_v62, 0.0  ;;  %v4916_v0 = vpop.f32.mrb[28].mxu1 }
 0x1fe   : > { %v3793_v52 = vmax.f32 %v3761_v51, 0.0  ;;  %v5052_v2 = vpop.f32.mrb[28].mxu0  ;;  %v2250_v3 = vpop.f32.mrb[29].mxu1 }
 0x1ff   : > { %v4568_v5 = vpack.c.bf16 %v3795_v8, %v3794_v63  ;;  %v5084_v6 = vadd.f32 %v5052_v2, %v4916_v0  ;;  %v3682_v7 = vpop.f32.mrb[29].mxu0  ;;  %v4917_v53 = vpop.f32.mrb[30].mxu1 }
 0x200   : > { %v4563_v9 = vpack.c.bf16 %v3793_v52, %v3792_v1  ;;  %v5085_v10 = vadd.f32 %v3682_v7, %v2250_v3  ;;  %v5053_v11 = vpop.f32.mrb[30].mxu0  ;;  %v2253_v12 = vpop.f32.mrb[31].mxu1 }
 0x201   : > { %4592 = vst [vmem:[%s5967_s19 + $0x68] sm:$0xff] %v4568_v5   ;;  %v3766_v13 = vadd.f32 %v5084_v6, %v5957_v55  ;;  %v5086_v14 = vadd.f32 %v5053_v11, %v4917_v53  ;;  %v3685_v4 = vpop.f32.mrb[31].mxu0 }
 0x202   : > { %4591 = vst [vmem:[%s5967_s19 + $0x60] sm:$0xff] %v4563_v9   ;;  %v3764_v15 = vadd.f32 %v5085_v10, %v5957_v55  ;;  %v5087_v16 = vadd.f32 %v3685_v4, %v2253_v12 }
 0x203   : > { %v3767_v17 = vadd.f32 %v5086_v14, %v5957_v55  ;;  %v3798_v19 = vmax.f32 %v3766_v13, 0.0 }
 0x204   : > { %v3765_v18 = vadd.f32 %v5087_v16, %v5957_v55  ;;  %v3796_v21 = vmax.f32 %v3764_v15, 0.0 }
 0x205   : > { %v3799_v20 = vmax.f32 %v3767_v17, 0.0 }
 0x206   : > { %v3797_v22 = vmax.f32 %v3765_v18, 0.0 }
 0x207   : > { %v4578_v23 = vpack.c.bf16 %v3799_v20, %v3798_v19 }
 0x208   : > { %v4573_v24 = vpack.c.bf16 %v3797_v22, %v3796_v21 }
 0x209   : > { %4594 = vst [vmem:[%s5967_s19 + $0x78] sm:$0xff] %v4578_v23  }
 0x20a   : > { %4593 = vst [vmem:[%s5967_s19 + $0x70] sm:$0xff] %v4573_v24  }
 0x20b PF: > { %s21_s17 = sadd.s32 1, %s5471_s17  }
 0x20c   : > { %p18_p4 = scmp.ge.s32.totalorder %s21_s17, 4  }
 0x20e   :  { %20 = sbr.rel (!%p18_p4) target bundleno = 1 (0x1), region = 126 }

// kernel: hgstem_forward.9
= control target key start
LH: loop header
LB: loop body
LE: loop exit
PB: predicated region body
PF: predicated region fallthrough
CT: control target
= control target key end

     0   :  { %s4481_s25 = smov 0   ;;  %s5102_s0 = inlined_call_operand.vmem [shape: bf16[128,256], index: 0, kind: input, shape index: {}]   ;;  %s5103_s1 = inlined_call_operand.vmem [shape: bf16[128,256], index: 1, kind: input, shape index: {}]   ;;  %s5104_s2 = inlined_call_operand.vmem [shape: bf16[128,256], index: 2, kind: input, shape index: {}]   ;;  %s5105_s3 = inlined_call_operand.vmem [shape: bf16[128,256], index: 3, kind: input, shape index: {}]   ;;  %s5106_s4 = inlined_call_operand.vmem [shape: bf16[128,256], index: 4, kind: input, shape index: {}]   ;;  %s5107_s5 = inlined_call_operand.vmem [shape: bf16[128,256], index: 5, kind: input, shape index: {}]   ;;  %s5108_s6 = inlined_call_operand.vmem [shape: bf16[128,256], index: 6, kind: input, shape index: {}]   ;;  %s5109_s7 = inlined_call_operand.vmem [shape: bf16[128,256], index: 7, kind: input, shape index: {}]   ;;  %s5110_s8 = inlined_call_operand.vmem [shape: bf16[128,256], index: 8, kind: input, shape index: {}]   ;;  %s5111_s9 = inlined_call_operand.vmem [shape: bf16[9,256,128], index: 9, kind: input, shape index: {}]   ;;  %s5112_s10 = inlined_call_operand.vmem [shape: f32[1,128], index: 10, kind: input, shape index: {}]   ;;  %s5113_s11 = inlined_call_operand.vmem [shape: bf16[128,128], index: 11, kind: input, shape index: {}]   ;;  %s5114_s12 = inlined_call_operand.vmem [shape: f32[1,128], index: 12, kind: input, shape index: {}]   ;;  %s5115_s13 = inlined_call_operand.vmem [shape: f32[128,128], index: 13, kind: output, shape index: {}]  }
   0x1 LB: > { %s3212_s26 = sadd.s32 4294967295, %s4409_s25   ;;  %p3216_p0 = scmp.ge.s32.totalorder %s4409_s25, 1  ;;  %s4409_s25 = sphi %s4481_s25, %s23_s25  }
   0x2   : > { %p485_p1 = scmp.lt.s32.totalorder %s4409_s25, 3 }
   0x4   : > { %p486_p2 = pnand %p3216_p0, %p485_p1 }
   0x5   : > { %v4143_v0 = vld [vmem:[%s5111_s9 + $0xc0] sm:$0xff] (!%p486_p2)   ;;  %v4147_v4 = vld [vmem:[%s5111_s9 + $0xc8] sm:$0xff] (!%p486_p2)   ;;  %v4151_v8 = vld [vmem:[%s5111_s9 + $0xd0] sm:$0xff] (!%p486_p2)   ;;  %s3217_s29 = sshll.u32 (!%p486_p2), %s3212_s26, 3 }
   0x6   : > { %489 = sbr.rel (%p486_p2) target bundleno = 636 (0x27c), region = 72  ;;  %v4144_v1 = vld [vmem:[%s5111_s9 + $0x40] sm:$0xff] (!%p486_p2)   ;;  %3739 = vmatprep.subr.bf16.mxu0 (!%p486_p2), %v4143_v0  ;;  %v4148_v5 = vld [vmem:[%s5111_s9 + $0x48] sm:$0xff] (!%p486_p2)   ;;  %v4152_v9 = vld [vmem:[%s5111_s9 + $0x50] sm:$0xff] (!%p486_p2)   ;;  %p579_p3 = scmp.lt.s32.totalorder (!%p486_p2), %s3217_s29, 15 }
   0x7   : > { %v4145_v2 = vld [vmem:[%s5111_s9 + $0x80] sm:$0xff] (!%p486_p2)   ;;  %3779 = vmatprep.subr.bf16.mxu1 (!%p486_p2), %v4144_v1  ;;  %v4149_v6 = vld [vmem:[%s5111_s9 + $0x88] sm:$0xff] (!%p486_p2)   ;;  %v4153_v10 = vld [vmem:[%s5111_s9 + $0x90] sm:$0xff] (!%p486_p2)  }
   0x8   : > { %v4146_v3 = vld [vmem:[%s5111_s9] sm:$0xff] (!%p486_p2)   ;;  %3740 = vmatpush3.bf16.msra.mxu0 (!%p486_p2), %v4145_v2  ;;  %v4150_v7 = vld [vmem:[%s5111_s9 + $0x8] sm:$0xff] (!%p486_p2)   ;;  %v4154_v11 = vld [vmem:[%s5111_s9 + $0x10] sm:$0xff] (!%p486_p2)  }
   0x9   : > { %3780 = vmatpush3.bf16.msra.mxu1 (!%p486_p2), %v4146_v3  ;;  %3741 = vmatprep.subr.bf16.mxu0 (!%p486_p2), %v4147_v4  ;;  %v4155_v12 = vld [vmem:[%s5111_s9 + $0xd8] sm:$0xff] (!%p486_p2)   ;;  %v4159_v16 = vld [vmem:[%s5111_s9 + $0xe0] sm:$0xff] (!%p486_p2)   ;;  %v4163_v20 = vld [vmem:[%s5111_s9 + $0xe8] sm:$0xff] (!%p486_p2)  }
   0xa   : > { %3781 = vmatprep.subr.bf16.mxu1 (!%p486_p2), %v4148_v5  ;;  %v4156_v13 = vld [vmem:[%s5111_s9 + $0x58] sm:$0xff] (!%p486_p2)   ;;  %v4160_v17 = vld [vmem:[%s5111_s9 + $0x60] sm:$0xff] (!%p486_p2)   ;;  %v4164_v21 = vld [vmem:[%s5111_s9 + $0x68] sm:$0xff] (!%p486_p2)  }
   0xb   : > { %v4157_v14 = vld [vmem:[%s5111_s9 + $0x98] sm:$0xff] (!%p486_p2)   ;;  %v4161_v18 = vld [vmem:[%s5111_s9 + $0xa0] sm:$0xff] (!%p486_p2)   ;;  %v4165_v22 = vld [vmem:[%s5111_s9 + $0xa8] sm:$0xff] (!%p486_p2)  }
   0xc   : > { %3742 = vmatpush3.bf16.msra.mxu0 (!%p486_p2), %v4149_v6  ;;  %v4158_v15 = vld [vmem:[%s5111_s9 + $0x18] sm:$0xff] (!%p486_p2)   ;;  %v4162_v19 = vld [vmem:[%s5111_s9 + $0x20] sm:$0xff] (!%p486_p2)   ;;  %v4166_v23 = vld [vmem:[%s5111_s9 + $0x28] sm:$0xff] (!%p486_p2)  }
   0xd   : > { %3782 = vmatpush3.bf16.msra.mxu1 %v4150_v7  ;;  %3743 = vmatprep.subr.bf16.mxu0 %v4151_v8  ;;  %s5117_s29 = smov (!%p579_p3, %s3217_s29), 15  ;;  %v4167_v24 = vld [vmem:[%s5111_s9 + $0xf0] sm:$0xff]   ;;  %v4171_v28 = vld [vmem:[%s5111_s9 + $0xf8] sm:$0xff]   ;;  %v4181_v36 = vld [vmem:[%s5111_s9 + $0x140] sm:$0xff]  }
   0xe   : > { %3783 = vmatprep.subr.bf16.mxu1 %v4152_v9  ;;  %v4168_v25 = vld [vmem:[%s5111_s9 + $0x70] sm:$0xff]   ;;  %s4572_s20 = sshll.u32 %s5117_s29, 3  ;;  %v4172_v29 = vld [vmem:[%s5111_s9 + $0x78] sm:$0xff]   ;;  %v4182_v37 = vld [vmem:[%s5111_s9 + $0x100] sm:$0xff]  }
   0xf   : > { %v4169_v26 = vld [vmem:[%s5111_s9 + $0xb0] sm:$0xff]   ;;  %s4587_s30 = scalar_lea.vmem %s5103_s1, %s4572_s20  ;;  %v4173_v30 = vld [vmem:[%s5111_s9 + $0xb8] sm:$0xff]   ;;  %s4599_s26 = scalar_lea.vmem %s5102_s0, %s4572_s20  ;;  %v4183_v38 = vld [vmem:[%s5111_s9 + $0x1c0] sm:$0xff]  }
  0x10   : > { %3744 = vmatpush3.bf16.msra.mxu0 %v4153_v10  ;;  %v4170_v27 = vld [vmem:[%s5111_s9 + $0x30] sm:$0xff]   ;;  %v4174_v31 = vld [vmem:[%s5111_s9 + $0x38] sm:$0xff]   ;;  %v4175_v32 = vld [vmem:[%s4587_s30] ss:$8 sps:$4 sm:$0xff]   ;;  %s4708_s29 = scalar_lea.vmem %s5104_s2, %s4572_s20  ;;  %s4722_s21 = scalar_lea.vmem %s5105_s3, %s4572_s20 }
  0x11   : > { %3784 = vmatpush3.bf16.msra.mxu1 %v4154_v11  ;;  %3745 = vmatprep.subr.bf16.mxu0 %v4155_v12  ;;  %v4177_v33 = vld [vmem:[%s4587_s30 + $0x4] ss:$8 sps:$4 sm:$0xff]   ;;  %v4178_v34 = vld [vmem:[%s4599_s26] ss:$8 sps:$4 sm:$0xff]   ;;  %v4188_v43 = vld [vmem:[%s4587_s30 + $0x14] ss:$8 sps:$4 sm:$0xff]   ;;  %s4832_s16 = scalar_lea.vmem %s5106_s4, %s4572_s20  ;;  %s4970_s24 = scalar_lea.vmem %s5109_s7, %s4572_s20 }
  0x12   : > { %3785 = vmatprep.subr.bf16.mxu1 %v4156_v13  ;;  %v4180_v35 = vld [vmem:[%s4599_s26 + $0x4] ss:$8 sps:$4 sm:$0xff]   ;;  %897 = vmatprep.mubr.bf16.mxu0 %v4177_v33  ;;  %v4190_v44 = vld [vmem:[%s4599_s26 + $0x14] ss:$8 sps:$4 sm:$0xff]   ;;  %v4193_v46 = vld [vmem:[%s4587_s30 + $0x10] ss:$8 sps:$4 sm:$0xff]   ;;  %s639_s15 = scalar_lea.vmem %s5110_s8, %s4572_s20  ;;  %s645_s14 = scalar_lea.vmem %s5115_s13, %s4572_s20 }
  0x13   : > { %1098 = vmatprep.mubr.bf16.mxu1 %v4180_v35  ;;  %v4184_v39 = vld [vmem:[%s5111_s9 + $0x180] sm:$0xff]   ;;  %v4185_v40 = vld [vmem:[%s5111_s9 + $0x148] sm:$0xff]   ;;  %v4194_v47 = vld [vmem:[%s4599_s26 + $0x10] ss:$8 sps:$4 sm:$0xff]  }
  0x14   : > { %3746 = vmatpush3.bf16.msra.mxu0 %v4157_v14  ;;  %v4186_v41 = vld [vmem:[%s5111_s9 + $0x108] sm:$0xff]   ;;  %v4195_v48 = vld [vmem:[%s5111_s9 + $0x150] sm:$0xff]   ;;  %v4199_v52 = vld [vmem:[%s5111_s9 + $0x158] sm:$0xff]  }
  0x15   : > { %3786 = vmatpush3.bf16.msra.mxu1 %v4158_v15  ;;  %3747 = vmatprep.subr.bf16.mxu0 %v4159_v16  ;;  %v4187_v42 = vld [vmem:[%s5111_s9 + $0x1c8] sm:$0xff]   ;;  %v4196_v49 = vld [vmem:[%s5111_s9 + $0x110] sm:$0xff]   ;;  %v4200_v53 = vld [vmem:[%s5111_s9 + $0x118] sm:$0xff]  }
  0x16   : > { %3787 = vmatprep.subr.bf16.mxu1 %v4160_v17  ;;  %v4192_v45 = vld [vmem:[%s5111_s9 + $0x188] sm:$0xff]   ;;  %v4197_v50 = vld [vmem:[%s5111_s9 + $0x1d0] sm:$0xff]   ;;  %v4201_v54 = vld [vmem:[%s5111_s9 + $0x1d8] sm:$0xff]  }
  0x17   : > { %v4198_v51 = vld [vmem:[%s5111_s9 + $0x190] sm:$0xff]   ;;  %v4202_v55 = vld [vmem:[%s4587_s30 + $0x24] ss:$8 sps:$4 sm:$0xff]   ;;  %v4206_v57 = vld [vmem:[%s5111_s9 + $0x198] sm:$0xff]  }
  0x18   : > { %3748 = vmatpush3.bf16.msra.mxu0 %v4161_v18  ;;  %v4204_v56 = vld [vmem:[%s4599_s26 + $0x24] ss:$8 sps:$4 sm:$0xff]   ;;  %v4207_v58 = vld [vmem:[%s4587_s30 + $0x20] ss:$8 sps:$4 sm:$0xff]   ;;  %v4216_v3 = vld [vmem:[%s4587_s30 + $0x34] ss:$8 sps:$4 sm:$0xff]  }
  0x19   : > { %3788 = vmatpush3.bf16.msra.mxu1 %v4162_v19  ;;  %3749 = vmatprep.subr.bf16.mxu0 %v4163_v20  ;;  %v4208_v59 = vld [vmem:[%s4599_s26 + $0x20] ss:$8 sps:$4 sm:$0xff]   ;;  %v4218_v4 = vld [vmem:[%s4599_s26 + $0x34] ss:$8 sps:$4 sm:$0xff]   ;;  %v4221_v6 = vld [vmem:[%s4587_s30 + $0x30] ss:$8 sps:$4 sm:$0xff]  }
  0x1a   : > { %3789 = vmatprep.subr.bf16.mxu1 %v4164_v21  ;;  %v4209_v60 = vld [vmem:[%s5111_s9 + $0x160] sm:$0xff]   ;;  %v4213_v0 = vld [vmem:[%s5111_s9 + $0x168] sm:$0xff]   ;;  %v4222_v7 = vld [vmem:[%s4599_s26 + $0x30] ss:$8 sps:$4 sm:$0xff]   ;;  %s4846_s26 = scalar_lea.vmem %s5107_s5, %s4572_s20 }
  0x1b   : > { %v4210_v61 = vld [vmem:[%s5111_s9 + $0x120] sm:$0xff]   ;;  %v4214_v1 = vld [vmem:[%s5111_s9 + $0x128] sm:$0xff]   ;;  %v4223_v8 = vld [vmem:[%s5111_s9 + $0x170] sm:$0xff]  }
  0x1c   : > { %3750 = vmatpush3.bf16.msra.mxu0 %v4165_v22  ;;  %v4211_v62 = vld [vmem:[%s5111_s9 + $0x1e0] sm:$0xff]   ;;  %v4215_v2 = vld [vmem:[%s5111_s9 + $0x1e8] sm:$0xff]   ;;  %v4224_v9 = vld [vmem:[%s5111_s9 + $0x130] sm:$0xff]  }
  0x1d   : > { %3790 = vmatpush3.bf16.msra.mxu1 %v4166_v23  ;;  %3751 = vmatprep.subr.bf16.mxu0 %v4167_v24  ;;  %v4212_v63 = vld [vmem:[%s5111_s9 + $0x1a0] sm:$0xff]   ;;  %v4220_v5 = vld [vmem:[%s5111_s9 + $0x1a8] sm:$0xff]   ;;  %v4225_v10 = vld [vmem:[%s5111_s9 + $0x1f0] sm:$0xff]  }
  0x1e   : > { %3791 = vmatprep.subr.bf16.mxu1 %v4168_v25  ;;  %v4226_v11 = vld [vmem:[%s5111_s9 + $0x1b0] sm:$0xff]   ;;  %v4227_v12 = vld [vmem:[%s5111_s9 + $0x178] sm:$0xff]   ;;  %v4230_v15 = vld [vmem:[%s4708_s29] ss:$8 sps:$4 sm:$0xff]  }
  0x1f   : > { %v4228_v13 = vld [vmem:[%s5111_s9 + $0x138] sm:$0xff]   ;;  %v4232_v16 = vld [vmem:[%s4708_s29 + $0x4] ss:$8 sps:$4 sm:$0xff]   ;;  %v4235_v19 = vld [vmem:[%s4722_s21] ss:$8 sps:$4 sm:$0xff]  }
  0x20   : > { %3752 = vmatpush3.bf16.msra.mxu0 %v4169_v26  ;;  %v4229_v14 = vld [vmem:[%s5111_s9 + $0x1f8] sm:$0xff]   ;;  %v4234_v18 = vld [vmem:[%s5111_s9 + $0x240] sm:$0xff]   ;;  %v4241_v24 = vld [vmem:[%s5111_s9 + $0x248] sm:$0xff]  }
  0x21   : > { %3792 = vmatpush3.bf16.msra.mxu1 %v4170_v27  ;;  %3753 = vmatprep.subr.bf16.mxu0 %v4171_v28  ;;  %v4233_v17 = vld [vmem:[%s5111_s9 + $0x1b8] sm:$0xff]   ;;  %v4237_v20 = vld [vmem:[%s4722_s21 + $0x4] ss:$8 sps:$4 sm:$0xff]   ;;  %v4254_v35 = vld [vmem:[%s5111_s9 + $0x290] sm:$0xff]  }
  0x22   : > { %3793 = vmatprep.subr.bf16.mxu1 %v4172_v29  ;;  %v4238_v21 = vld [vmem:[%s5111_s9 + $0x200] sm:$0xff]   ;;  %v4242_v25 = vld [vmem:[%s5111_s9 + $0x208] sm:$0xff]   ;;  %v4244_v27 = vld [vmem:[%s4708_s29 + $0x14] ss:$8 sps:$4 sm:$0xff]  }
  0x23   : > { %v4239_v22 = vld [vmem:[%s5111_s9 + $0x2c0] sm:$0xff]   ;;  %v4243_v26 = vld [vmem:[%s5111_s9 + $0x2c8] sm:$0xff]   ;;  %v4247_v29 = vld [vmem:[%s4708_s29 + $0x10] ss:$8 sps:$4 sm:$0xff]  }
  0x24   : > { %3754 = vmatpush3.bf16.msra.mxu0 %v4173_v30  ;;  %v4240_v23 = vld [vmem:[%s5111_s9 + $0x280] sm:$0xff]   ;;  %v4246_v28 = vld [vmem:[%s5111_s9 + $0x288] sm:$0xff]   ;;  %v4248_v30 = vld [vmem:[%s5111_s9 + $0x250] sm:$0xff]  }
  0x25   : > { %3794 = vmatpush3.bf16.msra.mxu1 %v4174_v31  ;;  %3819 = vmatprep.subr.bf16.mxu0 %v4181_v36  ;;  %v4249_v31 = vld [vmem:[%s4722_s21 + $0x14] ss:$8 sps:$4 sm:$0xff]   ;;  %v4252_v33 = vld [vmem:[%s4722_s21 + $0x10] ss:$8 sps:$4 sm:$0xff]  }
  0x26   : > { %3859 = vmatprep.subr.bf16.mxu1 %v4183_v38  ;;  %v4255_v36 = vld [vmem:[%s5111_s9 + $0x258] sm:$0xff]  }
  0x27   : > { %898 = vmatmul.mubr.bf16.vlgmr.msra.gmra.mrb[0].mxu0 %v4175_v32  ;;  %v4251_v32 = vld [vmem:[%s5111_s9 + $0x210] sm:$0xff]   ;;  %v4257_v38 = vld [vmem:[%s5111_s9 + $0x2d8] sm:$0xff]  }
  0x28   : > { %1099 = vmatmul.mubr.bf16.vlgmr.msra.gmra.mrb[0].mxu1 %v4178_v34  ;;  %3820 = vmatpush3.bf16.msra.mxu0 %v4182_v37  ;;  %v4253_v34 = vld [vmem:[%s5111_s9 + $0x2d0] sm:$0xff]   ;;  %v4256_v37 = vld [vmem:[%s5111_s9 + $0x218] sm:$0xff]  }
  0x29   : > { %3860 = vmatpush3.bf16.msra.mxu1 %v4184_v39  ;;  %3821 = vmatprep.subr.bf16.mxu0 %v4185_v40  ;;  %v4258_v39 = vld [vmem:[%s4708_s29 + $0x24] ss:$8 sps:$4 sm:$0xff]   ;;  %v4260_v40 = vld [vmem:[%s5111_s9 + $0x298] sm:$0xff]  }
  0x2a   : > { %3861 = vmatprep.subr.bf16.mxu1 %v4187_v42  ;;  %905 = vmatprep.mubr.bf16.mxu0 %v4188_v43  ;;  %v4262_v42 = vld [vmem:[%s5111_s9 + $0x260] sm:$0xff]  }
  0x2b   : > { %1106 = vmatprep.mubr.bf16.mxu1 %v4190_v44  ;;  %v4263_v43 = vld [vmem:[%s4722_s21 + $0x24] ss:$8 sps:$4 sm:$0xff]  }
  0x2c   : > { %3822 = vmatpush3.bf16.msra.mxu0 %v4186_v41  ;;  %v4261_v41 = vld [vmem:[%s4708_s29 + $0x20] ss:$8 sps:$4 sm:$0xff]  }
  0x2d   : > { %3862 = vmatpush3.bf16.msra.mxu1 %v4192_v45  ;;  %3823 = vmatprep.subr.bf16.mxu0 %v4195_v48  ;;  %v4265_v44 = vld [vmem:[%s5111_s9 + $0x220] sm:$0xff]   ;;  %v4269_v48 = vld [vmem:[%s5111_s9 + $0x268] sm:$0xff]  }
  0x2e   : > { %3863 = vmatprep.subr.bf16.mxu1 %v4197_v50  ;;  %v4266_v45 = vld [vmem:[%s4722_s21 + $0x20] ss:$8 sps:$4 sm:$0xff]  }
  0x2f   : > { %906 = vmatmul.mubr.bf16.gmra.mrb[4].mxu0 %v4193_v46  ;;  %v4267_v46 = vld [vmem:[%s5111_s9 + $0x2e0] sm:$0xff]   ;;  %v4271_v50 = vld [vmem:[%s5111_s9 + $0x2e8] sm:$0xff]  }
  0x30   : > { %1107 = vmatmul.mubr.bf16.gmra.mrb[4].mxu1 %v4194_v47  ;;  %3824 = vmatpush3.bf16.msra.mxu0 %v4196_v49  ;;  %v4268_v47 = vld [vmem:[%s5111_s9 + $0x2a0] sm:$0xff]   ;;  %v4270_v49 = vld [vmem:[%s5111_s9 + $0x228] sm:$0xff]  }
  0x31   : > { %3864 = vmatpush3.bf16.msra.mxu1 %v4198_v51  ;;  %3825 = vmatprep.subr.bf16.mxu0 %v4199_v52  ;;  %v4272_v51 = vld [vmem:[%s4708_s29 + $0x34] ss:$8 sps:$4 sm:$0xff]   ;;  %v4274_v52 = vld [vmem:[%s5111_s9 + $0x2a8] sm:$0xff]  }
  0x32   : > { %3865 = vmatprep.subr.bf16.mxu1 %v4201_v54  ;;  %913 = vmatprep.mubr.bf16.mxu0 %v4202_v55  ;;  %v4276_v54 = vld [vmem:[%s5111_s9 + $0x270] sm:$0xff]  }
  0x33   : > { %1114 = vmatprep.mubr.bf16.mxu1 %v4204_v56  ;;  %v4277_v55 = vld [vmem:[%s4722_s21 + $0x34] ss:$8 sps:$4 sm:$0xff]  }
  0x34   : > { %3826 = vmatpush3.bf16.msra.mxu0 %v4200_v53  ;;  %v4275_v53 = vld [vmem:[%s4708_s29 + $0x30] ss:$8 sps:$4 sm:$0xff]  }
  0x35   : > { %3866 = vmatpush3.bf16.msra.mxu1 %v4206_v57  ;;  %3827 = vmatprep.subr.bf16.mxu0 %v4209_v60  ;;  %v4279_v56 = vld [vmem:[%s5111_s9 + $0x230] sm:$0xff]   ;;  %v4283_v60 = vld [vmem:[%s5111_s9 + $0x278] sm:$0xff]  }
  0x36   : > { %3867 = vmatprep.subr.bf16.mxu1 %v4211_v62  ;;  %v4280_v57 = vld [vmem:[%s4722_s21 + $0x30] ss:$8 sps:$4 sm:$0xff]  }
  0x37   : > { %914 = vmatmul.mubr.bf16.gmra.mrb[8].mxu0 %v4207_v58  ;;  %v4281_v58 = vld [vmem:[%s5111_s9 + $0x2f0] sm:$0xff]   ;;  %v4285_v62 = vld [vmem:[%s5111_s9 + $0x2f8] sm:$0xff]  }
  0x38   : > { %1115 = vmatmul.mubr.bf16.gmra.mrb[8].mxu1 %v4208_v59  ;;  %3828 = vmatpush3.bf16.msra.mxu0 %v4210_v61  ;;  %v4282_v59 = vld [vmem:[%s5111_s9 + $0x2b0] sm:$0xff]   ;;  %v4284_v61 = vld [vmem:[%s5111_s9 + $0x238] sm:$0xff]  }
  0x39   : > { %3868 = vmatpush3.bf16.msra.mxu1 %v4212_v63  ;;  %3829 = vmatprep.subr.bf16.mxu0 %v4213_v0  ;;  %v4286_v63 = vld [vmem:[%s4832_s16] ss:$8 sps:$4 sm:$0xff]   ;;  %v4288_v0 = vld [vmem:[%s4832_s16 + $0x4] ss:$8 sps:$4 sm:$0xff]  }
  0x3a   : > { %3869 = vmatprep.subr.bf16.mxu1 %v4215_v2  ;;  %921 = vmatprep.mubr.bf16.mxu0 %v4216_v3  ;;  %v4290_v2 = vld [vmem:[%s5111_s9 + $0x340] sm:$0xff]  }
  0x3b   : > { %1122 = vmatprep.mubr.bf16.mxu1 %v4218_v4  ;;  %v4291_v3 = vld [vmem:[%s4846_s26] ss:$8 sps:$4 sm:$0xff]   ;;  %v4293_v4 = vld [vmem:[%s4846_s26 + $0x4] ss:$8 sps:$4 sm:$0xff]  }
  0x3c   : > { %3830 = vmatpush3.bf16.msra.mxu0 %v4214_v1  ;;  %v4289_v1 = vld [vmem:[%s5111_s9 + $0x2b8] sm:$0xff]  }
  0x3d   : > { %3870 = vmatpush3.bf16.msra.mxu1 %v4220_v5  ;;  %3831 = vmatprep.subr.bf16.mxu0 %v4223_v8  ;;  %v4294_v5 = vld [vmem:[%s5111_s9 + $0x300] sm:$0xff]   ;;  %v4297_v8 = vld [vmem:[%s5111_s9 + $0x348] sm:$0xff]  }
  0x3e   : > { %3871 = vmatprep.subr.bf16.mxu1 %v4225_v10  ;;  %v4299_v10 = vld [vmem:[%s5111_s9 + $0x3c8] sm:$0xff]  }
  0x3f   : > { %922 = vmatmul.mubr.bf16.gmra.mrb[12].mxu0 %v4221_v6  ;;  %v4295_v6 = vld [vmem:[%s5111_s9 + $0x3c0] sm:$0xff]  }
  0x40   : > { %1123 = vmatmul.mubr.bf16.gmra.mrb[12].mxu1 %v4222_v7  ;;  %3832 = vmatpush3.bf16.msra.mxu0 %v4224_v9  ;;  %v4296_v7 = vld [vmem:[%s5111_s9 + $0x380] sm:$0xff]   ;;  %v4298_v9 = vld [vmem:[%s5111_s9 + $0x308] sm:$0xff]  }
  0x41   : > { %3872 = vmatpush3.bf16.msra.mxu1 %v4226_v11  ;;  %3833 = vmatprep.subr.bf16.mxu0 %v4227_v12  ;;  %v4300_v11 = vld [vmem:[%s4832_s16 + $0x14] ss:$8 sps:$4 sm:$0xff]   ;;  %v4302_v12 = vld [vmem:[%s5111_s9 + $0x388] sm:$0xff]  }
  0x42   : > { %3873 = vmatprep.subr.bf16.mxu1 %v4229_v14  ;;  %1340 = vmatprep.mubr.bf16.mxu0 %v4232_v16  ;;  %v4304_v14 = vld [vmem:[%s5111_s9 + $0x350] sm:$0xff]  }
  0x43   : > { %1590 = vmatprep.mubr.bf16.mxu1 %v4237_v20  ;;  %v4307_v16 = vld [vmem:[%s5111_s9 + $0x310] sm:$0xff]   ;;  %v4311_v20 = vld [vmem:[%s5111_s9 + $0x358] sm:$0xff]  }
  0x44   : > { %3834 = vmatpush3.bf16.msra.mxu0 %v4228_v13  ;;  %v4303_v13 = vld [vmem:[%s4832_s16 + $0x10] ss:$8 sps:$4 sm:$0xff]  }
  0x45   : > { %3874 = vmatpush3.bf16.msra.mxu1 %v4233_v17  ;;  %3899 = vmatprep.subr.bf16.mxu0 %v4234_v18  ;;  %v4308_v17 = vld [vmem:[%s4846_s26 + $0x10] ss:$8 sps:$4 sm:$0xff]  }
  0x46   : > { %3939 = vmatprep.subr.bf16.mxu1 %v4239_v22  ;;  %v4309_v18 = vld [vmem:[%s5111_s9 + $0x3d0] sm:$0xff]   ;;  %v4313_v22 = vld [vmem:[%s5111_s9 + $0x3d8] sm:$0xff]  }
  0x47   : > { %1341 = vmatmul.mubr.bf16.vlgmr.msra.gmra.mrb[16].mxu0 %v4230_v15  ;;  %v4305_v15 = vld [vmem:[%s4846_s26 + $0x14] ss:$8 sps:$4 sm:$0xff]  }
  0x48   : > { %3900 = vmatpush3.bf16.msra.mxu0 %v4238_v21  ;;  %1591 = vmatmul.mubr.bf16.vlgmr.msra.gmra.mrb[16].mxu1 %v4235_v19  ;;  %v4310_v19 = vld [vmem:[%s5111_s9 + $0x390] sm:$0xff]   ;;  %v4312_v21 = vld [vmem:[%s5111_s9 + $0x318] sm:$0xff]  }
  0x49   : > { %3940 = vmatpush3.bf16.msra.mxu1 %v4240_v23  ;;  %3901 = vmatprep.subr.bf16.mxu0 %v4241_v24  ;;  %v4314_v23 = vld [vmem:[%s4832_s16 + $0x24] ss:$8 sps:$4 sm:$0xff]   ;;  %v4316_v24 = vld [vmem:[%s5111_s9 + $0x398] sm:$0xff]  }
  0x4a   : > { %3941 = vmatprep.subr.bf16.mxu1 %v4243_v26  ;;  %1348 = vmatprep.mubr.bf16.mxu0 %v4244_v27  ;;  %v4318_v26 = vld [vmem:[%s5111_s9 + $0x360] sm:$0xff]  }
  0x4b   : > { %1598 = vmatprep.mubr.bf16.mxu1 %v4249_v31  ;;  %v4319_v27 = vld [vmem:[%s4846_s26 + $0x24] ss:$8 sps:$4 sm:$0xff]  }
  0x4c   : > { %3902 = vmatpush3.bf16.msra.mxu0 %v4242_v25  ;;  %v4317_v25 = vld [vmem:[%s4832_s16 + $0x20] ss:$8 sps:$4 sm:$0xff]  }
  0x4d   : > { %3942 = vmatpush3.bf16.msra.mxu1 %v4246_v28  ;;  %3903 = vmatprep.subr.bf16.mxu0 %v4248_v30  ;;  %v4321_v28 = vld [vmem:[%s5111_s9 + $0x320] sm:$0xff]  }
  0x4e   : > { %3943 = vmatprep.subr.bf16.mxu1 %v4253_v34  ;;  %v4323_v30 = vld [vmem:[%s5111_s9 + $0x3e0] sm:$0xff]   ;;  %v4327_v34 = vld [vmem:[%s5111_s9 + $0x3e8] sm:$0xff]  }
  0x4f   : > { %1349 = vmatmul.mubr.bf16.gmra.mrb[20].mxu0 %v4247_v29  ;;  %v4322_v29 = vld [vmem:[%s4846_s26 + $0x20] ss:$8 sps:$4 sm:$0xff]  }
  0x50   : > { %3904 = vmatpush3.bf16.msra.mxu0 %v4251_v32  ;;  %1599 = vmatmul.mubr.bf16.gmra.mrb[20].mxu1 %v4252_v33  ;;  %v4324_v31 = vld [vmem:[%s5111_s9 + $0x3a0] sm:$0xff]   ;;  %v4325_v32 = vld [vmem:[%s5111_s9 + $0x368] sm:$0xff]  }
  0x51   : > { %3944 = vmatpush3.bf16.msra.mxu1 %v4254_v35  ;;  %3905 = vmatprep.subr.bf16.mxu0 %v4255_v36  ;;  %v4326_v33 = vld [vmem:[%s5111_s9 + $0x328] sm:$0xff]   ;;  %v4328_v35 = vld [vmem:[%s4832_s16 + $0x34] ss:$8 sps:$4 sm:$0xff]  }
  0x52   : > { %3945 = vmatprep.subr.bf16.mxu1 %v4257_v38  ;;  %1356 = vmatprep.mubr.bf16.mxu0 %v4258_v39  ;;  %v4330_v36 = vld [vmem:[%s5111_s9 + $0x3a8] sm:$0xff]   ;;  %v4332_v38 = vld [vmem:[%s5111_s9 + $0x370] sm:$0xff]  }
  0x53   : > { %1606 = vmatprep.mubr.bf16.mxu1 %v4263_v43  ;;  %v4333_v39 = vld [vmem:[%s4846_s26 + $0x34] ss:$8 sps:$4 sm:$0xff]  }
  0x54   : > { %3906 = vmatpush3.bf16.msra.mxu0 %v4256_v37  ;;  %v4331_v37 = vld [vmem:[%s4832_s16 + $0x30] ss:$8 sps:$4 sm:$0xff]  }
  0x55   : > { %3946 = vmatpush3.bf16.msra.mxu1 %v4260_v40  ;;  %3907 = vmatprep.subr.bf16.mxu0 %v4262_v42  ;;  %v4335_v40 = vld [vmem:[%s5111_s9 + $0x330] sm:$0xff]  }
  0x56   : > { %3947 = vmatprep.subr.bf16.mxu1 %v4267_v46  ;;  %v4337_v42 = vld [vmem:[%s5111_s9 + $0x3f0] sm:$0xff]   ;;  %v4341_v46 = vld [vmem:[%s5111_s9 + $0x3f8] sm:$0xff]  }
  0x57   : > { %1357 = vmatmul.mubr.bf16.gmra.mrb[24].mxu0 %v4261_v41  ;;  %v4336_v41 = vld [vmem:[%s4846_s26 + $0x30] ss:$8 sps:$4 sm:$0xff]   ;;  %s4956_s26 = scalar_lea.vmem %s5108_s6, %s4572_s20 }
  0x58   : > { %3908 = vmatpush3.bf16.msra.mxu0 %v4265_v44  ;;  %1607 = vmatmul.mubr.bf16.gmra.mrb[24].mxu1 %v4266_v45  ;;  %v4338_v43 = vld [vmem:[%s5111_s9 + $0x3b0] sm:$0xff]   ;;  %v4339_v44 = vld [vmem:[%s5111_s9 + $0x378] sm:$0xff]  }
  0x59   : > { %3948 = vmatpush3.bf16.msra.mxu1 %v4268_v47  ;;  %3909 = vmatprep.subr.bf16.mxu0 %v4269_v48  ;;  %v4340_v45 = vld [vmem:[%s5111_s9 + $0x338] sm:$0xff]   ;;  %v4342_v47 = vld [vmem:[%s4956_s26] ss:$8 sps:$4 sm:$0xff]   ;;  %v4344_v48 = vld [vmem:[%s4956_s26 + $0x4] ss:$8 sps:$4 sm:$0xff]  }
  0x5a   : > { %3949 = vmatprep.subr.bf16.mxu1 %v4271_v50  ;;  %1364 = vmatprep.mubr.bf16.mxu0 %v4272_v51  ;;  %v4346_v50 = vld [vmem:[%s5111_s9 + $0x440] sm:$0xff]  }
  0x5b   : > { %1614 = vmatprep.mubr.bf16.mxu1 %v4277_v55  ;;  %v4347_v51 = vld [vmem:[%s4970_s24] ss:$8 sps:$4 sm:$0xff]  }
  0x5c   : > { %3910 = vmatpush3.bf16.msra.mxu0 %v4270_v49  ;;  %v4345_v49 = vld [vmem:[%s5111_s9 + $0x3b8] sm:$0xff]   ;;  %v4352_v55 = vld [vmem:[%s5111_s9 + $0x408] sm:$0xff]  }
  0x5d   : > { %3950 = vmatpush3.bf16.msra.mxu1 %v4274_v52  ;;  %3911 = vmatprep.subr.bf16.mxu0 %v4276_v54  ;;  %v4349_v52 = vld [vmem:[%s4970_s24 + $0x4] ss:$8 sps:$4 sm:$0xff]  }
  0x5e   : > { %3951 = vmatprep.subr.bf16.mxu1 %v4281_v58  ;;  %v4351_v54 = vld [vmem:[%s5111_s9 + $0x448] sm:$0xff]   ;;  %v4356_v58 = vld [vmem:[%s5111_s9 + $0x450] sm:$0xff]  }
  0x5f   : > { %1365 = vmatmul.mubr.bf16.gmra.mrb[28].mxu0 %v4275_v53  ;;  %v4350_v53 = vld [vmem:[%s5111_s9 + $0x400] sm:$0xff]  }
  0x60   : > { %3912 = vmatpush3.bf16.msra.mxu0 %v4279_v56  ;;  %1615 = vmatmul.mubr.bf16.gmra.mrb[28].mxu1 %v4280_v57  ;;  %v4353_v56 = vld [vmem:[%s4956_s26 + $0x14] ss:$8 sps:$4 sm:$0xff]   ;;  %v4355_v57 = vld [vmem:[%s4956_s26 + $0x10] ss:$8 sps:$4 sm:$0xff]  }
  0x61   : > { %3952 = vmatpush3.bf16.msra.mxu1 %v4282_v59  ;;  %3913 = vmatprep.subr.bf16.mxu0 %v4283_v60  ;;  %v4357_v59 = vld [vmem:[%s4970_s24 + $0x14] ss:$8 sps:$4 sm:$0xff]  }
  0x62   : > { %3953 = vmatprep.subr.bf16.mxu1 %v4285_v62  ;;  %1840 = vmatprep.mubr.bf16.mxu0 %v4288_v0  ;;  %v4359_v60 = vld [vmem:[%s5111_s9 + $0x410] sm:$0xff]   ;;  %v4361_v62 = vld [vmem:[%s5111_s9 + $0x458] sm:$0xff]   ;;  %v4363_v0 = vld [vmem:[%s4956_s26 + $0x24] ss:$8 sps:$4 sm:$0xff]  }
  0x63   : > { %2090 = vmatprep.mubr.bf16.mxu1 %v4293_v4  ;;  %v4369_v4 = vld [vmem:[%s5111_s9 + $0x420] sm:$0xff]  }
  0x64   : > { %3914 = vmatpush3.bf16.msra.mxu0 %v4284_v61  ;;  %v4360_v61 = vld [vmem:[%s4970_s24 + $0x10] ss:$8 sps:$4 sm:$0xff]  }
  0x65   : > { %3954 = vmatpush3.bf16.msra.mxu1 %v4289_v1  ;;  %3979 = vmatprep.subr.bf16.mxu0 %v4290_v2  ;;  %v4365_v1 = vld [vmem:[%s4956_s26 + $0x20] ss:$8 sps:$4 sm:$0xff]  }
  0x66   : > { %4019 = vmatprep.subr.bf16.mxu1 %v4295_v6  ;;  %v4366_v2 = vld [vmem:[%s5111_s9 + $0x460] sm:$0xff]   ;;  %v4371_v6 = vld [vmem:[%s5111_s9 + $0x468] sm:$0xff]  }
  0x67   : > { %1841 = vmatmul.mubr.bf16.vlgmr.msra.gmra.mrb[32].mxu0 %v4286_v63  ;;  %v4362_v63 = vld [vmem:[%s5111_s9 + $0x418] sm:$0xff]  }
  0x68   : > { %3980 = vmatpush3.bf16.msra.mxu0 %v4294_v5  ;;  %2091 = vmatmul.mubr.bf16.vlgmr.msra.gmra.mrb[32].mxu1 %v4291_v3  ;;  %v4367_v3 = vld [vmem:[%s4970_s24 + $0x24] ss:$8 sps:$4 sm:$0xff]   ;;  %v4370_v5 = vld [vmem:[%s4970_s24 + $0x20] ss:$8 sps:$4 sm:$0xff]  }
  0x69   : > { %4020 = vmatpush3.bf16.msra.mxu1 %v4296_v7  ;;  %3981 = vmatprep.subr.bf16.mxu0 %v4297_v8  ;;  %v4372_v7 = vld [vmem:[%s5111_s9 + $0x428] sm:$0xff]   ;;  %v4373_v8 = vld [vmem:[%s4956_s26 + $0x34] ss:$8 sps:$4 sm:$0xff]  }
  0x6a   : > { %4021 = vmatprep.subr.bf16.mxu1 %v4299_v10  ;;  %1848 = vmatprep.mubr.bf16.mxu0 %v4300_v11  ;;  %v4376_v10 = vld [vmem:[%s5111_s9 + $0x470] sm:$0xff]  }
  0x6b   : > { %2098 = vmatprep.mubr.bf16.mxu1 %v4305_v15  ;;  %v4377_v11 = vld [vmem:[%s4970_s24 + $0x34] ss:$8 sps:$4 sm:$0xff]   ;;  %v4385_v15 = vld [vmem:[%s639_s15 + $0x4] ss:$8 sps:$4 sm:$0xff]  }
  0x6c   : > { %3982 = vmatpush3.bf16.msra.mxu0 %v4298_v9  ;;  %v4375_v9 = vld [vmem:[%s4956_s26 + $0x30] ss:$8 sps:$4 sm:$0xff]  }
  0x6d   : > { %4022 = vmatpush3.bf16.msra.mxu1 %v4302_v12  ;;  %3983 = vmatprep.subr.bf16.mxu0 %v4304_v14  ;;  %v4379_v12 = vld [vmem:[%s5111_s9 + $0x430] sm:$0xff]   ;;  %v4381_v14 = vld [vmem:[%s5111_s9 + $0x478] sm:$0xff]  }
  0x6e   : > { %4023 = vmatprep.subr.bf16.mxu1 %v4309_v18  ;;  %v4386_v18 = vld [vmem:[%s639_s15 + $0x14] ss:$8 sps:$4 sm:$0xff]  }
  0x6f   : > { %1849 = vmatmul.mubr.bf16.gmra.mrb[36].mxu0 %v4303_v13  ;;  %v4380_v13 = vld [vmem:[%s4970_s24 + $0x30] ss:$8 sps:$4 sm:$0xff]  }
  0x70   : > { %3984 = vmatpush3.bf16.msra.mxu0 %v4307_v16  ;;  %2099 = vmatmul.mubr.bf16.gmra.mrb[36].mxu1 %v4308_v17  ;;  %v4382_v16 = vld [vmem:[%s5111_s9 + $0x438] sm:$0xff]   ;;  %v4383_v17 = vld [vmem:[%s639_s15] ss:$8 sps:$4 sm:$0xff]  }
  0x71   : > { %4024 = vmatpush3.bf16.msra.mxu1 %v4310_v19  ;;  %3985 = vmatprep.subr.bf16.mxu0 %v4311_v20  ;;  %v4388_v19 = vld [vmem:[%s639_s15 + $0x10] ss:$8 sps:$4 sm:$0xff]   ;;  %v4389_v20 = vld [vmem:[%s639_s15 + $0x24] ss:$8 sps:$4 sm:$0xff]  }
  0x72   : > { %4025 = vmatprep.subr.bf16.mxu1 %v4313_v22  ;;  %1856 = vmatprep.mubr.bf16.mxu0 %v4314_v23  ;;  %v4392_v22 = vld [vmem:[%s639_s15 + $0x34] ss:$8 sps:$4 sm:$0xff]   ;;  %v4394_v23 = vld [vmem:[%s639_s15 + $0x30] ss:$8 sps:$4 sm:$0xff]  }
  0x73   : > { %2106 = vmatprep.mubr.bf16.mxu1 %v4319_v27 }
  0x74   : > { %3986 = vmatpush3.bf16.msra.mxu0 %v4312_v21  ;;  %v4391_v21 = vld [vmem:[%s639_s15 + $0x20] ss:$8 sps:$4 sm:$0xff]  }
  0x75   : > { %4026 = vmatpush3.bf16.msra.mxu1 %v4316_v24  ;;  %3987 = vmatprep.subr.bf16.mxu0 %v4318_v26 }
  0x76   : > { %4027 = vmatprep.subr.bf16.mxu1 %v4323_v30 }
  0x77   : > { %1857 = vmatmul.mubr.bf16.gmra.mrb[40].mxu0 %v4317_v25 }
  0x78   : > { %3988 = vmatpush3.bf16.msra.mxu0 %v4321_v28  ;;  %2107 = vmatmul.mubr.bf16.gmra.mrb[40].mxu1 %v4322_v29 }
  0x79   : > { %4028 = vmatpush3.bf16.msra.mxu1 %v4324_v31  ;;  %3989 = vmatprep.subr.bf16.mxu0 %v4325_v32 }
  0x7a   : > { %4029 = vmatprep.subr.bf16.mxu1 %v4327_v34  ;;  %1864 = vmatprep.mubr.bf16.mxu0 %v4328_v35 }
  0x7b   : > { %2114 = vmatprep.mubr.bf16.mxu1 %v4333_v39 }
  0x7c   : > { %3990 = vmatpush3.bf16.msra.mxu0 %v4326_v33 }
  0x7d   : > { %4030 = vmatpush3.bf16.msra.mxu1 %v4330_v36  ;;  %3991 = vmatprep.subr.bf16.mxu0 %v4332_v38 }
  0x7e   : > { %4031 = vmatprep.subr.bf16.mxu1 %v4337_v42 }
  0x7f   : > { %1865 = vmatmul.mubr.bf16.gmra.mrb[44].mxu0 %v4331_v37 }
  0x80   : > { %3992 = vmatpush3.bf16.msra.mxu0 %v4335_v40  ;;  %2115 = vmatmul.mubr.bf16.gmra.mrb[44].mxu1 %v4336_v41 }
  0x81   : > { %4032 = vmatpush3.bf16.msra.mxu1 %v4338_v43  ;;  %3993 = vmatprep.subr.bf16.mxu0 %v4339_v44 }
  0x82   : > { %4033 = vmatprep.subr.bf16.mxu1 %v4341_v46  ;;  %2340 = vmatprep.mubr.bf16.mxu0 %v4344_v48 }
  0x83   : > { %2590 = vmatprep.mubr.bf16.mxu1 %v4349_v52 }
  0x84   : > { %3994 = vmatpush3.bf16.msra.mxu0 %v4340_v45 }
  0x85   : > { %4034 = vmatpush3.bf16.msra.mxu1 %v4345_v49  ;;  %4059 = vmatprep.subr.bf16.mxu0 %v4346_v50 }
  0x87   : > { %2341 = vmatmul.mubr.bf16.vlgmr.msra.gmra.mrb[48].mxu0 %v4342_v47 }
  0x88   : > { %4060 = vmatpush3.bf16.msra.mxu0 %v4350_v53  ;;  %2591 = vmatmul.mubr.bf16.vlgmr.msra.gmra.mrb[48].mxu1 %v4347_v51  ;;  %v4395_v53 = vld [vmem:[%s5113_s11] sm:$0xff]  }
  0x89   : > { %4061 = vmatprep.subr.bf16.mxu0 %v4351_v54  ;;  %2348 = vmatprep.mubr.bf16.mxu0 %v4353_v56 }
  0x8a   : > { %2598 = vmatprep.mubr.bf16.mxu1 %v4357_v59  ;;  %4111 = vmatprep.subr.bf16.mxu1 %v4395_v53 }
  0x8b   : > { %4112 = vmatpush3.bf16.msra.mxu1 %v4395_v53 }
  0x8c   : > { %4062 = vmatpush3.bf16.msra.mxu0 %v4352_v55 }
  0x8d   : > { %4063 = vmatprep.subr.bf16.mxu0 %v4356_v58 }
  0x8f   : > { %2349 = vmatmul.mubr.bf16.gmra.mrb[52].mxu0 %v4355_v57 }
  0x90   : > { %4064 = vmatpush3.bf16.msra.mxu0 %v4359_v60  ;;  %2599 = vmatmul.mubr.bf16.gmra.mrb[52].mxu1 %v4360_v61 }
  0x91   : > { %4065 = vmatprep.subr.bf16.mxu0 %v4361_v62  ;;  %2356 = vmatprep.mubr.bf16.mxu0 %v4363_v0  ;;  %v4396_v0 = vld [vmem:[%s5113_s11 + $0x8] sm:$0xff]  }
  0x92   : > { %2606 = vmatprep.mubr.bf16.mxu1 %v4367_v3  ;;  %4113 = vmatprep.subr.bf16.mxu1 %v4396_v0 }
  0x93   : > { %4114 = vmatpush3.bf16.msra.mxu1 %v4396_v0 }
  0x94   : > { %4066 = vmatpush3.bf16.msra.mxu0 %v4362_v63 }
  0x95   : > { %4067 = vmatprep.subr.bf16.mxu0 %v4366_v2 }
  0x97   : > { %2357 = vmatmul.mubr.bf16.gmra.mrb[56].mxu0 %v4365_v1 }
  0x98   : > { %4068 = vmatpush3.bf16.msra.mxu0 %v4369_v4  ;;  %2607 = vmatmul.mubr.bf16.gmra.mrb[56].mxu1 %v4370_v5  ;;  %v4397_v4 = vld [vmem:[%s5113_s11 + $0x10] sm:$0xff]  }
  0x99   : > { %4069 = vmatprep.subr.bf16.mxu0 %v4371_v6  ;;  %2364 = vmatprep.mubr.bf16.mxu0 %v4373_v8 }
  0x9a   : > { %2614 = vmatprep.mubr.bf16.mxu1 %v4377_v11  ;;  %4115 = vmatprep.subr.bf16.mxu1 %v4397_v4 }
  0x9b   : > { %4116 = vmatpush3.bf16.msra.mxu1 %v4397_v4 }
  0x9c   : > { %4070 = vmatpush3.bf16.msra.mxu0 %v4372_v7 }
  0x9d   : > { %4071 = vmatprep.subr.bf16.mxu0 %v4376_v10 }
  0x9f   : > { %2365 = vmatmul.mubr.bf16.gmra.mrb[60].mxu0 %v4375_v9  ;;  %v4398_v9 = vld [vmem:[%s5113_s11 + $0x18] sm:$0xff]  }
  0xa0   : > { %2840 = vmatprep.mubr.bf16.mxu0 %v4385_v15  ;;  %4072 = vmatpush3.bf16.msra.mxu0 %v4379_v12 }
  0xa1   : > { %2615 = vmatmul.mubr.bf16.gmra.mrb[60].mxu1 %v4380_v13  ;;  %4073 = vmatprep.subr.bf16.mxu0 %v4381_v14 }
  0xa2   : > { %4117 = vmatprep.subr.bf16.mxu1 %v4398_v9 }
  0xa3   : > { %4118 = vmatpush3.bf16.msra.mxu1 %v4398_v9 }
  0xa4   : > { %4074 = vmatpush3.bf16.msra.mxu0 %v4382_v16 }
  0xa7   : > { %2841 = vmatmul.mubr.bf16.vlgmr.msra.gmra.mrb[64].mxu0 %v4383_v17 }
  0xa8   : > { %2848 = vmatprep.mubr.bf16.mxu0 %v4386_v18 }
  0xaf   : > { %2849 = vmatmul.mubr.bf16.gmra.mrb[68].mxu0 %v4388_v19  ;;  %v4399_v19 = vld [vmem:[%s5113_s11 + $0x20] sm:$0xff]  }
  0xb0   : > { %2856 = vmatprep.mubr.bf16.mxu0 %v4389_v20  ;;  %4119 = vmatprep.subr.bf16.mxu1 %v4399_v19 }
  0xb1   : > { %4120 = vmatpush3.bf16.msra.mxu1 %v4399_v19 }
  0xb7   : > { %2857 = vmatmul.mubr.bf16.gmra.mrb[72].mxu0 %v4391_v21 }
  0xb8   : > { %2864 = vmatprep.mubr.bf16.mxu0 %v4392_v22  ;;  %v4400_v22 = vld [vmem:[%s5113_s11 + $0x28] sm:$0xff]  }
  0xb9   : > { %4121 = vmatprep.subr.bf16.mxu1 %v4400_v22 }
  0xba   : > { %4122 = vmatpush3.bf16.msra.mxu1 %v4400_v22 }
  0xbf   : > { %2865 = vmatmul.mubr.bf16.gmra.mrb[76].mxu0 %v4394_v23 }
  0xfa   : > { %v3755_v24 = vpop.f32.mrb[0].mxu0 }
  0xfb   : > { %v3795_v25 = vpop.f32.mrb[0].mxu1  ;;  %v3756_v26 = vpop.f32.mrb[1].mxu0 }
  0xfc   : > { %v3757_v27 = vadd.f32 %v3756_v26, %v3755_v24  ;;  %v3796_v28 = vpop.f32.mrb[1].mxu1  ;;  %v3758_v29 = vpop.f32.mrb[2].mxu0 }
  0xfd   : > { %v3797_v30 = vadd.f32 %v3796_v28, %v3795_v25  ;;  %v3798_v31 = vpop.f32.mrb[2].mxu1  ;;  %v3759_v32 = vpop.f32.mrb[3].mxu0 }
  0xfe   : > { %v3760_v33 = vadd.f32 %v3759_v32, %v3758_v29  ;;  %v3799_v34 = vpop.f32.mrb[3].mxu1 }
  0xff   : > { %v5041_v35 = vadd.f32 %v3797_v30, %v3757_v27  ;;  %v3800_v36 = vadd.f32 %v3799_v34, %v3798_v31  ;;  %v4401_v30 = vld [vmem:[%s5113_s11 + $0x30] sm:$0xff]  }
 0x100   : > { %4123 = vmatprep.subr.bf16.mxu1 %v4401_v30 }
 0x101   : > { %v5043_v37 = vadd.f32 %v3800_v36, %v3760_v33  ;;  %4124 = vmatpush3.bf16.msra.mxu1 %v4401_v30 }
 0x102   : > { %v3761_v38 = vpop.f32.mrb[4].mxu0 }
 0x103   : > { %v3801_v39 = vpop.f32.mrb[4].mxu1  ;;  %v3762_v40 = vpop.f32.mrb[5].mxu0 }
 0x104   : > { %v3763_v41 = vadd.f32 %v3762_v40, %v3761_v38  ;;  %v3802_v42 = vpop.f32.mrb[5].mxu1  ;;  %v3764_v43 = vpop.f32.mrb[6].mxu0 }
 0x105   : > { %v3803_v44 = vadd.f32 %v3802_v42, %v3801_v39  ;;  %v3804_v45 = vpop.f32.mrb[6].mxu1  ;;  %v3765_v46 = vpop.f32.mrb[7].mxu0 }
 0x106   : > { %v3766_v47 = vadd.f32 %v3765_v46, %v3764_v43  ;;  %v3805_v48 = vpop.f32.mrb[7].mxu1 }
 0x107   : > { %v5045_v49 = vadd.f32 %v3803_v44, %v3763_v41  ;;  %v3806_v50 = vadd.f32 %v3805_v48, %v3804_v45 }
 0x109   : > { %v5047_v51 = vadd.f32 %v3806_v50, %v3766_v47 }
 0x10a   : > { %v3767_v52 = vpop.f32.mrb[8].mxu0 }
 0x10b   : > { %v3807_v54 = vpop.f32.mrb[8].mxu1  ;;  %v3768_v55 = vpop.f32.mrb[9].mxu0 }
 0x10c   : > { %v3769_v56 = vadd.f32 %v3768_v55, %v3767_v52  ;;  %v3808_v57 = vpop.f32.mrb[9].mxu1  ;;  %v3770_v58 = vpop.f32.mrb[10].mxu0 }
 0x10d   : > { %v3809_v59 = vadd.f32 %v3808_v57, %v3807_v54  ;;  %v3810_v60 = vpop.f32.mrb[10].mxu1  ;;  %v3771_v61 = vpop.f32.mrb[11].mxu0 }
 0x10e   : > { %v3772_v62 = vadd.f32 %v3771_v61, %v3770_v58  ;;  %v3811_v63 = vpop.f32.mrb[11].mxu1 }
 0x10f   : > { %v5055_v1 = vadd.f32 %v3809_v59, %v3769_v56  ;;  %v3812_v2 = vadd.f32 %v3811_v63, %v3810_v60 }
 0x111   : > { %v5057_v3 = vadd.f32 %v3812_v2, %v3772_v62 }
 0x112   : > { %v3773_v5 = vpop.f32.mrb[12].mxu0 }
 0x113   : > { %v3813_v6 = vpop.f32.mrb[12].mxu1  ;;  %v3774_v7 = vpop.f32.mrb[13].mxu0 }
 0x114   : > { %v3814_v8 = vpop.f32.mrb[13].mxu1  ;;  %v3775_v10 = vadd.f32 %v3774_v7, %v3773_v5  ;;  %v3776_v12 = vpop.f32.mrb[14].mxu0 }
 0x115   : > { %v3815_v11 = vadd.f32 %v3814_v8, %v3813_v6  ;;  %v3816_v13 = vpop.f32.mrb[14].mxu1  ;;  %v3777_v14 = vpop.f32.mrb[15].mxu0 }
 0x116   : > { %v3817_v15 = vpop.f32.mrb[15].mxu1  ;;  %v3778_v17 = vadd.f32 %v3777_v14, %v3776_v12 }
 0x117   : > { %v5065_v16 = vadd.f32 %v3815_v11, %v3775_v10  ;;  %v3818_v18 = vadd.f32 %v3817_v15, %v3816_v13 }
 0x119   : > { %v5070_v20 = vadd.f32 %v3818_v18, %v3778_v17 }
 0x11a   : > { %v3835_v21 = vpop.f32.mrb[16].mxu0 }
 0x11b   : > { %v3836_v23 = vpop.f32.mrb[17].mxu0  ;;  %v3875_v28 = vpop.f32.mrb[16].mxu1 }
 0x11c   : > { %v3837_v24 = vadd.f32 %v3836_v23, %v3835_v21  ;;  %v3838_v25 = vpop.f32.mrb[18].mxu0  ;;  %v3876_v31 = vpop.f32.mrb[17].mxu1 }
 0x11d   : > { %v3839_v26 = vpop.f32.mrb[19].mxu0  ;;  %v3877_v33 = vadd.f32 %v3876_v31, %v3875_v28  ;;  %v3878_v34 = vpop.f32.mrb[18].mxu1 }
 0x11e   : > { %v1373_v27 = vadd.f32 %v3837_v24, %v5041_v35  ;;  %v3840_v29 = vadd.f32 %v3839_v26, %v3838_v25  ;;  %v3879_v36 = vpop.f32.mrb[19].mxu1  ;;  %v4402_v35 = vld [vmem:[%s5113_s11 + $0x38] sm:$0xff]  }
 0x11f   : > { %v3880_v39 = vadd.f32 %v3879_v36, %v3878_v34  ;;  %4125 = vmatprep.subr.bf16.mxu1 %v4402_v35 }
 0x120   : > { %v1374_v32 = vadd.f32 %v3840_v29, %v5043_v37  ;;  %v1623_v38 = vadd.f32 %v3877_v33, %v1373_v27  ;;  %4126 = vmatpush3.bf16.msra.mxu1 %v4402_v35 }
 0x122   : > { %v1624_v40 = vadd.f32 %v3880_v39, %v1374_v32  ;;  %v3841_v41 = vpop.f32.mrb[20].mxu0 }
 0x123   : > { %v3842_v42 = vpop.f32.mrb[21].mxu0  ;;  %v3881_v45 = vpop.f32.mrb[20].mxu1 }
 0x124   : > { %v3843_v43 = vadd.f32 %v3842_v42, %v3841_v41  ;;  %v3844_v44 = vpop.f32.mrb[22].mxu0  ;;  %v3882_v48 = vpop.f32.mrb[21].mxu1 }
 0x125   : > { %v3845_v37 = vpop.f32.mrb[23].mxu0  ;;  %v3883_v50 = vadd.f32 %v3882_v48, %v3881_v45  ;;  %v3884_v52 = vpop.f32.mrb[22].mxu1 }
 0x126   : > { %v1375_v46 = vadd.f32 %v3843_v43, %v5045_v49  ;;  %v3846_v47 = vadd.f32 %v3845_v37, %v3844_v44  ;;  %v3885_v54 = vpop.f32.mrb[23].mxu1 }
 0x127   : > { %v3886_v56 = vadd.f32 %v3885_v54, %v3884_v52 }
 0x128   : > { %v1376_v53 = vadd.f32 %v3846_v47, %v5047_v51  ;;  %v1625_v55 = vadd.f32 %v3883_v50, %v1375_v46 }
 0x12a   : > { %v1626_v57 = vadd.f32 %v3886_v56, %v1376_v53  ;;  %v3847_v58 = vpop.f32.mrb[24].mxu0 }
 0x12b   : > { %v3848_v59 = vpop.f32.mrb[25].mxu0  ;;  %v3887_v62 = vpop.f32.mrb[24].mxu1 }
 0x12c   : > { %v3849_v60 = vadd.f32 %v3848_v59, %v3847_v58  ;;  %v3850_v61 = vpop.f32.mrb[26].mxu0  ;;  %v3888_v49 = vpop.f32.mrb[25].mxu1 }
 0x12d   : > { %v3851_v63 = vpop.f32.mrb[27].mxu0  ;;  %v3889_v4 = vadd.f32 %v3888_v49, %v3887_v62  ;;  %v3890_v5 = vpop.f32.mrb[26].mxu1 }
 0x12e   : > { %v1377_v0 = vadd.f32 %v3849_v60, %v5055_v1  ;;  %v3852_v2 = vadd.f32 %v3851_v63, %v3850_v61  ;;  %v3891_v7 = vpop.f32.mrb[27].mxu1 }
 0x12f   : > { %v3892_v8 = vadd.f32 %v3891_v7, %v3890_v5 }
 0x130   : > { %v1378_v6 = vadd.f32 %v3852_v2, %v5057_v3  ;;  %v1627_v51 = vadd.f32 %v3889_v4, %v1377_v0 }
 0x132   : > { %v1628_v9 = vadd.f32 %v3892_v8, %v1378_v6  ;;  %v3853_v10 = vpop.f32.mrb[28].mxu0 }
 0x133   : > { %v3854_v11 = vpop.f32.mrb[29].mxu0  ;;  %v3893_v17 = vpop.f32.mrb[28].mxu1 }
 0x134   : > { %v3855_v12 = vadd.f32 %v3854_v11, %v3853_v10  ;;  %v3856_v13 = vpop.f32.mrb[30].mxu0  ;;  %v3894_v1 = vpop.f32.mrb[29].mxu1 }
 0x135   : > { %v3857_v14 = vpop.f32.mrb[31].mxu0  ;;  %v3895_v21 = vadd.f32 %v3894_v1, %v3893_v17  ;;  %v3896_v22 = vpop.f32.mrb[30].mxu1 }
 0x136   : > { %v1379_v15 = vadd.f32 %v3855_v12, %v5065_v16  ;;  %v3858_v18 = vadd.f32 %v3857_v14, %v3856_v13  ;;  %v3897_v23 = vpop.f32.mrb[31].mxu1 }
 0x137   : > { %v3898_v24 = vadd.f32 %v3897_v23, %v3896_v22 }
 0x138   : > { %v1380_v19 = vadd.f32 %v3858_v18, %v5070_v20  ;;  %v1629_v3 = vadd.f32 %v3895_v21, %v1379_v15 }
 0x13a   : > { %v1630_v25 = vadd.f32 %v3898_v24, %v1380_v19  ;;  %v3915_v26 = vpop.f32.mrb[32].mxu0 }
 0x13b   : > { %v3916_v27 = vpop.f32.mrb[33].mxu0  ;;  %v3955_v30 = vpop.f32.mrb[32].mxu1 }
 0x13c   : > { %v3917_v28 = vadd.f32 %v3916_v27, %v3915_v26  ;;  %v3918_v29 = vpop.f32.mrb[34].mxu0  ;;  %v3956_v16 = vpop.f32.mrb[33].mxu1 }
 0x13d   : > { %v3919_v31 = vpop.f32.mrb[35].mxu0  ;;  %v3957_v34 = vadd.f32 %v3956_v16, %v3955_v30  ;;  %v3958_v36 = vpop.f32.mrb[34].mxu1 }
 0x13e   : > { %v1873_v32 = vadd.f32 %v3917_v28, %v1623_v38  ;;  %v3920_v33 = vadd.f32 %v3919_v31, %v3918_v29  ;;  %v3959_v35 = vpop.f32.mrb[35].mxu1 }
 0x13f   : > { %v3960_v41 = vadd.f32 %v3959_v35, %v3958_v36 }
 0x140   : > { %v1874_v39 = vadd.f32 %v3920_v33, %v1624_v40  ;;  %v2123_v20 = vadd.f32 %v3957_v34, %v1873_v32 }
 0x142   : > { %v2124_v42 = vadd.f32 %v3960_v41, %v1874_v39  ;;  %v3921_v43 = vpop.f32.mrb[36].mxu0 }
 0x143   : > { %v3922_v44 = vpop.f32.mrb[37].mxu0  ;;  %v3961_v46 = vpop.f32.mrb[36].mxu1 }
 0x144   : > { %v3923_v45 = vadd.f32 %v3922_v44, %v3921_v43  ;;  %v3924_v37 = vpop.f32.mrb[38].mxu0  ;;  %v3962_v52 = vpop.f32.mrb[37].mxu1 }
 0x145   : > { %v3925_v47 = vpop.f32.mrb[39].mxu0  ;;  %v3963_v53 = vadd.f32 %v3962_v52, %v3961_v46  ;;  %v3964_v38 = vpop.f32.mrb[38].mxu1 }
 0x146   : > { %v1875_v48 = vadd.f32 %v3923_v45, %v1625_v55  ;;  %v3926_v50 = vadd.f32 %v3925_v47, %v3924_v37  ;;  %v3965_v56 = vpop.f32.mrb[39].mxu1 }
 0x147   : > { %v3966_v59 = vadd.f32 %v3965_v56, %v3964_v38 }
 0x148   : > { %v1876_v54 = vadd.f32 %v3926_v50, %v1626_v57  ;;  %v2125_v58 = vadd.f32 %v3963_v53, %v1875_v48 }
 0x14a   : > { %v2126_v40 = vadd.f32 %v3966_v59, %v1876_v54  ;;  %v3927_v60 = vpop.f32.mrb[40].mxu0 }
 0x14b   : > { %v3928_v61 = vpop.f32.mrb[41].mxu0  ;;  %v3967_v49 = vpop.f32.mrb[40].mxu1 }
 0x14c   : > { %v3929_v62 = vadd.f32 %v3928_v61, %v3927_v60  ;;  %v3930_v63 = vpop.f32.mrb[42].mxu0  ;;  %v3968_v5 = vpop.f32.mrb[41].mxu1 }
 0x14d   : > { %v3931_v0 = vpop.f32.mrb[43].mxu0  ;;  %v3969_v55 = vadd.f32 %v3968_v5, %v3967_v49  ;;  %v3970_v7 = vpop.f32.mrb[42].mxu1 }
 0x14e   : > { %v1877_v2 = vadd.f32 %v3929_v62, %v1627_v51  ;;  %v3932_v4 = vadd.f32 %v3931_v0, %v3930_v63  ;;  %v3971_v8 = vpop.f32.mrb[43].mxu1 }
 0x14f   : > { %v3972_v11 = vadd.f32 %v3971_v8, %v3970_v7 }
 0x150   : > { %v1878_v6 = vadd.f32 %v3932_v4, %v1628_v9  ;;  %v2127_v10 = vadd.f32 %v3969_v55, %v1877_v2 }
 0x152   : > { %v2128_v57 = vadd.f32 %v3972_v11, %v1878_v6  ;;  %v3933_v12 = vpop.f32.mrb[44].mxu0 }
 0x153   : > { %v3934_v13 = vpop.f32.mrb[45].mxu0  ;;  %v3973_v17 = vpop.f32.mrb[44].mxu1 }
 0x154   : > { %v3935_v14 = vadd.f32 %v3934_v13, %v3933_v12  ;;  %v3936_v15 = vpop.f32.mrb[46].mxu0  ;;  %v3974_v21 = vpop.f32.mrb[45].mxu1 }
 0x155   : > { %v3937_v18 = vpop.f32.mrb[47].mxu0  ;;  %v3975_v51 = vadd.f32 %v3974_v21, %v3973_v17  ;;  %v3976_v22 = vpop.f32.mrb[46].mxu1 }
 0x156   : > { %v1879_v1 = vadd.f32 %v3935_v14, %v1629_v3  ;;  %v3938_v19 = vadd.f32 %v3937_v18, %v3936_v15  ;;  %v3977_v24 = vpop.f32.mrb[47].mxu1 }
 0x157   : > { %v3978_v26 = vadd.f32 %v3977_v24, %v3976_v22 }
 0x158   : > { %v1880_v23 = vadd.f32 %v3938_v19, %v1630_v25  ;;  %v2129_v9 = vadd.f32 %v3975_v51, %v1879_v1 }
 0x15a   : > { %v2130_v27 = vadd.f32 %v3978_v26, %v1880_v23  ;;  %v3995_v28 = vpop.f32.mrb[48].mxu0 }
 0x15b   : > { %v3996_v29 = vpop.f32.mrb[49].mxu0  ;;  %v4035_v32 = vpop.f32.mrb[48].mxu1 }
 0x15c   : > { %v3997_v30 = vadd.f32 %v3996_v29, %v3995_v28  ;;  %v3998_v31 = vpop.f32.mrb[50].mxu0  ;;  %v4036_v36 = vpop.f32.mrb[49].mxu1 }
 0x15d   : > { %v3999_v33 = vpop.f32.mrb[51].mxu0  ;;  %v4037_v39 = vadd.f32 %v4036_v36, %v4035_v32  ;;  %v4038_v3 = vpop.f32.mrb[50].mxu1 }
 0x15e   : > { %v2373_v16 = vadd.f32 %v3997_v30, %v2123_v20  ;;  %v4000_v34 = vadd.f32 %v3999_v33, %v3998_v31  ;;  %v4039_v41 = vpop.f32.mrb[51].mxu1 }
 0x15f   : > { %v4040_v44 = vadd.f32 %v4039_v41, %v4038_v3 }
 0x160   : > { %v2374_v35 = vadd.f32 %v4000_v34, %v2124_v42  ;;  %v2623_v43 = vadd.f32 %v4037_v39, %v2373_v16  ;;  %v3718_v16 = vld [vmem:[%s5112_s10] ss:$0 sm:$0xff] }
 0x162   : > { %v4001_v25 = vpop.f32.mrb[52].mxu0  ;;  %v2624_v45 = vadd.f32 %v4040_v44, %v2374_v35 }
 0x163   : > { %v4002_v37 = vpop.f32.mrb[53].mxu0  ;;  %v4041_v48 = vpop.f32.mrb[52].mxu1 }
 0x164   : > { %v4003_v46 = vadd.f32 %v4002_v37, %v4001_v25  ;;  %v4004_v47 = vpop.f32.mrb[54].mxu0  ;;  %v4042_v38 = vpop.f32.mrb[53].mxu1 }
 0x165   : > { %v4005_v50 = vpop.f32.mrb[55].mxu0  ;;  %v4043_v54 = vadd.f32 %v4042_v38, %v4041_v48  ;;  %v4044_v20 = vpop.f32.mrb[54].mxu1 }
 0x166   : > { %v2375_v52 = vadd.f32 %v4003_v46, %v2125_v58  ;;  %v4006_v53 = vadd.f32 %v4005_v50, %v4004_v47  ;;  %v4045_v59 = vpop.f32.mrb[55].mxu1 }
 0x167   : > { %v4046_v61 = vadd.f32 %v4045_v59, %v4044_v20 }
 0x168   : > { %v2376_v56 = vadd.f32 %v4006_v53, %v2126_v40  ;;  %v2625_v60 = vadd.f32 %v4043_v54, %v2375_v52 }
 0x16a   : > { %v4007_v42 = vpop.f32.mrb[56].mxu0  ;;  %v2626_v62 = vadd.f32 %v4046_v61, %v2376_v56 }
 0x16b   : > { %v4008_v63 = vpop.f32.mrb[57].mxu0  ;;  %v4047_v49 = vpop.f32.mrb[56].mxu1 }
 0x16c   : > { %v4009_v0 = vadd.f32 %v4008_v63, %v4007_v42  ;;  %v4010_v2 = vpop.f32.mrb[58].mxu0  ;;  %v4048_v55 = vpop.f32.mrb[57].mxu1 }
 0x16d   : > { %v4011_v4 = vpop.f32.mrb[59].mxu0  ;;  %v4049_v7 = vadd.f32 %v4048_v55, %v4047_v49  ;;  %v4050_v58 = vpop.f32.mrb[58].mxu1 }
 0x16e   : > { %v2377_v5 = vadd.f32 %v4009_v0, %v2127_v10  ;;  %v4012_v6 = vadd.f32 %v4011_v4, %v4010_v2  ;;  %v4051_v11 = vpop.f32.mrb[59].mxu1 }
 0x16f   : > { %v4052_v13 = vadd.f32 %v4051_v11, %v4050_v58 }
 0x170   : > { %v2378_v8 = vadd.f32 %v4012_v6, %v2128_v57  ;;  %v2627_v12 = vadd.f32 %v4049_v7, %v2377_v5 }
 0x172   : > { %v4013_v40 = vpop.f32.mrb[60].mxu0  ;;  %v2628_v14 = vadd.f32 %v4052_v13, %v2378_v8 }
 0x173   : > { %v4014_v15 = vpop.f32.mrb[61].mxu0 }
 0x174   : > { %v4015_v17 = vadd.f32 %v4014_v15, %v4013_v40  ;;  %v4016_v18 = vpop.f32.mrb[62].mxu0  ;;  %v4053_v1 = vpop.f32.mrb[60].mxu1 }
 0x175   : > { %v4017_v19 = vpop.f32.mrb[63].mxu0  ;;  %v4054_v22 = vpop.f32.mrb[61].mxu1 }
 0x176   : > { %v2379_v21 = vadd.f32 %v4015_v17, %v2129_v9  ;;  %v4018_v51 = vadd.f32 %v4017_v19, %v4016_v18  ;;  %v4055_v23 = vadd.f32 %v4054_v22, %v4053_v1  ;;  %v4056_v10 = vpop.f32.mrb[62].mxu1  ;;  %v3719_v19 = vld [vmem:[%s5114_s12] ss:$0 sm:$0xff] }
 0x177   : > { %v4057_v26 = vpop.f32.mrb[63].mxu1 }
 0x178   : > { %v2380_v24 = vadd.f32 %v4018_v51, %v2130_v27  ;;  %v2629_v28 = vadd.f32 %v4055_v23, %v2379_v21  ;;  %v4058_v29 = vadd.f32 %v4057_v26, %v4056_v10 }
 0x17a   : > { %v2630_v57 = vadd.f32 %v4058_v29, %v2380_v24  ;;  %v4075_v30 = vpop.f32.mrb[64].mxu0 }
 0x17b   : > { %v4076_v31 = vpop.f32.mrb[65].mxu0 }
 0x17c   : > { %v4077_v32 = vadd.f32 %v4076_v31, %v4075_v30  ;;  %v4078_v33 = vpop.f32.mrb[66].mxu0 }
 0x17d   : > { %v4079_v34 = vpop.f32.mrb[67].mxu0 }
 0x17e   : > { %v2873_v36 = vadd.f32 %v4077_v32, %v2623_v43  ;;  %v4080_v9 = vadd.f32 %v4079_v34, %v4078_v33 }
 0x180   : > { %v2888_v39 = vadd.f32 %v3718_v16, %v2873_v36  ;;  %v2874_v3 = vadd.f32 %v4080_v9, %v2624_v45 }
 0x182   : > { %v2889_v35 = vadd.f32 %v3718_v16, %v2874_v3  ;;  %v4081_v41 = vpop.f32.mrb[68].mxu0  ;;  %v2896_v44 = vmax.f32 %v2888_v39, 0.0 }
 0x183   : > { %v4082_v27 = vpop.f32.mrb[69].mxu0 }
 0x184   : > { %v2897_v25 = vmax.f32 %v2889_v35, 0.0  ;;  %v4083_v37 = vadd.f32 %v4082_v27, %v4081_v41  ;;  %v4084_v46 = vpop.f32.mrb[70].mxu0 }
 0x185   : > { %v4085_v47 = vpop.f32.mrb[71].mxu0 }
 0x186   : > { %v2875_v48 = vadd.f32 %v4083_v37, %v2625_v60  ;;  %v4086_v50 = vadd.f32 %v4085_v47, %v4084_v46  ;;  %v2904_v52 = vpack.c.bf16 %v2897_v25, %v2896_v44 }
 0x188   : > { %v2890_v53 = vadd.f32 %v3718_v16, %v2875_v48  ;;  %v2876_v38 = vadd.f32 %v4086_v50, %v2626_v62  ;;  %4127 = vmatprep.mubr.bf16.mxu1 %v2904_v52 }
 0x18a   : > { %v2891_v54 = vadd.f32 %v3718_v16, %v2876_v38  ;;  %v4087_v20 = vpop.f32.mrb[72].mxu0  ;;  %v2898_v56 = vmax.f32 %v2890_v53, 0.0 }
 0x18b   : > { %v4088_v43 = vpop.f32.mrb[73].mxu0 }
 0x18c   : > { %v2899_v59 = vmax.f32 %v2891_v54, 0.0  ;;  %v4089_v45 = vadd.f32 %v4088_v43, %v4087_v20  ;;  %v4090_v61 = vpop.f32.mrb[74].mxu0 }
 0x18d   : > { %v4091_v42 = vpop.f32.mrb[75].mxu0 }
 0x18e   : > { %v2905_v63 = vpack.c.bf16 %v2899_v59, %v2898_v56  ;;  %v2877_v0 = vadd.f32 %v4089_v45, %v2627_v12  ;;  %v4092_v2 = vadd.f32 %v4091_v42, %v4090_v61 }
 0x190   : > { %v2892_v49 = vadd.f32 %v3718_v16, %v2877_v0  ;;  %v2878_v4 = vadd.f32 %v4092_v2, %v2628_v14  ;;  %4128 = vmatmul.mubr.bf16.vlgmr.msra.gmra.mrb[64].mxu1 %v2905_v63 }
 0x192   : > { %v2893_v60 = vadd.f32 %v3718_v16, %v2878_v4  ;;  %v4093_v5 = vpop.f32.mrb[76].mxu0  ;;  %v2900_v55 = vmax.f32 %v2892_v49, 0.0 }
 0x193   : > { %v4094_v6 = vpop.f32.mrb[77].mxu0 }
 0x194   : > { %v2901_v62 = vmax.f32 %v2893_v60, 0.0  ;;  %v4095_v7 = vadd.f32 %v4094_v6, %v4093_v5  ;;  %v4096_v58 = vpop.f32.mrb[78].mxu0 }
 0x195   : > { %v4097_v8 = vpop.f32.mrb[79].mxu0 }
 0x196   : > { %v2879_v11 = vadd.f32 %v4095_v7, %v2629_v28  ;;  %v4098_v13 = vadd.f32 %v4097_v8, %v4096_v58  ;;  %v2906_v40 = vpack.c.bf16 %v2901_v62, %v2900_v55 }
 0x198   : > { %v2894_v15 = vadd.f32 %v3718_v16, %v2879_v11  ;;  %v2880_v17 = vadd.f32 %v4098_v13, %v2630_v57  ;;  %4131 = vmatprep.mubr.bf16.mxu1 %v2906_v40 }
 0x19a   : > { %v2895_v12 = vadd.f32 %v3718_v16, %v2880_v17  ;;  %v2902_v18 = vmax.f32 %v2894_v15, 0.0 }
 0x19c   : > { %v2903_v1 = vmax.f32 %v2895_v12, 0.0 }
 0x19e   : > { %v2907_v14 = vpack.c.bf16 %v2903_v1, %v2902_v18 }
 0x1a0   : > { %4132 = vmatmul.mubr.bf16.gmra.mrb[68].mxu1 %v2907_v14 }
 0x263   : > { %v4129_v21 = vpop.f32.mrb[64].mxu1 }
 0x264   : > { %v3022_v51 = vadd.f32 %v4129_v21, %v3719_v19  ;;  %v3013_v22 = vpop.f32.mrb[65].mxu1 }
 0x265   : > { %v3014_v23 = vadd.f32 %v3719_v19, %v3013_v22  ;;  %v4130_v10 = vpop.f32.mrb[66].mxu1 }
 0x266   : > { %v3046_v24 = vmax.f32 %v3022_v51, 0.0  ;;  %v3025_v26 = vadd.f32 %v4130_v10, %v3719_v19  ;;  %v3016_v28 = vpop.f32.mrb[67].mxu1 }
 0x267   : > { %v3044_v29 = vmax.f32 %v3014_v23, 0.0  ;;  %v3017_v57 = vadd.f32 %v3719_v19, %v3016_v28 }
 0x268   : > { %3054 = vst [vmem:[%s645_s14 + $0x10] sm:$0xff] %v3046_v24  ;;  %v3047_v30 = vmax.f32 %v3025_v26, 0.0 }
 0x269   : > { %3052 = vst [vmem:[%s645_s14] sm:$0xff] %v3044_v29  ;;  %v3045_v31 = vmax.f32 %v3017_v57, 0.0 }
 0x26a   : > { %3055 = vst [vmem:[%s645_s14 + $0x18] sm:$0xff] %v3047_v30 }
 0x26b   : > { %3053 = vst [vmem:[%s645_s14 + $0x8] sm:$0xff] %v3045_v31 }
 0x273   : > { %v4133_v32 = vpop.f32.mrb[68].mxu1 }
 0x274   : > { %v3038_v33 = vadd.f32 %v4133_v32, %v3719_v19  ;;  %v3029_v16 = vpop.f32.mrb[69].mxu1 }
 0x275   : > { %v3030_v34 = vadd.f32 %v3719_v19, %v3029_v16  ;;  %v4134_v36 = vpop.f32.mrb[70].mxu1 }
 0x276   : > { %v3050_v9 = vmax.f32 %v3038_v33, 0.0  ;;  %v3041_v39 = vadd.f32 %v4134_v36, %v3719_v19  ;;  %v3032_v3 = vpop.f32.mrb[71].mxu1 }
 0x277   : > { %v3048_v35 = vmax.f32 %v3030_v34, 0.0  ;;  %v3033_v41 = vadd.f32 %v3719_v19, %v3032_v3 }
 0x278   : > { %3058 = vst [vmem:[%s645_s14 + $0x30] sm:$0xff] %v3050_v9  ;;  %v3051_v27 = vmax.f32 %v3041_v39, 0.0 }
 0x279   : > { %3056 = vst [vmem:[%s645_s14 + $0x20] sm:$0xff] %v3048_v35  ;;  %v3049_v44 = vmax.f32 %v3033_v41, 0.0 }
 0x27a   : > { %3059 = vst [vmem:[%s645_s14 + $0x38] sm:$0xff] %v3051_v27 }
 0x27b   : > { %3057 = vst [vmem:[%s645_s14 + $0x28] sm:$0xff] %v3049_v44 }
 0x27c PF: > { %s23_s25 = sadd.s32 1, %s4409_s25  }
 0x27d   : > { %p20_p4 = scmp.ge.s32.totalorder %s23_s25, 4  }
 0x27f   :  { %22 = sbr.rel (!%p20_p4) target bundleno = 1 (0x1), region = 134 }

</bundles_post_ra>
